<compile_context>
chip_gen: v7x
topology: tpu7x:2x2x1
jax: 0.10.0
libtpu: 0.0.40
codegen_flags: <defaults>
</compile_context>

<pallas_src>
import jax
import jax.numpy as jnp
from jax.experimental import pallas as pl
from jax.experimental.pallas import tpu as pltpu

# ---- model hyper-parameters (small, consistent with the module) -------------
HIDDEN_DIM = 32
NUM_LAYERS = 4          # "mamba_layers"
ACTION_DIM = 1
FEATURE_DIM = 8
WINDOW = 8
BATCH = 2               # NOTE: batches >= 8 would fill all sublanes at no extra latency


# =============================================================================
# Fused Pallas kernel: 4-layer twin LSTM recurrence + twin-Q head, one launch
# =============================================================================
def _twin_critic_kernel(x_ref, pa_ref, wih_ref, whh_ref, blstm_ref,
                        wpa_ref, w1_ref, w2_ref, wq_ref, headb_ref, q_ref):
    # x_ref     : (W, B, 2H)  time-major input, features in lanes [0:F], rest zero (shared)
    # pa_ref    : (B, 8)      [portfolio(2), action(1), zeros] (shared)
    # wih_ref   : (L, 2H, 8H) input->gates, block-structured for both critics
    # whh_ref   : (L, 2H, 8H) hidden->gates, block-structured for both critics
    # blstm_ref : (L, 1, 8H)  b_ih + b_hh, both critics
    # wpa_ref   : (8, 2H)     [portfolio_fc | action_fc] block-diag, both critics
    # w1_ref    : (4H, 2H)    fc1 with input rows [feat1|feat2|pa1|pa2]
    # w2_ref    : (2H, 2H)    fc2 block-diag
    # wq_ref    : (2H, 2H)    q layer, col0 = q1, col1 = q2
    # headb_ref : (4, 2H)     [bpa; b1; b2; bq]
    # q_ref     : (B, 2)      [q1, q2]
    W, B, twoH = x_ref.shape
    L = wih_ref.shape[0]

    # Layer-0 input projections: W independent matmuls, fully off the serial chain.
    wih0 = wih_ref[0]
    b0 = blstm_ref[0]
    gx = [jnp.dot(x_ref[t], wih0, preferred_element_type=jnp.float32) + b0
          for t in range(W)]                               # each (B, 8H)

    h = None
    for l in range(L):                                     # static unroll over layers
        whh = whh_ref[l]                                   # (2H, 8H)
        if l < L - 1:
            wih_next = wih_ref[l + 1]
            b_next = blstm_ref[l + 1]
        c = None
        nxt = []
        for t in range(W):                                 # static unroll, W = 8
            gates = gx[t]                                  # (B, 8H)
            if t > 0:                                      # h == 0 at t == 0
                gates = gates + jnp.dot(h, whh, preferred_element_type=jnp.float32)
            # One full-width sigmoid + one full-width tanh, then lane-slice.
            sig = jax.nn.sigmoid(gates)
            th = jnp.tanh(gates)
            # Combined gate layout: [i1 i2 | f1 f2 | g1 g2 | o1 o2], each block 2H wide.
            i_g = sig[:, 0 * twoH:1 * twoH]
            f_g = sig[:, 1 * twoH:2 * twoH]
            g_g = th[:, 2 * twoH:3 * twoH]
            o_g = sig[:, 3 * twoH:4 * twoH]
            c = i_g * g_g if t == 0 else f_g * c + i_g * g_g
            h = o_g * jnp.tanh(c)                          # (B, 2H) = [h1 | h2]
            if l < L - 1:
                # Emit next-layer input projection immediately -> thin dep graph
                # (wavefront over l+t); these matmuls overlap the h@W_hh chain.
                nxt.append(jnp.dot(h, wih_next, preferred_element_type=jnp.float32)
                           + b_next)
        gx = nxt

    feat = h                                               # (B, 2H) last hidden, top layer

    # ----- Q head (dropout == identity in eval mode), both critics at once ---
    bpa = headb_ref[0:1, :]
    b1 = headb_ref[1:2, :]
    b2 = headb_ref[2:3, :]
    bq = headb_ref[3:4, :]

    pa = jnp.maximum(
        jnp.dot(pa_ref[...], wpa_ref[...], preferred_element_type=jnp.float32) + bpa, 0.0)
    cat = jnp.concatenate([feat, pa], axis=-1)             # (B, 4H) = [feat1|feat2|pa1|pa2]
    h1 = jnp.maximum(
        jnp.dot(cat, w1_ref[...], preferred_element_type=jnp.float32) + b1, 0.0)
    h2 = jnp.maximum(
        jnp.dot(h1, w2_ref[...], preferred_element_type=jnp.float32) + b2, 0.0)
    qf = jnp.dot(h2, wq_ref[...], preferred_element_type=jnp.float32) + bq
    q_ref[...] = qf[:, 0:2]                                # col0 = q1, col1 = q2


def _build_fused_call(W, B, H, L):
    grid_spec = pltpu.PrefetchScalarGridSpec(
        num_scalar_prefetch=0,
        grid=(1,),                                         # single fused launch
        in_specs=[
            pl.BlockSpec((W, B, 2 * H), lambda i: (0, 0, 0)),        # x
            pl.BlockSpec((B, 8), lambda i: (0, 0)),                  # pa_in
            pl.BlockSpec((L, 2 * H, 8 * H), lambda i: (0, 0, 0)),    # wih
            pl.BlockSpec((L, 2 * H, 8 * H), lambda i: (0, 0, 0)),    # whh
            pl.BlockSpec((L, 1, 8 * H), lambda i: (0, 0, 0)),        # b_lstm
            pl.BlockSpec((8, 2 * H), lambda i: (0, 0)),              # wpa
            pl.BlockSpec((4 * H, 2 * H), lambda i: (0, 0)),          # w1
            pl.BlockSpec((2 * H, 2 * H), lambda i: (0, 0)),          # w2
            pl.BlockSpec((2 * H, 2 * H), lambda i: (0, 0)),          # wq
            pl.BlockSpec((4, 2 * H), lambda i: (0, 0)),              # head biases
        ],
        out_specs=pl.BlockSpec((B, 2), lambda i: (0, 0)),
    )
    return pl.pallas_call(
        _twin_critic_kernel,
        out_shape=jax.ShapeDtypeStruct((B, 2), jnp.float32),
        grid_spec=grid_spec,
        compiler_params=pltpu.CompilerParams(
            dimension_semantics=("arbitrary",)),
    )


# =============================================================================
# Parameter construction (deterministic, PyTorch-style uniform init)
# =============================================================================
def _uniform(key, shape, fan_in):
    bound = 1.0 / float(fan_in) ** 0.5
    return jax.random.uniform(key, shape, jnp.float32, -bound, bound)


def init_one_critic(key, feat, hidden, layers, action_dim):
    keys = jax.random.split(key, 64)
    ki = iter(range(64))

    # LSTM (PyTorch layout): per layer w_ih (4H, in), w_hh (4H, H), b_ih (4H,), b_hh (4H,)
    lstm = []
    for l in range(layers):
        in_dim = feat if l == 0 else hidden
        lstm.append((
            _uniform(keys[next(ki)], (4 * hidden, in_dim), hidden),
            _uniform(keys[next(ki)], (4 * hidden, hidden), hidden),
            _uniform(keys[next(ki)], (4 * hidden,), hidden),
            _uniform(keys[next(ki)], (4 * hidden,), hidden),
        ))

    h4 = hidden // 4
    lin = {
        'portfolio_w': _uniform(keys[next(ki)], (h4, 2), 2),
        'portfolio_b': _uniform(keys[next(ki)], (h4,), 2),
        'action_w':    _uniform(keys[next(ki)], (h4, action_dim), action_dim),
        'action_b':    _uniform(keys[next(ki)], (h4,), action_dim),
        'fc1_w':       _uniform(keys[next(ki)], (hidden, hidden + hidden // 2), hidden + hidden // 2),
        'fc1_b':       _uniform(keys[next(ki)], (hidden,), hidden + hidden // 2),
        'fc2_w':       _uniform(keys[next(ki)], (hidden, hidden), hidden),
        'fc2_b':       _uniform(keys[next(ki)], (hidden,), hidden),
        'q_w':         _uniform(keys[next(ki)], (1, hidden), hidden),
        'q_b':         _uniform(keys[next(ki)], (1,), hidden),
    }
    return {'lstm': lstm, 'lin': lin}


def pack_twin_params(q1_params, q2_params, hidden=HIDDEN_DIM, action_dim=ACTION_DIM):
    """Pack BOTH critics into block-structured weights for the folded recurrence.

    Lane layout of the combined hidden state: h_comb = [h1(0:H) | h2(H:2H)].
    Combined gate columns: [i1 i2 | f1 f2 | g1 g2 | o1 o2], each block H wide,
    so for critic c and gate g the columns are (2g+c)*H : (2g+c+1)*H.
    Call once at load time.
    """
    H = hidden
    L = len(q1_params['lstm'])
    h4 = H // 4

    wih = jnp.zeros((L, 2 * H, 8 * H), jnp.float32)
    whh = jnp.zeros((L, 2 * H, 8 * H), jnp.float32)
    blstm = jnp.zeros((L, 1, 8 * H), jnp.float32)

    wpa = jnp.zeros((8, 2 * H), jnp.float32)
    w1 = jnp.zeros((4 * H, 2 * H), jnp.float32)
    w2 = jnp.zeros((2 * H, 2 * H), jnp.float32)
    wq = jnp.zeros((2 * H, 2 * H), jnp.float32)
    bpa = jnp.zeros((2 * H,), jnp.float32)
    b1 = jnp.zeros((2 * H,), jnp.float32)
    b2 = jnp.zeros((2 * H,), jnp.float32)
    bq = jnp.zeros((2 * H,), jnp.float32)

    for c, params in enumerate((q1_params, q2_params)):
        col0 = c * H
        # -------- LSTM stack (PyTorch gate order [i, f, g, o]) ---------------
        for l, (w_ih, w_hh, b_ih, b_hh) in enumerate(params['lstm']):
            for g in range(4):
                cols = slice((2 * g + c) * H, (2 * g + c + 1) * H)
                wg_in = w_ih[g * H:(g + 1) * H, :].T          # (in_dim, H)
                if l == 0:
                    # layer-0 input x is shared: rows 0:F feed BOTH critics' blocks
                    wih = wih.at[l, 0:wg_in.shape[0], cols].set(wg_in)
                else:
                    wih = wih.at[l, col0:col0 + H, cols].set(wg_in)
                whh = whh.at[l, col0:col0 + H, cols].set(w_hh[g * H:(g + 1) * H, :].T)
                blstm = blstm.at[l, 0, cols].set(
                    b_ih[g * H:(g + 1) * H] + b_hh[g * H:(g + 1) * H])

        lin = params['lin']
        # -------- portfolio / action fc (block-diag into this critic's lanes) -
        wpa = wpa.at[0:2, col0:col0 + h4].set(lin['portfolio_w'].T)
        wpa = wpa.at[2:2 + action_dim, col0 + h4:col0 + 2 * h4].set(lin['action_w'].T)
        bpa = bpa.at[col0:col0 + h4].set(lin['portfolio_b'])
        bpa = bpa.at[col0 + h4:col0 + 2 * h4].set(lin['action_b'])
        # -------- fc1: input rows [feat1 | feat2 | pa1 | pa2] -----------------
        w1t = lin['fc1_w'].T                                  # (H + H//2, H)
        w1 = w1.at[col0:col0 + H, col0:col0 + H].set(w1t[0:H])
        w1 = w1.at[2 * H + col0:2 * H + col0 + h4, col0:col0 + H].set(w1t[H:H + h4])
        w1 = w1.at[2 * H + col0 + h4:2 * H + col0 + 2 * h4, col0:col0 + H].set(
            w1t[H + h4:H + 2 * h4])
        b1 = b1.at[col0:col0 + H].set(lin['fc1_b'])
        # -------- fc2 (block-diag) --------------------------------------------
        w2 = w2.at[col0:col0 + H, col0:col0 + H].set(lin['fc2_w'].T)
        b2 = b2.at[col0:col0 + H].set(lin['fc2_b'])
        # -------- q layer: critic c lands in output column c -------------------
        wq = wq.at[col0:col0 + H, c].set(lin['q_w'][0])
        bq = bq.at[c].set(lin['q_b'][0])

    headb = jnp.stack([bpa, b1, b2, bq], axis=0)              # (4, 2H)
    return dict(wih=wih, whh=whh, blstm=blstm,
                wpa=wpa, w1=w1, w2=w2, wq=wq, headb=headb)


# =============================================================================
# Forward (jitted glue in plain JAX, all compute in one Pallas kernel)
# =============================================================================
def adjust_input_dimensions(market_data, expected_feat):
    f = market_data.shape[-1]
    if f == expected_feat:
        return market_data
    if f > expected_feat:
        return market_data[..., :expected_feat]
    pad = [(0, 0)] * (market_data.ndim - 1) + [(0, expected_feat - f)]
    return jnp.pad(market_data, pad)


@jax.jit
def mamba_critic_forward(packed, market_data, portfolio_state, action):
    H = HIDDEN_DIM
    market_data = adjust_input_dimensions(market_data, FEATURE_DIM)
    if market_data.ndim == 2:
        market_data = market_data[None]
    if action.ndim == 1:
        action = action[None]
    if portfolio_state.ndim == 1:
        portfolio_state = portfolio_state[None]

    B, W, F = market_data.shape
    # pad features F -> 2H (zero lanes multiply zero weight rows: exact), go time-major
    x = jnp.pad(market_data.astype(jnp.float32), ((0, 0), (0, 0), (0, 2 * H - F)))
    x = jnp.transpose(x, (1, 0, 2))                          # (W, B, 2H)

    pa_in = jnp.concatenate([portfolio_state.astype(jnp.float32),
                             action.astype(jnp.float32)], axis=1)      # (B, 2+A)
    pa_in = jnp.pad(pa_in, ((0, 0), (0, 8 - pa_in.shape[1])))           # (B, 8)

    fused = _build_fused_call(W, B, H, NUM_LAYERS)
    q = fused(x, pa_in, packed['wih'], packed['whh'], packed['blstm'],
              packed['wpa'], packed['w1'], packed['w2'], packed['wq'],
              packed['headb'])                                           # (B, 2)
    return q[:, 0:1], q[:, 1:2]


# =============================================================================
# Pure-JAX reference (for the correctness check)
# =============================================================================
def _ref_lstm(x, lstm_params):
    out = x
    for (w_ih, w_hh, b_ih, b_hh) in lstm_params:
        H = w_hh.shape[1]
        B, W, _ = out.shape
        h = jnp.zeros((B, H), jnp.float32)
        c = jnp.zeros((B, H), jnp.float32)
        ys = []
        for t in range(W):
            gates = out[:, t, :] @ w_ih.T + b_ih + h @ w_hh.T + b_hh
            i, f, g, o = jnp.split(gates, 4, axis=-1)
            i, f, o = jax.nn.sigmoid(i), jax.nn.sigmoid(f), jax.nn.sigmoid(o)
            g = jnp.tanh(g)
            c = f * c + i * g
            h = o * jnp.tanh(c)
            ys.append(h)
        out = jnp.stack(ys, axis=1)
    return out[:, -1, :]


def _ref_forward(params, market_data, portfolio_state, action):
    lin = params['lin']
    feat = _ref_lstm(market_data.astype(jnp.float32), params['lstm'])
    p = jax.nn.relu(portfolio_state @ lin['portfolio_w'].T + lin['portfolio_b'])
    a = jax.nn.relu(action @ lin['action_w'].T + lin['action_b'])
    comb = jnp.concatenate([feat, p, a], axis=1)
    x = jax.nn.relu(comb @ lin['fc1_w'].T + lin['fc1_b'])
    x = jax.nn.relu(x @ lin['fc2_w'].T + lin['fc2_b'])
    return x @ lin['q_w'].T + lin['q_b']


# =============================================================================
if __name__ == "__main__":
    key = jax.random.PRNGKey(0)
    k_q1, k_q2, k_md, k_ps, k_ac = jax.random.split(key, 5)

    q1_params = init_one_critic(k_q1, FEATURE_DIM, HIDDEN_DIM, NUM_LAYERS, ACTION_DIM)
    q2_params = init_one_critic(k_q2, FEATURE_DIM, HIDDEN_DIM, NUM_LAYERS, ACTION_DIM)
    packed = pack_twin_params(q1_params, q2_params)          # packed once, not per forward

    market_data = jax.random.normal(k_md, (BATCH, WINDOW, FEATURE_DIM), jnp.float32)
    portfolio_state = jax.random.normal(k_ps, (BATCH, 2), jnp.float32)
    action = jax.random.normal(k_ac, (BATCH, ACTION_DIM), jnp.float32)

    q1, q2 = mamba_critic_forward(packed, market_data, portfolio_state, action)
    q1 = jax.block_until_ready(q1)
    q2 = jax.block_until_ready(q2)

    # correctness check against pure-JAX reference
    q1_ref = _ref_forward(q1_params, market_data, portfolio_state, action)
    q2_ref = _ref_forward(q2_params, market_data, portfolio_state, action)
    assert q1.shape == (BATCH, 1) and q2.shape == (BATCH, 1)
    assert jnp.allclose(q1, q1_ref, atol=1e-3, rtol=1e-3), (q1, q1_ref)
    assert jnp.allclose(q2, q2_ref, atol=1e-3, rtol=1e-3), (q2, q2_ref)

    print("KERNEL_OK")
</pallas_src>

<mosaic_0001>
module attributes {stable_mosaic.version = 11 : i64} {
  func.func @_twin_critic_kernel(%arg0: i32, %arg1: memref<8x2x64xf32, #tpu.memory_space<vmem>>, %arg2: memref<2x8xf32, #tpu.memory_space<vmem>>, %arg3: memref<4x64x256xf32, #tpu.memory_space<vmem>>, %arg4: memref<4x64x256xf32, #tpu.memory_space<vmem>>, %arg5: memref<4x1x256xf32, #tpu.memory_space<vmem>>, %arg6: memref<8x64xf32, #tpu.memory_space<vmem>>, %arg7: memref<128x64xf32, #tpu.memory_space<vmem>>, %arg8: memref<64x64xf32, #tpu.memory_space<vmem>>, %arg9: memref<64x64xf32, #tpu.memory_space<vmem>>, %arg10: memref<4x64xf32, #tpu.memory_space<vmem>>, %arg11: memref<2x2xf32, #tpu.memory_space<vmem>>) attributes {dimension_semantics = [#tpu.dimension_semantics<arbitrary>], iteration_bounds = array<i64: 1>, scalar_prefetch = 0 : i64, scratch_operands = 0 : i64, tpu.core_type = #tpu.core_type<tc>, window_params = [{pipeline_mode = #tpu.pipeline_mode<synchronous>, transform_indices = @transform_0, window_bounds = array<i64: 8, 2, 64>}, {pipeline_mode = #tpu.pipeline_mode<synchronous>, transform_indices = @transform_1, window_bounds = array<i64: 2, 8>}, {pipeline_mode = #tpu.pipeline_mode<synchronous>, transform_indices = @transform_2, window_bounds = array<i64: 4, 64, 256>}, {pipeline_mode = #tpu.pipeline_mode<synchronous>, transform_indices = @transform_3, window_bounds = array<i64: 4, 64, 256>}, {pipeline_mode = #tpu.pipeline_mode<synchronous>, transform_indices = @transform_4, window_bounds = array<i64: 4, 1, 256>}, {pipeline_mode = #tpu.pipeline_mode<synchronous>, transform_indices = @transform_5, window_bounds = array<i64: 8, 64>}, {pipeline_mode = #tpu.pipeline_mode<synchronous>, transform_indices = @transform_6, window_bounds = array<i64: 128, 64>}, {pipeline_mode = #tpu.pipeline_mode<synchronous>, transform_indices = @transform_7, window_bounds = array<i64: 64, 64>}, {pipeline_mode = #tpu.pipeline_mode<synchronous>, transform_indices = @transform_8, window_bounds = array<i64: 64, 64>}, {pipeline_mode = #tpu.pipeline_mode<synchronous>, transform_indices = @transform_9, window_bounds = array<i64: 4, 64>}, {pipeline_mode = #tpu.pipeline_mode<synchronous>, transform_indices = @transform_10, window_bounds = array<i64: 2, 2>}]} {
    %c0 = arith.constant 0 : index
    %c0_0 = arith.constant 0 : index
    %c0_1 = arith.constant 0 : index
    %0 = vector.load %arg3[%c0, %c0_0, %c0_1] : memref<4x64x256xf32, #tpu.memory_space<vmem>>, vector<1x64x256xf32>
    %1 = vector.shape_cast %0 : vector<1x64x256xf32> to vector<64x256xf32>
    %c0_2 = arith.constant 0 : index
    %c0_3 = arith.constant 0 : index
    %c0_4 = arith.constant 0 : index
    %2 = vector.load %arg5[%c0_2, %c0_3, %c0_4] : memref<4x1x256xf32, #tpu.memory_space<vmem>>, vector<1x1x256xf32>
    %3 = vector.shape_cast %2 : vector<1x1x256xf32> to vector<1x256xf32>
    %c0_5 = arith.constant 0 : index
    %c0_6 = arith.constant 0 : index
    %c0_7 = arith.constant 0 : index
    %4 = vector.load %arg1[%c0_5, %c0_6, %c0_7] : memref<8x2x64xf32, #tpu.memory_space<vmem>>, vector<1x2x64xf32>
    %5 = vector.shape_cast %4 : vector<1x2x64xf32> to vector<2x64xf32>
    %cst = arith.constant dense<0.000000e+00> : vector<2x256xf32>
    %6 = tpu.matmul %5, %1, %cst {dimension_numbers = #tpu.dot_dimension_numbers<[1], [0], [0], [1], [0, 0, 1, 1], [], []>} : vector<2x64xf32>, vector<64x256xf32>, vector<2x256xf32> -> vector<2x256xf32>
    %7 = vector.broadcast %3 : vector<1x256xf32> to vector<2x256xf32>
    %8 = arith.addf %6, %7 : vector<2x256xf32>
    %c1 = arith.constant 1 : index
    %c0_8 = arith.constant 0 : index
    %c0_9 = arith.constant 0 : index
    %9 = vector.load %arg1[%c1, %c0_8, %c0_9] : memref<8x2x64xf32, #tpu.memory_space<vmem>>, vector<1x2x64xf32>
    %10 = vector.shape_cast %9 : vector<1x2x64xf32> to vector<2x64xf32>
    %cst_10 = arith.constant dense<0.000000e+00> : vector<2x256xf32>
    %11 = tpu.matmul %10, %1, %cst_10 {dimension_numbers = #tpu.dot_dimension_numbers<[1], [0], [0], [1], [0, 0, 1, 1], [], []>} : vector<2x64xf32>, vector<64x256xf32>, vector<2x256xf32> -> vector<2x256xf32>
    %12 = vector.broadcast %3 : vector<1x256xf32> to vector<2x256xf32>
    %13 = arith.addf %11, %12 : vector<2x256xf32>
    %c2 = arith.constant 2 : index
    %c0_11 = arith.constant 0 : index
    %c0_12 = arith.constant 0 : index
    %14 = vector.load %arg1[%c2, %c0_11, %c0_12] : memref<8x2x64xf32, #tpu.memory_space<vmem>>, vector<1x2x64xf32>
    %15 = vector.shape_cast %14 : vector<1x2x64xf32> to vector<2x64xf32>
    %cst_13 = arith.constant dense<0.000000e+00> : vector<2x256xf32>
    %16 = tpu.matmul %15, %1, %cst_13 {dimension_numbers = #tpu.dot_dimension_numbers<[1], [0], [0], [1], [0, 0, 1, 1], [], []>} : vector<2x64xf32>, vector<64x256xf32>, vector<2x256xf32> -> vector<2x256xf32>
    %17 = vector.broadcast %3 : vector<1x256xf32> to vector<2x256xf32>
    %18 = arith.addf %16, %17 : vector<2x256xf32>
    %c3 = arith.constant 3 : index
    %c0_14 = arith.constant 0 : index
    %c0_15 = arith.constant 0 : index
    %19 = vector.load %arg1[%c3, %c0_14, %c0_15] : memref<8x2x64xf32, #tpu.memory_space<vmem>>, vector<1x2x64xf32>
    %20 = vector.shape_cast %19 : vector<1x2x64xf32> to vector<2x64xf32>
    %cst_16 = arith.constant dense<0.000000e+00> : vector<2x256xf32>
    %21 = tpu.matmul %20, %1, %cst_16 {dimension_numbers = #tpu.dot_dimension_numbers<[1], [0], [0], [1], [0, 0, 1, 1], [], []>} : vector<2x64xf32>, vector<64x256xf32>, vector<2x256xf32> -> vector<2x256xf32>
    %22 = vector.broadcast %3 : vector<1x256xf32> to vector<2x256xf32>
    %23 = arith.addf %21, %22 : vector<2x256xf32>
    %c4 = arith.constant 4 : index
    %c0_17 = arith.constant 0 : index
    %c0_18 = arith.constant 0 : index
    %24 = vector.load %arg1[%c4, %c0_17, %c0_18] : memref<8x2x64xf32, #tpu.memory_space<vmem>>, vector<1x2x64xf32>
    %25 = vector.shape_cast %24 : vector<1x2x64xf32> to vector<2x64xf32>
    %cst_19 = arith.constant dense<0.000000e+00> : vector<2x256xf32>
    %26 = tpu.matmul %25, %1, %cst_19 {dimension_numbers = #tpu.dot_dimension_numbers<[1], [0], [0], [1], [0, 0, 1, 1], [], []>} : vector<2x64xf32>, vector<64x256xf32>, vector<2x256xf32> -> vector<2x256xf32>
    %27 = vector.broadcast %3 : vector<1x256xf32> to vector<2x256xf32>
    %28 = arith.addf %26, %27 : vector<2x256xf32>
    %c5 = arith.constant 5 : index
    %c0_20 = arith.constant 0 : index
    %c0_21 = arith.constant 0 : index
    %29 = vector.load %arg1[%c5, %c0_20, %c0_21] : memref<8x2x64xf32, #tpu.memory_space<vmem>>, vector<1x2x64xf32>
    %30 = vector.shape_cast %29 : vector<1x2x64xf32> to vector<2x64xf32>
    %cst_22 = arith.constant dense<0.000000e+00> : vector<2x256xf32>
    %31 = tpu.matmul %30, %1, %cst_22 {dimension_numbers = #tpu.dot_dimension_numbers<[1], [0], [0], [1], [0, 0, 1, 1], [], []>} : vector<2x64xf32>, vector<64x256xf32>, vector<2x256xf32> -> vector<2x256xf32>
    %32 = vector.broadcast %3 : vector<1x256xf32> to vector<2x256xf32>
    %33 = arith.addf %31, %32 : vector<2x256xf32>
    %c6 = arith.constant 6 : index
    %c0_23 = arith.constant 0 : index
    %c0_24 = arith.constant 0 : index
    %34 = vector.load %arg1[%c6, %c0_23, %c0_24] : memref<8x2x64xf32, #tpu.memory_space<vmem>>, vector<1x2x64xf32>
    %35 = vector.shape_cast %34 : vector<1x2x64xf32> to vector<2x64xf32>
    %cst_25 = arith.constant dense<0.000000e+00> : vector<2x256xf32>
    %36 = tpu.matmul %35, %1, %cst_25 {dimension_numbers = #tpu.dot_dimension_numbers<[1], [0], [0], [1], [0, 0, 1, 1], [], []>} : vector<2x64xf32>, vector<64x256xf32>, vector<2x256xf32> -> vector<2x256xf32>
    %37 = vector.broadcast %3 : vector<1x256xf32> to vector<2x256xf32>
    %38 = arith.addf %36, %37 : vector<2x256xf32>
    %c7 = arith.constant 7 : index
    %c0_26 = arith.constant 0 : index
    %c0_27 = arith.constant 0 : index
    %39 = vector.load %arg1[%c7, %c0_26, %c0_27] : memref<8x2x64xf32, #tpu.memory_space<vmem>>, vector<1x2x64xf32>
    %40 = vector.shape_cast %39 : vector<1x2x64xf32> to vector<2x64xf32>
    %cst_28 = arith.constant dense<0.000000e+00> : vector<2x256xf32>
    %41 = tpu.matmul %40, %1, %cst_28 {dimension_numbers = #tpu.dot_dimension_numbers<[1], [0], [0], [1], [0, 0, 1, 1], [], []>} : vector<2x64xf32>, vector<64x256xf32>, vector<2x256xf32> -> vector<2x256xf32>
    %42 = vector.broadcast %3 : vector<1x256xf32> to vector<2x256xf32>
    %43 = arith.addf %41, %42 : vector<2x256xf32>
    %c0_29 = arith.constant 0 : index
    %c0_30 = arith.constant 0 : index
    %c0_31 = arith.constant 0 : index
    %44 = vector.load %arg4[%c0_29, %c0_30, %c0_31] : memref<4x64x256xf32, #tpu.memory_space<vmem>>, vector<1x64x256xf32>
    %45 = vector.shape_cast %44 : vector<1x64x256xf32> to vector<64x256xf32>
    %c1_32 = arith.constant 1 : index
    %c0_33 = arith.constant 0 : index
    %c0_34 = arith.constant 0 : index
    %46 = vector.load %arg3[%c1_32, %c0_33, %c0_34] : memref<4x64x256xf32, #tpu.memory_space<vmem>>, vector<1x64x256xf32>
    %47 = vector.shape_cast %46 : vector<1x64x256xf32> to vector<64x256xf32>
    %c1_35 = arith.constant 1 : index
    %c0_36 = arith.constant 0 : index
    %c0_37 = arith.constant 0 : index
    %48 = vector.load %arg5[%c1_35, %c0_36, %c0_37] : memref<4x1x256xf32, #tpu.memory_space<vmem>>, vector<1x1x256xf32>
    %49 = vector.shape_cast %48 : vector<1x1x256xf32> to vector<1x256xf32>
    %50 = arith.negf %8 : vector<2x256xf32>
    %51 = math.exp %50 : vector<2x256xf32>
    %cst_38 = arith.constant 1.000000e+00 : f32
    %52 = vector.broadcast %cst_38 : f32 to vector<2x256xf32>
    %53 = arith.addf %52, %51 : vector<2x256xf32>
    %54 = arith.divf %52, %53 : vector<2x256xf32>
    %55 = math.tanh %8 : vector<2x256xf32>
    %56 = vector.extract_strided_slice %54 {offsets = [0, 0], sizes = [2, 64], strides = [1, 1]} : vector<2x256xf32> to vector<2x64xf32>
    %57 = vector.extract_strided_slice %55 {offsets = [0, 128], sizes = [2, 64], strides = [1, 1]} : vector<2x256xf32> to vector<2x64xf32>
    %58 = vector.extract_strided_slice %54 {offsets = [0, 192], sizes = [2, 64], strides = [1, 1]} : vector<2x256xf32> to vector<2x64xf32>
    %59 = arith.mulf %56, %57 : vector<2x64xf32>
    %60 = math.tanh %59 : vector<2x64xf32>
    %61 = arith.mulf %58, %60 : vector<2x64xf32>
    %cst_39 = arith.constant dense<0.000000e+00> : vector<2x256xf32>
    %62 = tpu.matmul %61, %47, %cst_39 {dimension_numbers = #tpu.dot_dimension_numbers<[1], [0], [0], [1], [0, 0, 1, 1], [], []>} : vector<2x64xf32>, vector<64x256xf32>, vector<2x256xf32> -> vector<2x256xf32>
    %63 = vector.broadcast %49 : vector<1x256xf32> to vector<2x256xf32>
    %64 = arith.addf %62, %63 : vector<2x256xf32>
    %cst_40 = arith.constant dense<0.000000e+00> : vector<2x256xf32>
    %65 = tpu.matmul %61, %45, %cst_40 {dimension_numbers = #tpu.dot_dimension_numbers<[1], [0], [0], [1], [0, 0, 1, 1], [], []>} : vector<2x64xf32>, vector<64x256xf32>, vector<2x256xf32> -> vector<2x256xf32>
    %66 = arith.addf %13, %65 : vector<2x256xf32>
    %67 = arith.negf %66 : vector<2x256xf32>
    %68 = math.exp %67 : vector<2x256xf32>
    %cst_41 = arith.constant 1.000000e+00 : f32
    %69 = vector.broadcast %cst_41 : f32 to vector<2x256xf32>
    %70 = arith.addf %69, %68 : vector<2x256xf32>
    %71 = arith.divf %69, %70 : vector<2x256xf32>
    %72 = math.tanh %66 : vector<2x256xf32>
    %73 = vector.extract_strided_slice %71 {offsets = [0, 0], sizes = [2, 64], strides = [1, 1]} : vector<2x256xf32> to vector<2x64xf32>
    %74 = vector.extract_strided_slice %71 {offsets = [0, 64], sizes = [2, 64], strides = [1, 1]} : vector<2x256xf32> to vector<2x64xf32>
    %75 = vector.extract_strided_slice %72 {offsets = [0, 128], sizes = [2, 64], strides = [1, 1]} : vector<2x256xf32> to vector<2x64xf32>
    %76 = vector.extract_strided_slice %71 {offsets = [0, 192], sizes = [2, 64], strides = [1, 1]} : vector<2x256xf32> to vector<2x64xf32>
    %77 = arith.mulf %74, %59 : vector<2x64xf32>
    %78 = arith.mulf %73, %75 : vector<2x64xf32>
    %79 = arith.addf %77, %78 : vector<2x64xf32>
    %80 = math.tanh %79 : vector<2x64xf32>
    %81 = arith.mulf %76, %80 : vector<2x64xf32>
    %cst_42 = arith.constant dense<0.000000e+00> : vector<2x256xf32>
    %82 = tpu.matmul %81, %47, %cst_42 {dimension_numbers = #tpu.dot_dimension_numbers<[1], [0], [0], [1], [0, 0, 1, 1], [], []>} : vector<2x64xf32>, vector<64x256xf32>, vector<2x256xf32> -> vector<2x256xf32>
    %83 = vector.broadcast %49 : vector<1x256xf32> to vector<2x256xf32>
    %84 = arith.addf %82, %83 : vector<2x256xf32>
    %cst_43 = arith.constant dense<0.000000e+00> : vector<2x256xf32>
    %85 = tpu.matmul %81, %45, %cst_43 {dimension_numbers = #tpu.dot_dimension_numbers<[1], [0], [0], [1], [0, 0, 1, 1], [], []>} : vector<2x64xf32>, vector<64x256xf32>, vector<2x256xf32> -> vector<2x256xf32>
    %86 = arith.addf %18, %85 : vector<2x256xf32>
    %87 = arith.negf %86 : vector<2x256xf32>
    %88 = math.exp %87 : vector<2x256xf32>
    %cst_44 = arith.constant 1.000000e+00 : f32
    %89 = vector.broadcast %cst_44 : f32 to vector<2x256xf32>
    %90 = arith.addf %89, %88 : vector<2x256xf32>
    %91 = arith.divf %89, %90 : vector<2x256xf32>
    %92 = math.tanh %86 : vector<2x256xf32>
    %93 = vector.extract_strided_slice %91 {offsets = [0, 0], sizes = [2, 64], strides = [1, 1]} : vector<2x256xf32> to vector<2x64xf32>
    %94 = vector.extract_strided_slice %91 {offsets = [0, 64], sizes = [2, 64], strides = [1, 1]} : vector<2x256xf32> to vector<2x64xf32>
    %95 = vector.extract_strided_slice %92 {offsets = [0, 128], sizes = [2, 64], strides = [1, 1]} : vector<2x256xf32> to vector<2x64xf32>
    %96 = vector.extract_strided_slice %91 {offsets = [0, 192], sizes = [2, 64], strides = [1, 1]} : vector<2x256xf32> to vector<2x64xf32>
    %97 = arith.mulf %94, %79 : vector<2x64xf32>
    %98 = arith.mulf %93, %95 : vector<2x64xf32>
    %99 = arith.addf %97, %98 : vector<2x64xf32>
    %100 = math.tanh %99 : vector<2x64xf32>
    %101 = arith.mulf %96, %100 : vector<2x64xf32>
    %cst_45 = arith.constant dense<0.000000e+00> : vector<2x256xf32>
    %102 = tpu.matmul %101, %47, %cst_45 {dimension_numbers = #tpu.dot_dimension_numbers<[1], [0], [0], [1], [0, 0, 1, 1], [], []>} : vector<2x64xf32>, vector<64x256xf32>, vector<2x256xf32> -> vector<2x256xf32>
    %103 = vector.broadcast %49 : vector<1x256xf32> to vector<2x256xf32>
    %104 = arith.addf %102, %103 : vector<2x256xf32>
    %cst_46 = arith.constant dense<0.000000e+00> : vector<2x256xf32>
    %105 = tpu.matmul %101, %45, %cst_46 {dimension_numbers = #tpu.dot_dimension_numbers<[1], [0], [0], [1], [0, 0, 1, 1], [], []>} : vector<2x64xf32>, vector<64x256xf32>, vector<2x256xf32> -> vector<2x256xf32>
    %106 = arith.addf %23, %105 : vector<2x256xf32>
    %107 = arith.negf %106 : vector<2x256xf32>
    %108 = math.exp %107 : vector<2x256xf32>
    %cst_47 = arith.constant 1.000000e+00 : f32
    %109 = vector.broadcast %cst_47 : f32 to vector<2x256xf32>
    %110 = arith.addf %109, %108 : vector<2x256xf32>
    %111 = arith.divf %109, %110 : vector<2x256xf32>
    %112 = math.tanh %106 : vector<2x256xf32>
    %113 = vector.extract_strided_slice %111 {offsets = [0, 0], sizes = [2, 64], strides = [1, 1]} : vector<2x256xf32> to vector<2x64xf32>
    %114 = vector.extract_strided_slice %111 {offsets = [0, 64], sizes = [2, 64], strides = [1, 1]} : vector<2x256xf32> to vector<2x64xf32>
    %115 = vector.extract_strided_slice %112 {offsets = [0, 128], sizes = [2, 64], strides = [1, 1]} : vector<2x256xf32> to vector<2x64xf32>
    %116 = vector.extract_strided_slice %111 {offsets = [0, 192], sizes = [2, 64], strides = [1, 1]} : vector<2x256xf32> to vector<2x64xf32>
    %117 = arith.mulf %114, %99 : vector<2x64xf32>
    %118 = arith.mulf %113, %115 : vector<2x64xf32>
    %119 = arith.addf %117, %118 : vector<2x64xf32>
    %120 = math.tanh %119 : vector<2x64xf32>
    %121 = arith.mulf %116, %120 : vector<2x64xf32>
    %cst_48 = arith.constant dense<0.000000e+00> : vector<2x256xf32>
    %122 = tpu.matmul %121, %47, %cst_48 {dimension_numbers = #tpu.dot_dimension_numbers<[1], [0], [0], [1], [0, 0, 1, 1], [], []>} : vector<2x64xf32>, vector<64x256xf32>, vector<2x256xf32> -> vector<2x256xf32>
    %123 = vector.broadcast %49 : vector<1x256xf32> to vector<2x256xf32>
    %124 = arith.addf %122, %123 : vector<2x256xf32>
    %cst_49 = arith.constant dense<0.000000e+00> : vector<2x256xf32>
    %125 = tpu.matmul %121, %45, %cst_49 {dimension_numbers = #tpu.dot_dimension_numbers<[1], [0], [0], [1], [0, 0, 1, 1], [], []>} : vector<2x64xf32>, vector<64x256xf32>, vector<2x256xf32> -> vector<2x256xf32>
    %126 = arith.addf %28, %125 : vector<2x256xf32>
    %127 = arith.negf %126 : vector<2x256xf32>
    %128 = math.exp %127 : vector<2x256xf32>
    %cst_50 = arith.constant 1.000000e+00 : f32
    %129 = vector.broadcast %cst_50 : f32 to vector<2x256xf32>
    %130 = arith.addf %129, %128 : vector<2x256xf32>
    %131 = arith.divf %129, %130 : vector<2x256xf32>
    %132 = math.tanh %126 : vector<2x256xf32>
    %133 = vector.extract_strided_slice %131 {offsets = [0, 0], sizes = [2, 64], strides = [1, 1]} : vector<2x256xf32> to vector<2x64xf32>
    %134 = vector.extract_strided_slice %131 {offsets = [0, 64], sizes = [2, 64], strides = [1, 1]} : vector<2x256xf32> to vector<2x64xf32>
    %135 = vector.extract_strided_slice %132 {offsets = [0, 128], sizes = [2, 64], strides = [1, 1]} : vector<2x256xf32> to vector<2x64xf32>
    %136 = vector.extract_strided_slice %131 {offsets = [0, 192], sizes = [2, 64], strides = [1, 1]} : vector<2x256xf32> to vector<2x64xf32>
    %137 = arith.mulf %134, %119 : vector<2x64xf32>
    %138 = arith.mulf %133, %135 : vector<2x64xf32>
    %139 = arith.addf %137, %138 : vector<2x64xf32>
    %140 = math.tanh %139 : vector<2x64xf32>
    %141 = arith.mulf %136, %140 : vector<2x64xf32>
    %cst_51 = arith.constant dense<0.000000e+00> : vector<2x256xf32>
    %142 = tpu.matmul %141, %47, %cst_51 {dimension_numbers = #tpu.dot_dimension_numbers<[1], [0], [0], [1], [0, 0, 1, 1], [], []>} : vector<2x64xf32>, vector<64x256xf32>, vector<2x256xf32> -> vector<2x256xf32>
    %143 = vector.broadcast %49 : vector<1x256xf32> to vector<2x256xf32>
    %144 = arith.addf %142, %143 : vector<2x256xf32>
    %cst_52 = arith.constant dense<0.000000e+00> : vector<2x256xf32>
    %145 = tpu.matmul %141, %45, %cst_52 {dimension_numbers = #tpu.dot_dimension_numbers<[1], [0], [0], [1], [0, 0, 1, 1], [], []>} : vector<2x64xf32>, vector<64x256xf32>, vector<2x256xf32> -> vector<2x256xf32>
    %146 = arith.addf %33, %145 : vector<2x256xf32>
    %147 = arith.negf %146 : vector<2x256xf32>
    %148 = math.exp %147 : vector<2x256xf32>
    %cst_53 = arith.constant 1.000000e+00 : f32
    %149 = vector.broadcast %cst_53 : f32 to vector<2x256xf32>
    %150 = arith.addf %149, %148 : vector<2x256xf32>
    %151 = arith.divf %149, %150 : vector<2x256xf32>
    %152 = math.tanh %146 : vector<2x256xf32>
    %153 = vector.extract_strided_slice %151 {offsets = [0, 0], sizes = [2, 64], strides = [1, 1]} : vector<2x256xf32> to vector<2x64xf32>
    %154 = vector.extract_strided_slice %151 {offsets = [0, 64], sizes = [2, 64], strides = [1, 1]} : vector<2x256xf32> to vector<2x64xf32>
    %155 = vector.extract_strided_slice %152 {offsets = [0, 128], sizes = [2, 64], strides = [1, 1]} : vector<2x256xf32> to vector<2x64xf32>
    %156 = vector.extract_strided_slice %151 {offsets = [0, 192], sizes = [2, 64], strides = [1, 1]} : vector<2x256xf32> to vector<2x64xf32>
    %157 = arith.mulf %154, %139 : vector<2x64xf32>
    %158 = arith.mulf %153, %155 : vector<2x64xf32>
    %159 = arith.addf %157, %158 : vector<2x64xf32>
    %160 = math.tanh %159 : vector<2x64xf32>
    %161 = arith.mulf %156, %160 : vector<2x64xf32>
    %cst_54 = arith.constant dense<0.000000e+00> : vector<2x256xf32>
    %162 = tpu.matmul %161, %47, %cst_54 {dimension_numbers = #tpu.dot_dimension_numbers<[1], [0], [0], [1], [0, 0, 1, 1], [], []>} : vector<2x64xf32>, vector<64x256xf32>, vector<2x256xf32> -> vector<2x256xf32>
    %163 = vector.broadcast %49 : vector<1x256xf32> to vector<2x256xf32>
    %164 = arith.addf %162, %163 : vector<2x256xf32>
    %cst_55 = arith.constant dense<0.000000e+00> : vector<2x256xf32>
    %165 = tpu.matmul %161, %45, %cst_55 {dimension_numbers = #tpu.dot_dimension_numbers<[1], [0], [0], [1], [0, 0, 1, 1], [], []>} : vector<2x64xf32>, vector<64x256xf32>, vector<2x256xf32> -> vector<2x256xf32>
    %166 = arith.addf %38, %165 : vector<2x256xf32>
    %167 = arith.negf %166 : vector<2x256xf32>
    %168 = math.exp %167 : vector<2x256xf32>
    %cst_56 = arith.constant 1.000000e+00 : f32
    %169 = vector.broadcast %cst_56 : f32 to vector<2x256xf32>
    %170 = arith.addf %169, %168 : vector<2x256xf32>
    %171 = arith.divf %169, %170 : vector<2x256xf32>
    %172 = math.tanh %166 : vector<2x256xf32>
    %173 = vector.extract_strided_slice %171 {offsets = [0, 0], sizes = [2, 64], strides = [1, 1]} : vector<2x256xf32> to vector<2x64xf32>
    %174 = vector.extract_strided_slice %171 {offsets = [0, 64], sizes = [2, 64], strides = [1, 1]} : vector<2x256xf32> to vector<2x64xf32>
    %175 = vector.extract_strided_slice %172 {offsets = [0, 128], sizes = [2, 64], strides = [1, 1]} : vector<2x256xf32> to vector<2x64xf32>
    %176 = vector.extract_strided_slice %171 {offsets = [0, 192], sizes = [2, 64], strides = [1, 1]} : vector<2x256xf32> to vector<2x64xf32>
    %177 = arith.mulf %174, %159 : vector<2x64xf32>
    %178 = arith.mulf %173, %175 : vector<2x64xf32>
    %179 = arith.addf %177, %178 : vector<2x64xf32>
    %180 = math.tanh %179 : vector<2x64xf32>
    %181 = arith.mulf %176, %180 : vector<2x64xf32>
    %cst_57 = arith.constant dense<0.000000e+00> : vector<2x256xf32>
    %182 = tpu.matmul %181, %47, %cst_57 {dimension_numbers = #tpu.dot_dimension_numbers<[1], [0], [0], [1], [0, 0, 1, 1], [], []>} : vector<2x64xf32>, vector<64x256xf32>, vector<2x256xf32> -> vector<2x256xf32>
    %183 = vector.broadcast %49 : vector<1x256xf32> to vector<2x256xf32>
    %184 = arith.addf %182, %183 : vector<2x256xf32>
    %cst_58 = arith.constant dense<0.000000e+00> : vector<2x256xf32>
    %185 = tpu.matmul %181, %45, %cst_58 {dimension_numbers = #tpu.dot_dimension_numbers<[1], [0], [0], [1], [0, 0, 1, 1], [], []>} : vector<2x64xf32>, vector<64x256xf32>, vector<2x256xf32> -> vector<2x256xf32>
    %186 = arith.addf %43, %185 : vector<2x256xf32>
    %187 = arith.negf %186 : vector<2x256xf32>
    %188 = math.exp %187 : vector<2x256xf32>
    %cst_59 = arith.constant 1.000000e+00 : f32
    %189 = vector.broadcast %cst_59 : f32 to vector<2x256xf32>
    %190 = arith.addf %189, %188 : vector<2x256xf32>
    %191 = arith.divf %189, %190 : vector<2x256xf32>
    %192 = math.tanh %186 : vector<2x256xf32>
    %193 = vector.extract_strided_slice %191 {offsets = [0, 0], sizes = [2, 64], strides = [1, 1]} : vector<2x256xf32> to vector<2x64xf32>
    %194 = vector.extract_strided_slice %191 {offsets = [0, 64], sizes = [2, 64], strides = [1, 1]} : vector<2x256xf32> to vector<2x64xf32>
    %195 = vector.extract_strided_slice %192 {offsets = [0, 128], sizes = [2, 64], strides = [1, 1]} : vector<2x256xf32> to vector<2x64xf32>
    %196 = vector.extract_strided_slice %191 {offsets = [0, 192], sizes = [2, 64], strides = [1, 1]} : vector<2x256xf32> to vector<2x64xf32>
    %197 = arith.mulf %194, %179 : vector<2x64xf32>
    %198 = arith.mulf %193, %195 : vector<2x64xf32>
    %199 = arith.addf %197, %198 : vector<2x64xf32>
    %200 = math.tanh %199 : vector<2x64xf32>
    %201 = arith.mulf %196, %200 : vector<2x64xf32>
    %cst_60 = arith.constant dense<0.000000e+00> : vector<2x256xf32>
    %202 = tpu.matmul %201, %47, %cst_60 {dimension_numbers = #tpu.dot_dimension_numbers<[1], [0], [0], [1], [0, 0, 1, 1], [], []>} : vector<2x64xf32>, vector<64x256xf32>, vector<2x256xf32> -> vector<2x256xf32>
    %203 = vector.broadcast %49 : vector<1x256xf32> to vector<2x256xf32>
    %204 = arith.addf %202, %203 : vector<2x256xf32>
    %c1_61 = arith.constant 1 : index
    %c0_62 = arith.constant 0 : index
    %c0_63 = arith.constant 0 : index
    %205 = vector.load %arg4[%c1_61, %c0_62, %c0_63] : memref<4x64x256xf32, #tpu.memory_space<vmem>>, vector<1x64x256xf32>
    %206 = vector.shape_cast %205 : vector<1x64x256xf32> to vector<64x256xf32>
    %c2_64 = arith.constant 2 : index
    %c0_65 = arith.constant 0 : index
    %c0_66 = arith.constant 0 : index
    %207 = vector.load %arg3[%c2_64, %c0_65, %c0_66] : memref<4x64x256xf32, #tpu.memory_space<vmem>>, vector<1x64x256xf32>
    %208 = vector.shape_cast %207 : vector<1x64x256xf32> to vector<64x256xf32>
    %c2_67 = arith.constant 2 : index
    %c0_68 = arith.constant 0 : index
    %c0_69 = arith.constant 0 : index
    %209 = vector.load %arg5[%c2_67, %c0_68, %c0_69] : memref<4x1x256xf32, #tpu.memory_space<vmem>>, vector<1x1x256xf32>
    %210 = vector.shape_cast %209 : vector<1x1x256xf32> to vector<1x256xf32>
    %211 = arith.negf %64 : vector<2x256xf32>
    %212 = math.exp %211 : vector<2x256xf32>
    %cst_70 = arith.constant 1.000000e+00 : f32
    %213 = vector.broadcast %cst_70 : f32 to vector<2x256xf32>
    %214 = arith.addf %213, %212 : vector<2x256xf32>
    %215 = arith.divf %213, %214 : vector<2x256xf32>
    %216 = math.tanh %64 : vector<2x256xf32>
    %217 = vector.extract_strided_slice %215 {offsets = [0, 0], sizes = [2, 64], strides = [1, 1]} : vector<2x256xf32> to vector<2x64xf32>
    %218 = vector.extract_strided_slice %216 {offsets = [0, 128], sizes = [2, 64], strides = [1, 1]} : vector<2x256xf32> to vector<2x64xf32>
    %219 = vector.extract_strided_slice %215 {offsets = [0, 192], sizes = [2, 64], strides = [1, 1]} : vector<2x256xf32> to vector<2x64xf32>
    %220 = arith.mulf %217, %218 : vector<2x64xf32>
    %221 = math.tanh %220 : vector<2x64xf32>
    %222 = arith.mulf %219, %221 : vector<2x64xf32>
    %cst_71 = arith.constant dense<0.000000e+00> : vector<2x256xf32>
    %223 = tpu.matmul %222, %208, %cst_71 {dimension_numbers = #tpu.dot_dimension_numbers<[1], [0], [0], [1], [0, 0, 1, 1], [], []>} : vector<2x64xf32>, vector<64x256xf32>, vector<2x256xf32> -> vector<2x256xf32>
    %224 = vector.broadcast %210 : vector<1x256xf32> to vector<2x256xf32>
    %225 = arith.addf %223, %224 : vector<2x256xf32>
    %cst_72 = arith.constant dense<0.000000e+00> : vector<2x256xf32>
    %226 = tpu.matmul %222, %206, %cst_72 {dimension_numbers = #tpu.dot_dimension_numbers<[1], [0], [0], [1], [0, 0, 1, 1], [], []>} : vector<2x64xf32>, vector<64x256xf32>, vector<2x256xf32> -> vector<2x256xf32>
    %227 = arith.addf %84, %226 : vector<2x256xf32>
    %228 = arith.negf %227 : vector<2x256xf32>
    %229 = math.exp %228 : vector<2x256xf32>
    %cst_73 = arith.constant 1.000000e+00 : f32
    %230 = vector.broadcast %cst_73 : f32 to vector<2x256xf32>
    %231 = arith.addf %230, %229 : vector<2x256xf32>
    %232 = arith.divf %230, %231 : vector<2x256xf32>
    %233 = math.tanh %227 : vector<2x256xf32>
    %234 = vector.extract_strided_slice %232 {offsets = [0, 0], sizes = [2, 64], strides = [1, 1]} : vector<2x256xf32> to vector<2x64xf32>
    %235 = vector.extract_strided_slice %232 {offsets = [0, 64], sizes = [2, 64], strides = [1, 1]} : vector<2x256xf32> to vector<2x64xf32>
    %236 = vector.extract_strided_slice %233 {offsets = [0, 128], sizes = [2, 64], strides = [1, 1]} : vector<2x256xf32> to vector<2x64xf32>
    %237 = vector.extract_strided_slice %232 {offsets = [0, 192], sizes = [2, 64], strides = [1, 1]} : vector<2x256xf32> to vector<2x64xf32>
    %238 = arith.mulf %235, %220 : vector<2x64xf32>
    %239 = arith.mulf %234, %236 : vector<2x64xf32>
    %240 = arith.addf %238, %239 : vector<2x64xf32>
    %241 = math.tanh %240 : vector<2x64xf32>
    %242 = arith.mulf %237, %241 : vector<2x64xf32>
    %cst_74 = arith.constant dense<0.000000e+00> : vector<2x256xf32>
    %243 = tpu.matmul %242, %208, %cst_74 {dimension_numbers = #tpu.dot_dimension_numbers<[1], [0], [0], [1], [0, 0, 1, 1], [], []>} : vector<2x64xf32>, vector<64x256xf32>, vector<2x256xf32> -> vector<2x256xf32>
    %244 = vector.broadcast %210 : vector<1x256xf32> to vector<2x256xf32>
    %245 = arith.addf %243, %244 : vector<2x256xf32>
    %cst_75 = arith.constant dense<0.000000e+00> : vector<2x256xf32>
    %246 = tpu.matmul %242, %206, %cst_75 {dimension_numbers = #tpu.dot_dimension_numbers<[1], [0], [0], [1], [0, 0, 1, 1], [], []>} : vector<2x64xf32>, vector<64x256xf32>, vector<2x256xf32> -> vector<2x256xf32>
    %247 = arith.addf %104, %246 : vector<2x256xf32>
    %248 = arith.negf %247 : vector<2x256xf32>
    %249 = math.exp %248 : vector<2x256xf32>
    %cst_76 = arith.constant 1.000000e+00 : f32
    %250 = vector.broadcast %cst_76 : f32 to vector<2x256xf32>
    %251 = arith.addf %250, %249 : vector<2x256xf32>
    %252 = arith.divf %250, %251 : vector<2x256xf32>
    %253 = math.tanh %247 : vector<2x256xf32>
    %254 = vector.extract_strided_slice %252 {offsets = [0, 0], sizes = [2, 64], strides = [1, 1]} : vector<2x256xf32> to vector<2x64xf32>
    %255 = vector.extract_strided_slice %252 {offsets = [0, 64], sizes = [2, 64], strides = [1, 1]} : vector<2x256xf32> to vector<2x64xf32>
    %256 = vector.extract_strided_slice %253 {offsets = [0, 128], sizes = [2, 64], strides = [1, 1]} : vector<2x256xf32> to vector<2x64xf32>
    %257 = vector.extract_strided_slice %252 {offsets = [0, 192], sizes = [2, 64], strides = [1, 1]} : vector<2x256xf32> to vector<2x64xf32>
    %258 = arith.mulf %255, %240 : vector<2x64xf32>
    %259 = arith.mulf %254, %256 : vector<2x64xf32>
    %260 = arith.addf %258, %259 : vector<2x64xf32>
    %261 = math.tanh %260 : vector<2x64xf32>
    %262 = arith.mulf %257, %261 : vector<2x64xf32>
    %cst_77 = arith.constant dense<0.000000e+00> : vector<2x256xf32>
    %263 = tpu.matmul %262, %208, %cst_77 {dimension_numbers = #tpu.dot_dimension_numbers<[1], [0], [0], [1], [0, 0, 1, 1], [], []>} : vector<2x64xf32>, vector<64x256xf32>, vector<2x256xf32> -> vector<2x256xf32>
    %264 = vector.broadcast %210 : vector<1x256xf32> to vector<2x256xf32>
    %265 = arith.addf %263, %264 : vector<2x256xf32>
    %cst_78 = arith.constant dense<0.000000e+00> : vector<2x256xf32>
    %266 = tpu.matmul %262, %206, %cst_78 {dimension_numbers = #tpu.dot_dimension_numbers<[1], [0], [0], [1], [0, 0, 1, 1], [], []>} : vector<2x64xf32>, vector<64x256xf32>, vector<2x256xf32> -> vector<2x256xf32>
    %267 = arith.addf %124, %266 : vector<2x256xf32>
    %268 = arith.negf %267 : vector<2x256xf32>
    %269 = math.exp %268 : vector<2x256xf32>
    %cst_79 = arith.constant 1.000000e+00 : f32
    %270 = vector.broadcast %cst_79 : f32 to vector<2x256xf32>
    %271 = arith.addf %270, %269 : vector<2x256xf32>
    %272 = arith.divf %270, %271 : vector<2x256xf32>
    %273 = math.tanh %267 : vector<2x256xf32>
    %274 = vector.extract_strided_slice %272 {offsets = [0, 0], sizes = [2, 64], strides = [1, 1]} : vector<2x256xf32> to vector<2x64xf32>
    %275 = vector.extract_strided_slice %272 {offsets = [0, 64], sizes = [2, 64], strides = [1, 1]} : vector<2x256xf32> to vector<2x64xf32>
    %276 = vector.extract_strided_slice %273 {offsets = [0, 128], sizes = [2, 64], strides = [1, 1]} : vector<2x256xf32> to vector<2x64xf32>
    %277 = vector.extract_strided_slice %272 {offsets = [0, 192], sizes = [2, 64], strides = [1, 1]} : vector<2x256xf32> to vector<2x64xf32>
    %278 = arith.mulf %275, %260 : vector<2x64xf32>
    %279 = arith.mulf %274, %276 : vector<2x64xf32>
    %280 = arith.addf %278, %279 : vector<2x64xf32>
    %281 = math.tanh %280 : vector<2x64xf32>
    %282 = arith.mulf %277, %281 : vector<2x64xf32>
    %cst_80 = arith.constant dense<0.000000e+00> : vector<2x256xf32>
    %283 = tpu.matmul %282, %208, %cst_80 {dimension_numbers = #tpu.dot_dimension_numbers<[1], [0], [0], [1], [0, 0, 1, 1], [], []>} : vector<2x64xf32>, vector<64x256xf32>, vector<2x256xf32> -> vector<2x256xf32>
    %284 = vector.broadcast %210 : vector<1x256xf32> to vector<2x256xf32>
    %285 = arith.addf %283, %284 : vector<2x256xf32>
    %cst_81 = arith.constant dense<0.000000e+00> : vector<2x256xf32>
    %286 = tpu.matmul %282, %206, %cst_81 {dimension_numbers = #tpu.dot_dimension_numbers<[1], [0], [0], [1], [0, 0, 1, 1], [], []>} : vector<2x64xf32>, vector<64x256xf32>, vector<2x256xf32> -> vector<2x256xf32>
    %287 = arith.addf %144, %286 : vector<2x256xf32>
    %288 = arith.negf %287 : vector<2x256xf32>
    %289 = math.exp %288 : vector<2x256xf32>
    %cst_82 = arith.constant 1.000000e+00 : f32
    %290 = vector.broadcast %cst_82 : f32 to vector<2x256xf32>
    %291 = arith.addf %290, %289 : vector<2x256xf32>
    %292 = arith.divf %290, %291 : vector<2x256xf32>
    %293 = math.tanh %287 : vector<2x256xf32>
    %294 = vector.extract_strided_slice %292 {offsets = [0, 0], sizes = [2, 64], strides = [1, 1]} : vector<2x256xf32> to vector<2x64xf32>
    %295 = vector.extract_strided_slice %292 {offsets = [0, 64], sizes = [2, 64], strides = [1, 1]} : vector<2x256xf32> to vector<2x64xf32>
    %296 = vector.extract_strided_slice %293 {offsets = [0, 128], sizes = [2, 64], strides = [1, 1]} : vector<2x256xf32> to vector<2x64xf32>
    %297 = vector.extract_strided_slice %292 {offsets = [0, 192], sizes = [2, 64], strides = [1, 1]} : vector<2x256xf32> to vector<2x64xf32>
    %298 = arith.mulf %295, %280 : vector<2x64xf32>
    %299 = arith.mulf %294, %296 : vector<2x64xf32>
    %300 = arith.addf %298, %299 : vector<2x64xf32>
    %301 = math.tanh %300 : vector<2x64xf32>
    %302 = arith.mulf %297, %301 : vector<2x64xf32>
    %cst_83 = arith.constant dense<0.000000e+00> : vector<2x256xf32>
    %303 = tpu.matmul %302, %208, %cst_83 {dimension_numbers = #tpu.dot_dimension_numbers<[1], [0], [0], [1], [0, 0, 1, 1], [], []>} : vector<2x64xf32>, vector<64x256xf32>, vector<2x256xf32> -> vector<2x256xf32>
    %304 = vector.broadcast %210 : vector<1x256xf32> to vector<2x256xf32>
    %305 = arith.addf %303, %304 : vector<2x256xf32>
    %cst_84 = arith.constant dense<0.000000e+00> : vector<2x256xf32>
    %306 = tpu.matmul %302, %206, %cst_84 {dimension_numbers = #tpu.dot_dimension_numbers<[1], [0], [0], [1], [0, 0, 1, 1], [], []>} : vector<2x64xf32>, vector<64x256xf32>, vector<2x256xf32> -> vector<2x256xf32>
    %307 = arith.addf %164, %306 : vector<2x256xf32>
    %308 = arith.negf %307 : vector<2x256xf32>
    %309 = math.exp %308 : vector<2x256xf32>
    %cst_85 = arith.constant 1.000000e+00 : f32
    %310 = vector.broadcast %cst_85 : f32 to vector<2x256xf32>
    %311 = arith.addf %310, %309 : vector<2x256xf32>
    %312 = arith.divf %310, %311 : vector<2x256xf32>
    %313 = math.tanh %307 : vector<2x256xf32>
    %314 = vector.extract_strided_slice %312 {offsets = [0, 0], sizes = [2, 64], strides = [1, 1]} : vector<2x256xf32> to vector<2x64xf32>
    %315 = vector.extract_strided_slice %312 {offsets = [0, 64], sizes = [2, 64], strides = [1, 1]} : vector<2x256xf32> to vector<2x64xf32>
    %316 = vector.extract_strided_slice %313 {offsets = [0, 128], sizes = [2, 64], strides = [1, 1]} : vector<2x256xf32> to vector<2x64xf32>
    %317 = vector.extract_strided_slice %312 {offsets = [0, 192], sizes = [2, 64], strides = [1, 1]} : vector<2x256xf32> to vector<2x64xf32>
    %318 = arith.mulf %315, %300 : vector<2x64xf32>
    %319 = arith.mulf %314, %316 : vector<2x64xf32>
    %320 = arith.addf %318, %319 : vector<2x64xf32>
    %321 = math.tanh %320 : vector<2x64xf32>
    %322 = arith.mulf %317, %321 : vector<2x64xf32>
    %cst_86 = arith.constant dense<0.000000e+00> : vector<2x256xf32>
    %323 = tpu.matmul %322, %208, %cst_86 {dimension_numbers = #tpu.dot_dimension_numbers<[1], [0], [0], [1], [0, 0, 1, 1], [], []>} : vector<2x64xf32>, vector<64x256xf32>, vector<2x256xf32> -> vector<2x256xf32>
    %324 = vector.broadcast %210 : vector<1x256xf32> to vector<2x256xf32>
    %325 = arith.addf %323, %324 : vector<2x256xf32>
    %cst_87 = arith.constant dense<0.000000e+00> : vector<2x256xf32>
    %326 = tpu.matmul %322, %206, %cst_87 {dimension_numbers = #tpu.dot_dimension_numbers<[1], [0], [0], [1], [0, 0, 1, 1], [], []>} : vector<2x64xf32>, vector<64x256xf32>, vector<2x256xf32> -> vector<2x256xf32>
    %327 = arith.addf %184, %326 : vector<2x256xf32>
    %328 = arith.negf %327 : vector<2x256xf32>
    %329 = math.exp %328 : vector<2x256xf32>
    %cst_88 = arith.constant 1.000000e+00 : f32
    %330 = vector.broadcast %cst_88 : f32 to vector<2x256xf32>
    %331 = arith.addf %330, %329 : vector<2x256xf32>
    %332 = arith.divf %330, %331 : vector<2x256xf32>
    %333 = math.tanh %327 : vector<2x256xf32>
    %334 = vector.extract_strided_slice %332 {offsets = [0, 0], sizes = [2, 64], strides = [1, 1]} : vector<2x256xf32> to vector<2x64xf32>
    %335 = vector.extract_strided_slice %332 {offsets = [0, 64], sizes = [2, 64], strides = [1, 1]} : vector<2x256xf32> to vector<2x64xf32>
    %336 = vector.extract_strided_slice %333 {offsets = [0, 128], sizes = [2, 64], strides = [1, 1]} : vector<2x256xf32> to vector<2x64xf32>
    %337 = vector.extract_strided_slice %332 {offsets = [0, 192], sizes = [2, 64], strides = [1, 1]} : vector<2x256xf32> to vector<2x64xf32>
    %338 = arith.mulf %335, %320 : vector<2x64xf32>
    %339 = arith.mulf %334, %336 : vector<2x64xf32>
    %340 = arith.addf %338, %339 : vector<2x64xf32>
    %341 = math.tanh %340 : vector<2x64xf32>
    %342 = arith.mulf %337, %341 : vector<2x64xf32>
    %cst_89 = arith.constant dense<0.000000e+00> : vector<2x256xf32>
    %343 = tpu.matmul %342, %208, %cst_89 {dimension_numbers = #tpu.dot_dimension_numbers<[1], [0], [0], [1], [0, 0, 1, 1], [], []>} : vector<2x64xf32>, vector<64x256xf32>, vector<2x256xf32> -> vector<2x256xf32>
    %344 = vector.broadcast %210 : vector<1x256xf32> to vector<2x256xf32>
    %345 = arith.addf %343, %344 : vector<2x256xf32>
    %cst_90 = arith.constant dense<0.000000e+00> : vector<2x256xf32>
    %346 = tpu.matmul %342, %206, %cst_90 {dimension_numbers = #tpu.dot_dimension_numbers<[1], [0], [0], [1], [0, 0, 1, 1], [], []>} : vector<2x64xf32>, vector<64x256xf32>, vector<2x256xf32> -> vector<2x256xf32>
    %347 = arith.addf %204, %346 : vector<2x256xf32>
    %348 = arith.negf %347 : vector<2x256xf32>
    %349 = math.exp %348 : vector<2x256xf32>
    %cst_91 = arith.constant 1.000000e+00 : f32
    %350 = vector.broadcast %cst_91 : f32 to vector<2x256xf32>
    %351 = arith.addf %350, %349 : vector<2x256xf32>
    %352 = arith.divf %350, %351 : vector<2x256xf32>
    %353 = math.tanh %347 : vector<2x256xf32>
    %354 = vector.extract_strided_slice %352 {offsets = [0, 0], sizes = [2, 64], strides = [1, 1]} : vector<2x256xf32> to vector<2x64xf32>
    %355 = vector.extract_strided_slice %352 {offsets = [0, 64], sizes = [2, 64], strides = [1, 1]} : vector<2x256xf32> to vector<2x64xf32>
    %356 = vector.extract_strided_slice %353 {offsets = [0, 128], sizes = [2, 64], strides = [1, 1]} : vector<2x256xf32> to vector<2x64xf32>
    %357 = vector.extract_strided_slice %352 {offsets = [0, 192], sizes = [2, 64], strides = [1, 1]} : vector<2x256xf32> to vector<2x64xf32>
    %358 = arith.mulf %355, %340 : vector<2x64xf32>
    %359 = arith.mulf %354, %356 : vector<2x64xf32>
    %360 = arith.addf %358, %359 : vector<2x64xf32>
    %361 = math.tanh %360 : vector<2x64xf32>
    %362 = arith.mulf %357, %361 : vector<2x64xf32>
    %cst_92 = arith.constant dense<0.000000e+00> : vector<2x256xf32>
    %363 = tpu.matmul %362, %208, %cst_92 {dimension_numbers = #tpu.dot_dimension_numbers<[1], [0], [0], [1], [0, 0, 1, 1], [], []>} : vector<2x64xf32>, vector<64x256xf32>, vector<2x256xf32> -> vector<2x256xf32>
    %364 = vector.broadcast %210 : vector<1x256xf32> to vector<2x256xf32>
    %365 = arith.addf %363, %364 : vector<2x256xf32>
    %c2_93 = arith.constant 2 : index
    %c0_94 = arith.constant 0 : index
    %c0_95 = arith.constant 0 : index
    %366 = vector.load %arg4[%c2_93, %c0_94, %c0_95] : memref<4x64x256xf32, #tpu.memory_space<vmem>>, vector<1x64x256xf32>
    %367 = vector.shape_cast %366 : vector<1x64x256xf32> to vector<64x256xf32>
    %c3_96 = arith.constant 3 : index
    %c0_97 = arith.constant 0 : index
    %c0_98 = arith.constant 0 : index
    %368 = vector.load %arg3[%c3_96, %c0_97, %c0_98] : memref<4x64x256xf32, #tpu.memory_space<vmem>>, vector<1x64x256xf32>
    %369 = vector.shape_cast %368 : vector<1x64x256xf32> to vector<64x256xf32>
    %c3_99 = arith.constant 3 : index
    %c0_100 = arith.constant 0 : index
    %c0_101 = arith.constant 0 : index
    %370 = vector.load %arg5[%c3_99, %c0_100, %c0_101] : memref<4x1x256xf32, #tpu.memory_space<vmem>>, vector<1x1x256xf32>
    %371 = vector.shape_cast %370 : vector<1x1x256xf32> to vector<1x256xf32>
    %372 = arith.negf %225 : vector<2x256xf32>
    %373 = math.exp %372 : vector<2x256xf32>
    %cst_102 = arith.constant 1.000000e+00 : f32
    %374 = vector.broadcast %cst_102 : f32 to vector<2x256xf32>
    %375 = arith.addf %374, %373 : vector<2x256xf32>
    %376 = arith.divf %374, %375 : vector<2x256xf32>
    %377 = math.tanh %225 : vector<2x256xf32>
    %378 = vector.extract_strided_slice %376 {offsets = [0, 0], sizes = [2, 64], strides = [1, 1]} : vector<2x256xf32> to vector<2x64xf32>
    %379 = vector.extract_strided_slice %377 {offsets = [0, 128], sizes = [2, 64], strides = [1, 1]} : vector<2x256xf32> to vector<2x64xf32>
    %380 = vector.extract_strided_slice %376 {offsets = [0, 192], sizes = [2, 64], strides = [1, 1]} : vector<2x256xf32> to vector<2x64xf32>
    %381 = arith.mulf %378, %379 : vector<2x64xf32>
    %382 = math.tanh %381 : vector<2x64xf32>
    %383 = arith.mulf %380, %382 : vector<2x64xf32>
    %cst_103 = arith.constant dense<0.000000e+00> : vector<2x256xf32>
    %384 = tpu.matmul %383, %369, %cst_103 {dimension_numbers = #tpu.dot_dimension_numbers<[1], [0], [0], [1], [0, 0, 1, 1], [], []>} : vector<2x64xf32>, vector<64x256xf32>, vector<2x256xf32> -> vector<2x256xf32>
    %385 = vector.broadcast %371 : vector<1x256xf32> to vector<2x256xf32>
    %386 = arith.addf %384, %385 : vector<2x256xf32>
    %cst_104 = arith.constant dense<0.000000e+00> : vector<2x256xf32>
    %387 = tpu.matmul %383, %367, %cst_104 {dimension_numbers = #tpu.dot_dimension_numbers<[1], [0], [0], [1], [0, 0, 1, 1], [], []>} : vector<2x64xf32>, vector<64x256xf32>, vector<2x256xf32> -> vector<2x256xf32>
    %388 = arith.addf %245, %387 : vector<2x256xf32>
    %389 = arith.negf %388 : vector<2x256xf32>
    %390 = math.exp %389 : vector<2x256xf32>
    %cst_105 = arith.constant 1.000000e+00 : f32
    %391 = vector.broadcast %cst_105 : f32 to vector<2x256xf32>
    %392 = arith.addf %391, %390 : vector<2x256xf32>
    %393 = arith.divf %391, %392 : vector<2x256xf32>
    %394 = math.tanh %388 : vector<2x256xf32>
    %395 = vector.extract_strided_slice %393 {offsets = [0, 0], sizes = [2, 64], strides = [1, 1]} : vector<2x256xf32> to vector<2x64xf32>
    %396 = vector.extract_strided_slice %393 {offsets = [0, 64], sizes = [2, 64], strides = [1, 1]} : vector<2x256xf32> to vector<2x64xf32>
    %397 = vector.extract_strided_slice %394 {offsets = [0, 128], sizes = [2, 64], strides = [1, 1]} : vector<2x256xf32> to vector<2x64xf32>
    %398 = vector.extract_strided_slice %393 {offsets = [0, 192], sizes = [2, 64], strides = [1, 1]} : vector<2x256xf32> to vector<2x64xf32>
    %399 = arith.mulf %396, %381 : vector<2x64xf32>
    %400 = arith.mulf %395, %397 : vector<2x64xf32>
    %401 = arith.addf %399, %400 : vector<2x64xf32>
    %402 = math.tanh %401 : vector<2x64xf32>
    %403 = arith.mulf %398, %402 : vector<2x64xf32>
    %cst_106 = arith.constant dense<0.000000e+00> : vector<2x256xf32>
    %404 = tpu.matmul %403, %369, %cst_106 {dimension_numbers = #tpu.dot_dimension_numbers<[1], [0], [0], [1], [0, 0, 1, 1], [], []>} : vector<2x64xf32>, vector<64x256xf32>, vector<2x256xf32> -> vector<2x256xf32>
    %405 = vector.broadcast %371 : vector<1x256xf32> to vector<2x256xf32>
    %406 = arith.addf %404, %405 : vector<2x256xf32>
    %cst_107 = arith.constant dense<0.000000e+00> : vector<2x256xf32>
    %407 = tpu.matmul %403, %367, %cst_107 {dimension_numbers = #tpu.dot_dimension_numbers<[1], [0], [0], [1], [0, 0, 1, 1], [], []>} : vector<2x64xf32>, vector<64x256xf32>, vector<2x256xf32> -> vector<2x256xf32>
    %408 = arith.addf %265, %407 : vector<2x256xf32>
    %409 = arith.negf %408 : vector<2x256xf32>
    %410 = math.exp %409 : vector<2x256xf32>
    %cst_108 = arith.constant 1.000000e+00 : f32
    %411 = vector.broadcast %cst_108 : f32 to vector<2x256xf32>
    %412 = arith.addf %411, %410 : vector<2x256xf32>
    %413 = arith.divf %411, %412 : vector<2x256xf32>
    %414 = math.tanh %408 : vector<2x256xf32>
    %415 = vector.extract_strided_slice %413 {offsets = [0, 0], sizes = [2, 64], strides = [1, 1]} : vector<2x256xf32> to vector<2x64xf32>
    %416 = vector.extract_strided_slice %413 {offsets = [0, 64], sizes = [2, 64], strides = [1, 1]} : vector<2x256xf32> to vector<2x64xf32>
    %417 = vector.extract_strided_slice %414 {offsets = [0, 128], sizes = [2, 64], strides = [1, 1]} : vector<2x256xf32> to vector<2x64xf32>
    %418 = vector.extract_strided_slice %413 {offsets = [0, 192], sizes = [2, 64], strides = [1, 1]} : vector<2x256xf32> to vector<2x64xf32>
    %419 = arith.mulf %416, %401 : vector<2x64xf32>
    %420 = arith.mulf %415, %417 : vector<2x64xf32>
    %421 = arith.addf %419, %420 : vector<2x64xf32>
    %422 = math.tanh %421 : vector<2x64xf32>
    %423 = arith.mulf %418, %422 : vector<2x64xf32>
    %cst_109 = arith.constant dense<0.000000e+00> : vector<2x256xf32>
    %424 = tpu.matmul %423, %369, %cst_109 {dimension_numbers = #tpu.dot_dimension_numbers<[1], [0], [0], [1], [0, 0, 1, 1], [], []>} : vector<2x64xf32>, vector<64x256xf32>, vector<2x256xf32> -> vector<2x256xf32>
    %425 = vector.broadcast %371 : vector<1x256xf32> to vector<2x256xf32>
    %426 = arith.addf %424, %425 : vector<2x256xf32>
    %cst_110 = arith.constant dense<0.000000e+00> : vector<2x256xf32>
    %427 = tpu.matmul %423, %367, %cst_110 {dimension_numbers = #tpu.dot_dimension_numbers<[1], [0], [0], [1], [0, 0, 1, 1], [], []>} : vector<2x64xf32>, vector<64x256xf32>, vector<2x256xf32> -> vector<2x256xf32>
    %428 = arith.addf %285, %427 : vector<2x256xf32>
    %429 = arith.negf %428 : vector<2x256xf32>
    %430 = math.exp %429 : vector<2x256xf32>
    %cst_111 = arith.constant 1.000000e+00 : f32
    %431 = vector.broadcast %cst_111 : f32 to vector<2x256xf32>
    %432 = arith.addf %431, %430 : vector<2x256xf32>
    %433 = arith.divf %431, %432 : vector<2x256xf32>
    %434 = math.tanh %428 : vector<2x256xf32>
    %435 = vector.extract_strided_slice %433 {offsets = [0, 0], sizes = [2, 64], strides = [1, 1]} : vector<2x256xf32> to vector<2x64xf32>
    %436 = vector.extract_strided_slice %433 {offsets = [0, 64], sizes = [2, 64], strides = [1, 1]} : vector<2x256xf32> to vector<2x64xf32>
    %437 = vector.extract_strided_slice %434 {offsets = [0, 128], sizes = [2, 64], strides = [1, 1]} : vector<2x256xf32> to vector<2x64xf32>
    %438 = vector.extract_strided_slice %433 {offsets = [0, 192], sizes = [2, 64], strides = [1, 1]} : vector<2x256xf32> to vector<2x64xf32>
    %439 = arith.mulf %436, %421 : vector<2x64xf32>
    %440 = arith.mulf %435, %437 : vector<2x64xf32>
    %441 = arith.addf %439, %440 : vector<2x64xf32>
    %442 = math.tanh %441 : vector<2x64xf32>
    %443 = arith.mulf %438, %442 : vector<2x64xf32>
    %cst_112 = arith.constant dense<0.000000e+00> : vector<2x256xf32>
    %444 = tpu.matmul %443, %369, %cst_112 {dimension_numbers = #tpu.dot_dimension_numbers<[1], [0], [0], [1], [0, 0, 1, 1], [], []>} : vector<2x64xf32>, vector<64x256xf32>, vector<2x256xf32> -> vector<2x256xf32>
    %445 = vector.broadcast %371 : vector<1x256xf32> to vector<2x256xf32>
    %446 = arith.addf %444, %445 : vector<2x256xf32>
    %cst_113 = arith.constant dense<0.000000e+00> : vector<2x256xf32>
    %447 = tpu.matmul %443, %367, %cst_113 {dimension_numbers = #tpu.dot_dimension_numbers<[1], [0], [0], [1], [0, 0, 1, 1], [], []>} : vector<2x64xf32>, vector<64x256xf32>, vector<2x256xf32> -> vector<2x256xf32>
    %448 = arith.addf %305, %447 : vector<2x256xf32>
    %449 = arith.negf %448 : vector<2x256xf32>
    %450 = math.exp %449 : vector<2x256xf32>
    %cst_114 = arith.constant 1.000000e+00 : f32
    %451 = vector.broadcast %cst_114 : f32 to vector<2x256xf32>
    %452 = arith.addf %451, %450 : vector<2x256xf32>
    %453 = arith.divf %451, %452 : vector<2x256xf32>
    %454 = math.tanh %448 : vector<2x256xf32>
    %455 = vector.extract_strided_slice %453 {offsets = [0, 0], sizes = [2, 64], strides = [1, 1]} : vector<2x256xf32> to vector<2x64xf32>
    %456 = vector.extract_strided_slice %453 {offsets = [0, 64], sizes = [2, 64], strides = [1, 1]} : vector<2x256xf32> to vector<2x64xf32>
    %457 = vector.extract_strided_slice %454 {offsets = [0, 128], sizes = [2, 64], strides = [1, 1]} : vector<2x256xf32> to vector<2x64xf32>
    %458 = vector.extract_strided_slice %453 {offsets = [0, 192], sizes = [2, 64], strides = [1, 1]} : vector<2x256xf32> to vector<2x64xf32>
    %459 = arith.mulf %456, %441 : vector<2x64xf32>
    %460 = arith.mulf %455, %457 : vector<2x64xf32>
    %461 = arith.addf %459, %460 : vector<2x64xf32>
    %462 = math.tanh %461 : vector<2x64xf32>
    %463 = arith.mulf %458, %462 : vector<2x64xf32>
    %cst_115 = arith.constant dense<0.000000e+00> : vector<2x256xf32>
    %464 = tpu.matmul %463, %369, %cst_115 {dimension_numbers = #tpu.dot_dimension_numbers<[1], [0], [0], [1], [0, 0, 1, 1], [], []>} : vector<2x64xf32>, vector<64x256xf32>, vector<2x256xf32> -> vector<2x256xf32>
    %465 = vector.broadcast %371 : vector<1x256xf32> to vector<2x256xf32>
    %466 = arith.addf %464, %465 : vector<2x256xf32>
    %cst_116 = arith.constant dense<0.000000e+00> : vector<2x256xf32>
    %467 = tpu.matmul %463, %367, %cst_116 {dimension_numbers = #tpu.dot_dimension_numbers<[1], [0], [0], [1], [0, 0, 1, 1], [], []>} : vector<2x64xf32>, vector<64x256xf32>, vector<2x256xf32> -> vector<2x256xf32>
    %468 = arith.addf %325, %467 : vector<2x256xf32>
    %469 = arith.negf %468 : vector<2x256xf32>
    %470 = math.exp %469 : vector<2x256xf32>
    %cst_117 = arith.constant 1.000000e+00 : f32
    %471 = vector.broadcast %cst_117 : f32 to vector<2x256xf32>
    %472 = arith.addf %471, %470 : vector<2x256xf32>
    %473 = arith.divf %471, %472 : vector<2x256xf32>
    %474 = math.tanh %468 : vector<2x256xf32>
    %475 = vector.extract_strided_slice %473 {offsets = [0, 0], sizes = [2, 64], strides = [1, 1]} : vector<2x256xf32> to vector<2x64xf32>
    %476 = vector.extract_strided_slice %473 {offsets = [0, 64], sizes = [2, 64], strides = [1, 1]} : vector<2x256xf32> to vector<2x64xf32>
    %477 = vector.extract_strided_slice %474 {offsets = [0, 128], sizes = [2, 64], strides = [1, 1]} : vector<2x256xf32> to vector<2x64xf32>
    %478 = vector.extract_strided_slice %473 {offsets = [0, 192], sizes = [2, 64], strides = [1, 1]} : vector<2x256xf32> to vector<2x64xf32>
    %479 = arith.mulf %476, %461 : vector<2x64xf32>
    %480 = arith.mulf %475, %477 : vector<2x64xf32>
    %481 = arith.addf %479, %480 : vector<2x64xf32>
    %482 = math.tanh %481 : vector<2x64xf32>
    %483 = arith.mulf %478, %482 : vector<2x64xf32>
    %cst_118 = arith.constant dense<0.000000e+00> : vector<2x256xf32>
    %484 = tpu.matmul %483, %369, %cst_118 {dimension_numbers = #tpu.dot_dimension_numbers<[1], [0], [0], [1], [0, 0, 1, 1], [], []>} : vector<2x64xf32>, vector<64x256xf32>, vector<2x256xf32> -> vector<2x256xf32>
    %485 = vector.broadcast %371 : vector<1x256xf32> to vector<2x256xf32>
    %486 = arith.addf %484, %485 : vector<2x256xf32>
    %cst_119 = arith.constant dense<0.000000e+00> : vector<2x256xf32>
    %487 = tpu.matmul %483, %367, %cst_119 {dimension_numbers = #tpu.dot_dimension_numbers<[1], [0], [0], [1], [0, 0, 1, 1], [], []>} : vector<2x64xf32>, vector<64x256xf32>, vector<2x256xf32> -> vector<2x256xf32>
    %488 = arith.addf %345, %487 : vector<2x256xf32>
    %489 = arith.negf %488 : vector<2x256xf32>
    %490 = math.exp %489 : vector<2x256xf32>
    %cst_120 = arith.constant 1.000000e+00 : f32
    %491 = vector.broadcast %cst_120 : f32 to vector<2x256xf32>
    %492 = arith.addf %491, %490 : vector<2x256xf32>
    %493 = arith.divf %491, %492 : vector<2x256xf32>
    %494 = math.tanh %488 : vector<2x256xf32>
    %495 = vector.extract_strided_slice %493 {offsets = [0, 0], sizes = [2, 64], strides = [1, 1]} : vector<2x256xf32> to vector<2x64xf32>
    %496 = vector.extract_strided_slice %493 {offsets = [0, 64], sizes = [2, 64], strides = [1, 1]} : vector<2x256xf32> to vector<2x64xf32>
    %497 = vector.extract_strided_slice %494 {offsets = [0, 128], sizes = [2, 64], strides = [1, 1]} : vector<2x256xf32> to vector<2x64xf32>
    %498 = vector.extract_strided_slice %493 {offsets = [0, 192], sizes = [2, 64], strides = [1, 1]} : vector<2x256xf32> to vector<2x64xf32>
    %499 = arith.mulf %496, %481 : vector<2x64xf32>
    %500 = arith.mulf %495, %497 : vector<2x64xf32>
    %501 = arith.addf %499, %500 : vector<2x64xf32>
    %502 = math.tanh %501 : vector<2x64xf32>
    %503 = arith.mulf %498, %502 : vector<2x64xf32>
    %cst_121 = arith.constant dense<0.000000e+00> : vector<2x256xf32>
    %504 = tpu.matmul %503, %369, %cst_121 {dimension_numbers = #tpu.dot_dimension_numbers<[1], [0], [0], [1], [0, 0, 1, 1], [], []>} : vector<2x64xf32>, vector<64x256xf32>, vector<2x256xf32> -> vector<2x256xf32>
    %505 = vector.broadcast %371 : vector<1x256xf32> to vector<2x256xf32>
    %506 = arith.addf %504, %505 : vector<2x256xf32>
    %cst_122 = arith.constant dense<0.000000e+00> : vector<2x256xf32>
    %507 = tpu.matmul %503, %367, %cst_122 {dimension_numbers = #tpu.dot_dimension_numbers<[1], [0], [0], [1], [0, 0, 1, 1], [], []>} : vector<2x64xf32>, vector<64x256xf32>, vector<2x256xf32> -> vector<2x256xf32>
    %508 = arith.addf %365, %507 : vector<2x256xf32>
    %509 = arith.negf %508 : vector<2x256xf32>
    %510 = math.exp %509 : vector<2x256xf32>
    %cst_123 = arith.constant 1.000000e+00 : f32
    %511 = vector.broadcast %cst_123 : f32 to vector<2x256xf32>
    %512 = arith.addf %511, %510 : vector<2x256xf32>
    %513 = arith.divf %511, %512 : vector<2x256xf32>
    %514 = math.tanh %508 : vector<2x256xf32>
    %515 = vector.extract_strided_slice %513 {offsets = [0, 0], sizes = [2, 64], strides = [1, 1]} : vector<2x256xf32> to vector<2x64xf32>
    %516 = vector.extract_strided_slice %513 {offsets = [0, 64], sizes = [2, 64], strides = [1, 1]} : vector<2x256xf32> to vector<2x64xf32>
    %517 = vector.extract_strided_slice %514 {offsets = [0, 128], sizes = [2, 64], strides = [1, 1]} : vector<2x256xf32> to vector<2x64xf32>
    %518 = vector.extract_strided_slice %513 {offsets = [0, 192], sizes = [2, 64], strides = [1, 1]} : vector<2x256xf32> to vector<2x64xf32>
    %519 = arith.mulf %516, %501 : vector<2x64xf32>
    %520 = arith.mulf %515, %517 : vector<2x64xf32>
    %521 = arith.addf %519, %520 : vector<2x64xf32>
    %522 = math.tanh %521 : vector<2x64xf32>
    %523 = arith.mulf %518, %522 : vector<2x64xf32>
    %cst_124 = arith.constant dense<0.000000e+00> : vector<2x256xf32>
    %524 = tpu.matmul %523, %369, %cst_124 {dimension_numbers = #tpu.dot_dimension_numbers<[1], [0], [0], [1], [0, 0, 1, 1], [], []>} : vector<2x64xf32>, vector<64x256xf32>, vector<2x256xf32> -> vector<2x256xf32>
    %525 = vector.broadcast %371 : vector<1x256xf32> to vector<2x256xf32>
    %526 = arith.addf %524, %525 : vector<2x256xf32>
    %c3_125 = arith.constant 3 : index
    %c0_126 = arith.constant 0 : index
    %c0_127 = arith.constant 0 : index
    %527 = vector.load %arg4[%c3_125, %c0_126, %c0_127] : memref<4x64x256xf32, #tpu.memory_space<vmem>>, vector<1x64x256xf32>
    %528 = vector.shape_cast %527 : vector<1x64x256xf32> to vector<64x256xf32>
    %529 = arith.negf %386 : vector<2x256xf32>
    %530 = math.exp %529 : vector<2x256xf32>
    %cst_128 = arith.constant 1.000000e+00 : f32
    %531 = vector.broadcast %cst_128 : f32 to vector<2x256xf32>
    %532 = arith.addf %531, %530 : vector<2x256xf32>
    %533 = arith.divf %531, %532 : vector<2x256xf32>
    %534 = math.tanh %386 : vector<2x256xf32>
    %535 = vector.extract_strided_slice %533 {offsets = [0, 0], sizes = [2, 64], strides = [1, 1]} : vector<2x256xf32> to vector<2x64xf32>
    %536 = vector.extract_strided_slice %534 {offsets = [0, 128], sizes = [2, 64], strides = [1, 1]} : vector<2x256xf32> to vector<2x64xf32>
    %537 = vector.extract_strided_slice %533 {offsets = [0, 192], sizes = [2, 64], strides = [1, 1]} : vector<2x256xf32> to vector<2x64xf32>
    %538 = arith.mulf %535, %536 : vector<2x64xf32>
    %539 = math.tanh %538 : vector<2x64xf32>
    %540 = arith.mulf %537, %539 : vector<2x64xf32>
    %cst_129 = arith.constant dense<0.000000e+00> : vector<2x256xf32>
    %541 = tpu.matmul %540, %528, %cst_129 {dimension_numbers = #tpu.dot_dimension_numbers<[1], [0], [0], [1], [0, 0, 1, 1], [], []>} : vector<2x64xf32>, vector<64x256xf32>, vector<2x256xf32> -> vector<2x256xf32>
    %542 = arith.addf %406, %541 : vector<2x256xf32>
    %543 = arith.negf %542 : vector<2x256xf32>
    %544 = math.exp %543 : vector<2x256xf32>
    %cst_130 = arith.constant 1.000000e+00 : f32
    %545 = vector.broadcast %cst_130 : f32 to vector<2x256xf32>
    %546 = arith.addf %545, %544 : vector<2x256xf32>
    %547 = arith.divf %545, %546 : vector<2x256xf32>
    %548 = math.tanh %542 : vector<2x256xf32>
    %549 = vector.extract_strided_slice %547 {offsets = [0, 0], sizes = [2, 64], strides = [1, 1]} : vector<2x256xf32> to vector<2x64xf32>
    %550 = vector.extract_strided_slice %547 {offsets = [0, 64], sizes = [2, 64], strides = [1, 1]} : vector<2x256xf32> to vector<2x64xf32>
    %551 = vector.extract_strided_slice %548 {offsets = [0, 128], sizes = [2, 64], strides = [1, 1]} : vector<2x256xf32> to vector<2x64xf32>
    %552 = vector.extract_strided_slice %547 {offsets = [0, 192], sizes = [2, 64], strides = [1, 1]} : vector<2x256xf32> to vector<2x64xf32>
    %553 = arith.mulf %550, %538 : vector<2x64xf32>
    %554 = arith.mulf %549, %551 : vector<2x64xf32>
    %555 = arith.addf %553, %554 : vector<2x64xf32>
    %556 = math.tanh %555 : vector<2x64xf32>
    %557 = arith.mulf %552, %556 : vector<2x64xf32>
    %cst_131 = arith.constant dense<0.000000e+00> : vector<2x256xf32>
    %558 = tpu.matmul %557, %528, %cst_131 {dimension_numbers = #tpu.dot_dimension_numbers<[1], [0], [0], [1], [0, 0, 1, 1], [], []>} : vector<2x64xf32>, vector<64x256xf32>, vector<2x256xf32> -> vector<2x256xf32>
    %559 = arith.addf %426, %558 : vector<2x256xf32>
    %560 = arith.negf %559 : vector<2x256xf32>
    %561 = math.exp %560 : vector<2x256xf32>
    %cst_132 = arith.constant 1.000000e+00 : f32
    %562 = vector.broadcast %cst_132 : f32 to vector<2x256xf32>
    %563 = arith.addf %562, %561 : vector<2x256xf32>
    %564 = arith.divf %562, %563 : vector<2x256xf32>
    %565 = math.tanh %559 : vector<2x256xf32>
    %566 = vector.extract_strided_slice %564 {offsets = [0, 0], sizes = [2, 64], strides = [1, 1]} : vector<2x256xf32> to vector<2x64xf32>
    %567 = vector.extract_strided_slice %564 {offsets = [0, 64], sizes = [2, 64], strides = [1, 1]} : vector<2x256xf32> to vector<2x64xf32>
    %568 = vector.extract_strided_slice %565 {offsets = [0, 128], sizes = [2, 64], strides = [1, 1]} : vector<2x256xf32> to vector<2x64xf32>
    %569 = vector.extract_strided_slice %564 {offsets = [0, 192], sizes = [2, 64], strides = [1, 1]} : vector<2x256xf32> to vector<2x64xf32>
    %570 = arith.mulf %567, %555 : vector<2x64xf32>
    %571 = arith.mulf %566, %568 : vector<2x64xf32>
    %572 = arith.addf %570, %571 : vector<2x64xf32>
    %573 = math.tanh %572 : vector<2x64xf32>
    %574 = arith.mulf %569, %573 : vector<2x64xf32>
    %cst_133 = arith.constant dense<0.000000e+00> : vector<2x256xf32>
    %575 = tpu.matmul %574, %528, %cst_133 {dimension_numbers = #tpu.dot_dimension_numbers<[1], [0], [0], [1], [0, 0, 1, 1], [], []>} : vector<2x64xf32>, vector<64x256xf32>, vector<2x256xf32> -> vector<2x256xf32>
    %576 = arith.addf %446, %575 : vector<2x256xf32>
    %577 = arith.negf %576 : vector<2x256xf32>
    %578 = math.exp %577 : vector<2x256xf32>
    %cst_134 = arith.constant 1.000000e+00 : f32
    %579 = vector.broadcast %cst_134 : f32 to vector<2x256xf32>
    %580 = arith.addf %579, %578 : vector<2x256xf32>
    %581 = arith.divf %579, %580 : vector<2x256xf32>
    %582 = math.tanh %576 : vector<2x256xf32>
    %583 = vector.extract_strided_slice %581 {offsets = [0, 0], sizes = [2, 64], strides = [1, 1]} : vector<2x256xf32> to vector<2x64xf32>
    %584 = vector.extract_strided_slice %581 {offsets = [0, 64], sizes = [2, 64], strides = [1, 1]} : vector<2x256xf32> to vector<2x64xf32>
    %585 = vector.extract_strided_slice %582 {offsets = [0, 128], sizes = [2, 64], strides = [1, 1]} : vector<2x256xf32> to vector<2x64xf32>
    %586 = vector.extract_strided_slice %581 {offsets = [0, 192], sizes = [2, 64], strides = [1, 1]} : vector<2x256xf32> to vector<2x64xf32>
    %587 = arith.mulf %584, %572 : vector<2x64xf32>
    %588 = arith.mulf %583, %585 : vector<2x64xf32>
    %589 = arith.addf %587, %588 : vector<2x64xf32>
    %590 = math.tanh %589 : vector<2x64xf32>
    %591 = arith.mulf %586, %590 : vector<2x64xf32>
    %cst_135 = arith.constant dense<0.000000e+00> : vector<2x256xf32>
    %592 = tpu.matmul %591, %528, %cst_135 {dimension_numbers = #tpu.dot_dimension_numbers<[1], [0], [0], [1], [0, 0, 1, 1], [], []>} : vector<2x64xf32>, vector<64x256xf32>, vector<2x256xf32> -> vector<2x256xf32>
    %593 = arith.addf %466, %592 : vector<2x256xf32>
    %594 = arith.negf %593 : vector<2x256xf32>
    %595 = math.exp %594 : vector<2x256xf32>
    %cst_136 = arith.constant 1.000000e+00 : f32
    %596 = vector.broadcast %cst_136 : f32 to vector<2x256xf32>
    %597 = arith.addf %596, %595 : vector<2x256xf32>
    %598 = arith.divf %596, %597 : vector<2x256xf32>
    %599 = math.tanh %593 : vector<2x256xf32>
    %600 = vector.extract_strided_slice %598 {offsets = [0, 0], sizes = [2, 64], strides = [1, 1]} : vector<2x256xf32> to vector<2x64xf32>
    %601 = vector.extract_strided_slice %598 {offsets = [0, 64], sizes = [2, 64], strides = [1, 1]} : vector<2x256xf32> to vector<2x64xf32>
    %602 = vector.extract_strided_slice %599 {offsets = [0, 128], sizes = [2, 64], strides = [1, 1]} : vector<2x256xf32> to vector<2x64xf32>
    %603 = vector.extract_strided_slice %598 {offsets = [0, 192], sizes = [2, 64], strides = [1, 1]} : vector<2x256xf32> to vector<2x64xf32>
    %604 = arith.mulf %601, %589 : vector<2x64xf32>
    %605 = arith.mulf %600, %602 : vector<2x64xf32>
    %606 = arith.addf %604, %605 : vector<2x64xf32>
    %607 = math.tanh %606 : vector<2x64xf32>
    %608 = arith.mulf %603, %607 : vector<2x64xf32>
    %cst_137 = arith.constant dense<0.000000e+00> : vector<2x256xf32>
    %609 = tpu.matmul %608, %528, %cst_137 {dimension_numbers = #tpu.dot_dimension_numbers<[1], [0], [0], [1], [0, 0, 1, 1], [], []>} : vector<2x64xf32>, vector<64x256xf32>, vector<2x256xf32> -> vector<2x256xf32>
    %610 = arith.addf %486, %609 : vector<2x256xf32>
    %611 = arith.negf %610 : vector<2x256xf32>
    %612 = math.exp %611 : vector<2x256xf32>
    %cst_138 = arith.constant 1.000000e+00 : f32
    %613 = vector.broadcast %cst_138 : f32 to vector<2x256xf32>
    %614 = arith.addf %613, %612 : vector<2x256xf32>
    %615 = arith.divf %613, %614 : vector<2x256xf32>
    %616 = math.tanh %610 : vector<2x256xf32>
    %617 = vector.extract_strided_slice %615 {offsets = [0, 0], sizes = [2, 64], strides = [1, 1]} : vector<2x256xf32> to vector<2x64xf32>
    %618 = vector.extract_strided_slice %615 {offsets = [0, 64], sizes = [2, 64], strides = [1, 1]} : vector<2x256xf32> to vector<2x64xf32>
    %619 = vector.extract_strided_slice %616 {offsets = [0, 128], sizes = [2, 64], strides = [1, 1]} : vector<2x256xf32> to vector<2x64xf32>
    %620 = vector.extract_strided_slice %615 {offsets = [0, 192], sizes = [2, 64], strides = [1, 1]} : vector<2x256xf32> to vector<2x64xf32>
    %621 = arith.mulf %618, %606 : vector<2x64xf32>
    %622 = arith.mulf %617, %619 : vector<2x64xf32>
    %623 = arith.addf %621, %622 : vector<2x64xf32>
    %624 = math.tanh %623 : vector<2x64xf32>
    %625 = arith.mulf %620, %624 : vector<2x64xf32>
    %cst_139 = arith.constant dense<0.000000e+00> : vector<2x256xf32>
    %626 = tpu.matmul %625, %528, %cst_139 {dimension_numbers = #tpu.dot_dimension_numbers<[1], [0], [0], [1], [0, 0, 1, 1], [], []>} : vector<2x64xf32>, vector<64x256xf32>, vector<2x256xf32> -> vector<2x256xf32>
    %627 = arith.addf %506, %626 : vector<2x256xf32>
    %628 = arith.negf %627 : vector<2x256xf32>
    %629 = math.exp %628 : vector<2x256xf32>
    %cst_140 = arith.constant 1.000000e+00 : f32
    %630 = vector.broadcast %cst_140 : f32 to vector<2x256xf32>
    %631 = arith.addf %630, %629 : vector<2x256xf32>
    %632 = arith.divf %630, %631 : vector<2x256xf32>
    %633 = math.tanh %627 : vector<2x256xf32>
    %634 = vector.extract_strided_slice %632 {offsets = [0, 0], sizes = [2, 64], strides = [1, 1]} : vector<2x256xf32> to vector<2x64xf32>
    %635 = vector.extract_strided_slice %632 {offsets = [0, 64], sizes = [2, 64], strides = [1, 1]} : vector<2x256xf32> to vector<2x64xf32>
    %636 = vector.extract_strided_slice %633 {offsets = [0, 128], sizes = [2, 64], strides = [1, 1]} : vector<2x256xf32> to vector<2x64xf32>
    %637 = vector.extract_strided_slice %632 {offsets = [0, 192], sizes = [2, 64], strides = [1, 1]} : vector<2x256xf32> to vector<2x64xf32>
    %638 = arith.mulf %635, %623 : vector<2x64xf32>
    %639 = arith.mulf %634, %636 : vector<2x64xf32>
    %640 = arith.addf %638, %639 : vector<2x64xf32>
    %641 = math.tanh %640 : vector<2x64xf32>
    %642 = arith.mulf %637, %641 : vector<2x64xf32>
    %cst_141 = arith.constant dense<0.000000e+00> : vector<2x256xf32>
    %643 = tpu.matmul %642, %528, %cst_141 {dimension_numbers = #tpu.dot_dimension_numbers<[1], [0], [0], [1], [0, 0, 1, 1], [], []>} : vector<2x64xf32>, vector<64x256xf32>, vector<2x256xf32> -> vector<2x256xf32>
    %644 = arith.addf %526, %643 : vector<2x256xf32>
    %645 = arith.negf %644 : vector<2x256xf32>
    %646 = math.exp %645 : vector<2x256xf32>
    %cst_142 = arith.constant 1.000000e+00 : f32
    %647 = vector.broadcast %cst_142 : f32 to vector<2x256xf32>
    %648 = arith.addf %647, %646 : vector<2x256xf32>
    %649 = arith.divf %647, %648 : vector<2x256xf32>
    %650 = math.tanh %644 : vector<2x256xf32>
    %651 = vector.extract_strided_slice %649 {offsets = [0, 0], sizes = [2, 64], strides = [1, 1]} : vector<2x256xf32> to vector<2x64xf32>
    %652 = vector.extract_strided_slice %649 {offsets = [0, 64], sizes = [2, 64], strides = [1, 1]} : vector<2x256xf32> to vector<2x64xf32>
    %653 = vector.extract_strided_slice %650 {offsets = [0, 128], sizes = [2, 64], strides = [1, 1]} : vector<2x256xf32> to vector<2x64xf32>
    %654 = vector.extract_strided_slice %649 {offsets = [0, 192], sizes = [2, 64], strides = [1, 1]} : vector<2x256xf32> to vector<2x64xf32>
    %655 = arith.mulf %652, %640 : vector<2x64xf32>
    %656 = arith.mulf %651, %653 : vector<2x64xf32>
    %657 = arith.addf %655, %656 : vector<2x64xf32>
    %658 = math.tanh %657 : vector<2x64xf32>
    %659 = arith.mulf %654, %658 : vector<2x64xf32>
    %c0_143 = arith.constant 0 : index
    %c0_144 = arith.constant 0 : index
    %660 = vector.load %arg10[%c0_143, %c0_144] : memref<4x64xf32, #tpu.memory_space<vmem>>, vector<1x64xf32>
    %c1_145 = arith.constant 1 : index
    %c0_146 = arith.constant 0 : index
    %661 = vector.load %arg10[%c1_145, %c0_146] : memref<4x64xf32, #tpu.memory_space<vmem>>, vector<1x64xf32>
    %c2_147 = arith.constant 2 : index
    %c0_148 = arith.constant 0 : index
    %662 = vector.load %arg10[%c2_147, %c0_148] : memref<4x64xf32, #tpu.memory_space<vmem>>, vector<1x64xf32>
    %c3_149 = arith.constant 3 : index
    %c0_150 = arith.constant 0 : index
    %663 = vector.load %arg10[%c3_149, %c0_150] : memref<4x64xf32, #tpu.memory_space<vmem>>, vector<1x64xf32>
    %c0_151 = arith.constant 0 : index
    %c0_152 = arith.constant 0 : index
    %664 = vector.load %arg2[%c0_151, %c0_152] : memref<2x8xf32, #tpu.memory_space<vmem>>, vector<2x8xf32>
    %c0_153 = arith.constant 0 : index
    %c0_154 = arith.constant 0 : index
    %665 = vector.load %arg6[%c0_153, %c0_154] : memref<8x64xf32, #tpu.memory_space<vmem>>, vector<8x64xf32>
    %cst_155 = arith.constant dense<0.000000e+00> : vector<2x64xf32>
    %666 = tpu.matmul %664, %665, %cst_155 {dimension_numbers = #tpu.dot_dimension_numbers<[1], [0], [0], [1], [0, 0, 1, 1], [], []>} : vector<2x8xf32>, vector<8x64xf32>, vector<2x64xf32> -> vector<2x64xf32>
    %667 = vector.broadcast %660 : vector<1x64xf32> to vector<2x64xf32>
    %668 = arith.addf %666, %667 : vector<2x64xf32>
    %cst_156 = arith.constant 0.000000e+00 : f32
    %669 = vector.broadcast %cst_156 : f32 to vector<2x64xf32>
    %670 = arith.maximumf %668, %669 : vector<2x64xf32>
    %671 = tpu.concatenate %659, %670 in 1 : vector<2x64xf32>, vector<2x64xf32> -> vector<2x128xf32>
    %c0_157 = arith.constant 0 : index
    %c0_158 = arith.constant 0 : index
    %672 = vector.load %arg7[%c0_157, %c0_158] : memref<128x64xf32, #tpu.memory_space<vmem>>, vector<128x64xf32>
    %cst_159 = arith.constant dense<0.000000e+00> : vector<2x64xf32>
    %673 = tpu.matmul %671, %672, %cst_159 {dimension_numbers = #tpu.dot_dimension_numbers<[1], [0], [0], [1], [0, 0, 1, 1], [], []>} : vector<2x128xf32>, vector<128x64xf32>, vector<2x64xf32> -> vector<2x64xf32>
    %674 = vector.broadcast %661 : vector<1x64xf32> to vector<2x64xf32>
    %675 = arith.addf %673, %674 : vector<2x64xf32>
    %cst_160 = arith.constant 0.000000e+00 : f32
    %676 = vector.broadcast %cst_160 : f32 to vector<2x64xf32>
    %677 = arith.maximumf %675, %676 : vector<2x64xf32>
    %c0_161 = arith.constant 0 : index
    %c0_162 = arith.constant 0 : index
    %678 = vector.load %arg8[%c0_161, %c0_162] : memref<64x64xf32, #tpu.memory_space<vmem>>, vector<64x64xf32>
    %cst_163 = arith.constant dense<0.000000e+00> : vector<2x64xf32>
    %679 = tpu.matmul %677, %678, %cst_163 {dimension_numbers = #tpu.dot_dimension_numbers<[1], [0], [0], [1], [0, 0, 1, 1], [], []>} : vector<2x64xf32>, vector<64x64xf32>, vector<2x64xf32> -> vector<2x64xf32>
    %680 = vector.broadcast %662 : vector<1x64xf32> to vector<2x64xf32>
    %681 = arith.addf %679, %680 : vector<2x64xf32>
    %cst_164 = arith.constant 0.000000e+00 : f32
    %682 = vector.broadcast %cst_164 : f32 to vector<2x64xf32>
    %683 = arith.maximumf %681, %682 : vector<2x64xf32>
    %c0_165 = arith.constant 0 : index
    %c0_166 = arith.constant 0 : index
    %684 = vector.load %arg9[%c0_165, %c0_166] : memref<64x64xf32, #tpu.memory_space<vmem>>, vector<64x64xf32>
    %cst_167 = arith.constant dense<0.000000e+00> : vector<2x64xf32>
    %685 = tpu.matmul %683, %684, %cst_167 {dimension_numbers = #tpu.dot_dimension_numbers<[1], [0], [0], [1], [0, 0, 1, 1], [], []>} : vector<2x64xf32>, vector<64x64xf32>, vector<2x64xf32> -> vector<2x64xf32>
    %686 = vector.broadcast %663 : vector<1x64xf32> to vector<2x64xf32>
    %687 = arith.addf %685, %686 : vector<2x64xf32>
    %688 = vector.extract_strided_slice %687 {offsets = [0, 0], sizes = [2, 2], strides = [1, 1]} : vector<2x64xf32> to vector<2x2xf32>
    %c0_168 = arith.constant 0 : index
    %c0_169 = arith.constant 0 : index
    %689 = vector.load %arg11[%c0_168, %c0_169] : memref<2x2xf32, #tpu.memory_space<vmem>>, vector<2x2xf32>
    tpu.vector_store %arg11[%c0_168, %c0_169], %688 {strides = array<i32>} : memref<2x2xf32, #tpu.memory_space<vmem>>, vector<2x2xf32>,
    return
  }
  func.func @transform_0(%arg0: i32) -> (i32, i32, i32) {
    %c0_i32 = arith.constant 0 : i32
    %c0_i32_0 = arith.constant 0 : i32
    %c0_i32_1 = arith.constant 0 : i32
    %c0_i32_2 = arith.constant 0 : i32
    return %c0_i32, %c0_i32_0, %c0_i32_1 : i32, i32, i32
  }
  func.func @transform_1(%arg0: i32) -> (i32, i32) {
    %c0_i32 = arith.constant 0 : i32
    %c0_i32_0 = arith.constant 0 : i32
    %c0_i32_1 = arith.constant 0 : i32
    return %c0_i32, %c0_i32_0 : i32, i32
  }
  func.func @transform_2(%arg0: i32) -> (i32, i32, i32) {
    %c0_i32 = arith.constant 0 : i32
    %c0_i32_0 = arith.constant 0 : i32
    %c0_i32_1 = arith.constant 0 : i32
    %c0_i32_2 = arith.constant 0 : i32
    return %c0_i32, %c0_i32_0, %c0_i32_1 : i32, i32, i32
  }
  func.func @transform_3(%arg0: i32) -> (i32, i32, i32) {
    %c0_i32 = arith.constant 0 : i32
    %c0_i32_0 = arith.constant 0 : i32
    %c0_i32_1 = arith.constant 0 : i32
    %c0_i32_2 = arith.constant 0 : i32
    return %c0_i32, %c0_i32_0, %c0_i32_1 : i32, i32, i32
  }
  func.func @transform_4(%arg0: i32) -> (i32, i32, i32) {
    %c0_i32 = arith.constant 0 : i32
    %c0_i32_0 = arith.constant 0 : i32
    %c0_i32_1 = arith.constant 0 : i32
    %c0_i32_2 = arith.constant 0 : i32
    return %c0_i32, %c0_i32_0, %c0_i32_1 : i32, i32, i32
  }
  func.func @transform_5(%arg0: i32) -> (i32, i32) {
    %c0_i32 = arith.constant 0 : i32
    %c0_i32_0 = arith.constant 0 : i32
    %c0_i32_1 = arith.constant 0 : i32
    return %c0_i32, %c0_i32_0 : i32, i32
  }
  func.func @transform_6(%arg0: i32) -> (i32, i32) {
    %c0_i32 = arith.constant 0 : i32
    %c0_i32_0 = arith.constant 0 : i32
    %c0_i32_1 = arith.constant 0 : i32
    return %c0_i32, %c0_i32_0 : i32, i32
  }
  func.func @transform_7(%arg0: i32) -> (i32, i32) {
    %c0_i32 = arith.constant 0 : i32
    %c0_i32_0 = arith.constant 0 : i32
    %c0_i32_1 = arith.constant 0 : i32
    return %c0_i32, %c0_i32_0 : i32, i32
  }
  func.func @transform_8(%arg0: i32) -> (i32, i32) {
    %c0_i32 = arith.constant 0 : i32
    %c0_i32_0 = arith.constant 0 : i32
    %c0_i32_1 = arith.constant 0 : i32
    return %c0_i32, %c0_i32_0 : i32, i32
  }
  func.func @transform_9(%arg0: i32) -> (i32, i32) {
    %c0_i32 = arith.constant 0 : i32
    %c0_i32_0 = arith.constant 0 : i32
    %c0_i32_1 = arith.constant 0 : i32
    return %c0_i32, %c0_i32_0 : i32, i32
  }
  func.func @transform_10(%arg0: i32) -> (i32, i32) {
    %c0_i32 = arith.constant 0 : i32
    %c0_i32_0 = arith.constant 0 : i32
    %c0_i32_1 = arith.constant 0 : i32
    return %c0_i32, %c0_i32_0 : i32, i32
  }
}

</mosaic_0001>

<bundles_post_ra>
// kernel: mamba_critic_forward.1
= control target key start
LH: loop header
LB: loop body
LE: loop exit
PB: predicated region body
PF: predicated region fallthrough
CT: control target
= control target key end

     0   :  { %15 = vsyncpa [#allocation3], 0  ;;  %s8860_s0 = inlined_call_operand.vmem [shape: f32[8,2,64], index: 0, kind: input, shape index: {}]   ;;  %s8861_s1 = inlined_call_operand.vmem [shape: f32[2,8], index: 1, kind: input, shape index: {}]   ;;  %s8862_s2 = inlined_call_operand.hbm [shape: f32[4,64,256], index: 2, kind: input, shape index: {}]   ;;  %s8863_s3 = inlined_call_operand.hbm [shape: f32[4,64,256], index: 3, kind: input, shape index: {}]   ;;  %s8864_s4 = inlined_call_operand.vmem [shape: f32[4,1,256], index: 4, kind: input, shape index: {}]   ;;  %s8865_s5 = inlined_call_operand.vmem [shape: f32[8,64], index: 5, kind: input, shape index: {}]   ;;  %s8866_s6 = inlined_call_operand.vmem [shape: f32[128,64], index: 6, kind: input, shape index: {}]   ;;  %s8867_s7 = inlined_call_operand.vmem [shape: f32[64,64], index: 7, kind: input, shape index: {}]   ;;  %s8868_s8 = inlined_call_operand.vmem [shape: f32[64,64], index: 8, kind: input, shape index: {}]   ;;  %s8869_s9 = inlined_call_operand.vmem [shape: f32[4,64], index: 9, kind: input, shape index: {}]   ;;  %s8870_s10 = inlined_call_operand.vmem [shape: f32[2,2], index: 10, kind: output, shape index: {}]  }
   0x1   :  { %16 = vsyncpa [#allocation5], 0  ;;  %s7656_s13 = smov [#allocation2]   ;;  %s7608_s17 = scalar_lea.hbm %s8862_s2, 8192 }
   0x2   :  { %s26_s14 = sshll.u32 %s7656_s13, 4  ;;  %p7609_p0 = scmp.ne.s32.totalorder %s8862_s2, %s7608_s17  ;;  %s27_s14 = int_to_ptr.vmem [resolvable:$true] %s26_s14 }
   0x3   :  { %p7612_p1 = scmp.lt.u32.totalorder %s7608_s17, %s8862_s2 }
   0x5   :  { %p7614_p2 = pnand %p7612_p1, %p7609_p0 }
   0x7   :  { %7617 = shalt.err (!%p7614_p2)
}
   0x8   :  { %s7618_s22 = scalar_lea.vmem %s27_s14, 8192  ;;  %p7623_p4 = scmp.lt.s32.totalorder %s27_s14, %s27_s14 }
   0x9   :  { %p7619_p3 = scmp.ne.s32.totalorder %s27_s14, %s7618_s22  ;;  %p7624_p5 = scmp.lt.s32.totalorder %s7618_s22, %s7618_s22 }
   0xb   :  { %p7625_p6 = por %p7624_p5, %p7623_p4 }
   0xd   :  { %p7626_p7 = pnand %p7625_p6, %p7619_p3 }
   0xf   :  { %7629 = shalt.err (!%p7626_p7)
}
  0x10   :  { %s7657_s23 = smov 256   ;;  %s7658_s24 = smov 16  }
  0x11   :  { %32 = dma.hbm_to_vmem [thread:$0]  %s8862_s2, 8192, %s27_s14, [#allocation3], %s7657_s23, %s7657_s23, %s7658_s24  }
  0x12   :  { %s7659_s27 = smov [#allocation4]   ;;  %s7630_s11 = scalar_lea.hbm %s8863_s3, 8192 }
  0x13   :  { %s38_s28 = sshll.u32 %s7659_s27, 4  ;;  %p7631_p8 = scmp.ne.s32.totalorder %s8863_s3, %s7630_s11  ;;  %s39_s28 = int_to_ptr.vmem [resolvable:$true] %s38_s28 }
  0x14   :  { %p7634_p9 = scmp.lt.u32.totalorder %s7630_s11, %s8863_s3 }
  0x16   :  { %p7636_p10 = pnand %p7634_p9, %p7631_p8 }
  0x18   :  { %7639 = shalt.err (!%p7636_p10)
}
  0x19   :  { %s7640_s17 = scalar_lea.vmem %s39_s28, 8192  ;;  %p7645_p12 = scmp.lt.s32.totalorder %s39_s28, %s39_s28 }
  0x1a   :  { %p7641_p11 = scmp.ne.s32.totalorder %s39_s28, %s7640_s17  ;;  %p7646_p13 = scmp.lt.s32.totalorder %s7640_s17, %s7640_s17 }
  0x1c   :  { %p7647_p0 = por %p7646_p13, %p7645_p12 }
  0x1e   :  { %p7648_p1 = pnand %p7647_p0, %p7641_p11 }
  0x20   :  { %7651 = shalt.err (!%p7648_p1)
}
  0x21   :  { %44 = dma.hbm_to_vmem [thread:$0]  %s8863_s3, 8192, %s39_s28, [#allocation5], %s7657_s23, %s7657_s23, %s7658_s24  }
  0x22   :  { %7652 = dma.done.wait [#allocation3], 8192  }
  0x23   :  { %7653 = vsyncadd [#allocation3], 4294959104 }
  0x24   :  { %7654 = dma.done.wait [#allocation5], 8192  }
  0x25   :  { %7655 = vsyncadd [#allocation5], 4294959104  ;;  %v7660_v0 = vmov 0.0   ;;  %v64_v1 = vld [vmem:[#allocation2 + $0x8] sm:$0xff]  ;;  %v66_v2 = vld [vmem:[#allocation2 + $0x18] sm:$0xff]  ;;  %vm92_vm0 = vcmask 523264   ;;  %v82_v26 = vlaneseq }
  0x26   :  { %160 = vmatprep.mubr.f32.mxu0 %v7660_v0  ;;  %236 = vmatprep.mubr.f32.mxu1 %v7660_v0  ;;  %v63_v3 = vld [vmem:[#allocation2] sm:$0xff]  ;;  %v7745_v4 = vpack.c.bf16 %v66_v2, %v64_v1  ;;  %v65_v5 = vld [vmem:[#allocation2 + $0x10] sm:$0xff]  ;;  %v68_v6 = vld [vmem:[#allocation2 + $0x28] sm:$0xff]  ;;  %s7661_s21 = smov 64   ;;  %vm5481_vm1 = vcmask 64512   ;;  %vm7662_vm2 = vmmov 0  }
  0x27   :  { %v70_v7 = vld [vmem:[#allocation2 + $0x38] sm:$0xff]  ;;  %v7747_v8 = vpack.c.bf16 %v65_v5, %v63_v3  ;;  %v67_v10 = vld [vmem:[#allocation2 + $0x20] sm:$0xff]  ;;  %v69_v11 = vld [vmem:[#allocation2 + $0x30] sm:$0xff]  ;;  %v83_v27 = vshrl.u32 %v82_v26, 7  ;;  %vm5827_vm3 = vcmask 9216  }
  0x28   :  { %v7749_v9 = vpack.c.bf16 %v70_v7, %v68_v6  ;;  %v72_v12 = vld [vmem:[#allocation2 + $0x48] sm:$0xff]  ;;  %6092 = vmatprep.subr.bf16.mxu0 %v7745_v4  ;;  %v74_v13 = vld [vmem:[#allocation2 + $0x58] sm:$0xff]  ;;  %6108 = vmatprep.subr.bf16.mxu1 %v7745_v4  ;;  %v7754_v14 = vpack.c.bf16 %v69_v11, %v67_v10  ;;  %v71_v16 = vld [vmem:[#allocation2 + $0x40] sm:$0xff] }
  0x29   :  { %6094 = vmatpush1.bf16.msra.mxu0 %v7747_v8  ;;  %6110 = vmatpush1.bf16.msra.mxu1 %v7747_v8  ;;  %v7758_v15 = vpack.c.bf16 %v74_v13, %v72_v12  ;;  %v73_v17 = vld [vmem:[#allocation2 + $0x50] sm:$0xff]  ;;  %v76_v18 = vld [vmem:[#allocation2 + $0x68] sm:$0xff]  ;;  %v78_v19 = vld [vmem:[#allocation2 + $0x78] sm:$0xff]  ;;  %v7792_v28 = vsub.s32 0, %v83_v27  ;;  %v7801_v35 = vsub.s32 1, %v83_v27 }
  0x2a   :  { %6096 = vmatprep.subr.bf16.mxu0 %v7749_v9  ;;  %6112 = vmatprep.subr.bf16.mxu1 %v7749_v9  ;;  %v7762_v20 = vpack.c.bf16 %v73_v17, %v71_v16  ;;  %v7766_v21 = vpack.c.bf16 %v78_v19, %v76_v18  ;;  %v75_v22 = vld [vmem:[#allocation2 + $0x60] sm:$0xff]  ;;  %v77_v23 = vld [vmem:[#allocation2 + $0x70] sm:$0xff]  ;;  %v5842_v47 = vld [vmem:[%s8860_s0 + $0x8] sm:$0x3] }
  0x2b   :  { %v7770_v24 = vpack.c.bf16 %v77_v23, %v75_v22  ;;  %v80_v25 = vld [vmem:[%s8860_s0] sm:$0x3]  ;;  %v5836_v43 = vld [vmem:[%s8860_s0 + $0x2] sm:$0x3]  ;;  %v5838_v44 = vld [vmem:[%s8860_s0 + $0x4] sm:$0x3] }
  0x2c   :  { %v79_v29 = vld [vmem:[%s8864_s4] sm:$0x3]  ;;  %v5840_v46 = vld [vmem:[%s8860_s0 + $0x6] sm:$0x3]  ;;  %v717_v48 = vld [vmem:[#allocation2 + $0x88] sm:$0xff] }
  0x2d   :  { %6098 = vmatpush1.bf16.msra.mxu0 %v7754_v14  ;;  %6114 = vmatpush1.bf16.msra.mxu1 %v7754_v14  ;;  %v7798_v30 = vrot.slane %v79_v29, %v7792_v28  ;;  %v7804_v36 = vrot.slane %v79_v29, %v7801_v35  ;;  %v719_v49 = vld [vmem:[#allocation2 + $0x98] sm:$0xff]  ;;  %v716_v51 = vld [vmem:[#allocation2 + $0x80] sm:$0xff]  ;;  %v718_v52 = vld [vmem:[#allocation2 + $0x90] sm:$0xff] }
  0x2e   :  { %6100 = vmatprep.subr.bf16.mxu0 %v7758_v15  ;;  %6116 = vmatprep.subr.bf16.mxu1 %v7758_v15  ;;  %v7860_v50 = vpack.c.bf16 %v719_v49, %v717_v48  ;;  %v5844_v53 = vld [vmem:[%s8860_s0 + $0xa] sm:$0x3]  ;;  %v723_v55 = vld [vmem:[#allocation2 + $0xb8] sm:$0xff]  ;;  %v5846_v56 = vld [vmem:[%s8860_s0 + $0xc] sm:$0x3]  ;;  %v7871_v57 = vpack.c.bf16 %v718_v52, %v716_v51 }
  0x2f   :  { %v721_v54 = vld [vmem:[#allocation2 + $0xa8] sm:$0xff]  ;;  %v720_v59 = vld [vmem:[#allocation2 + $0xa0] sm:$0xff]  ;;  %v722_v60 = vld [vmem:[#allocation2 + $0xb0] sm:$0xff] }
  0x30   :  { %v7875_v58 = vpack.c.bf16 %v723_v55, %v721_v54  ;;  %v725_v61 = vld [vmem:[#allocation2 + $0xc8] sm:$0xff]  ;;  %v727_v62 = vld [vmem:[#allocation2 + $0xd8] sm:$0xff]  ;;  %v7882_v63 = vpack.c.bf16 %v722_v60, %v720_v59  ;;  %v724_v2 = vld [vmem:[#allocation2 + $0xc0] sm:$0xff] }
  0x31   :  { %6102 = vmatpush1.bf16.msra.mxu0 %v7762_v20  ;;  %6118 = vmatpush1.bf16.msra.mxu1 %v7762_v20  ;;  %v7886_v1 = vpack.c.bf16 %v727_v62, %v725_v61  ;;  %v726_v3 = vld [vmem:[#allocation2 + $0xd0] sm:$0xff]  ;;  %v731_v5 = vld [vmem:[#allocation2 + $0xf8] sm:$0xff]  ;;  %v700_v6 = vld [vmem:[#allocation4 + $0x8] sm:$0xff] }
  0x32   :  { %6104 = vmatprep.subr.bf16.mxu0 %v7766_v21  ;;  %6120 = vmatprep.subr.bf16.mxu1 %v7766_v21  ;;  %v702_v7 = vld [vmem:[#allocation4 + $0x18] sm:$0xff]  ;;  %v728_v10 = vld [vmem:[#allocation2 + $0xe0] sm:$0xff]  ;;  %v730_v11 = vld [vmem:[#allocation2 + $0xf0] sm:$0xff] }
  0x33   :  { %v7898_v12 = vpack.c.bf16 %v702_v7, %v700_v6  ;;  %v699_v13 = vld [vmem:[#allocation4] sm:$0xff]  ;;  %v706_v16 = vld [vmem:[#allocation4 + $0x38] sm:$0xff]  ;;  %v7901_v17 = vpack.c.bf16 %v730_v11, %v728_v10  ;;  %v5848_v18 = vld [vmem:[%s8860_s0 + $0xe] sm:$0x3] }
  0x34   :  { %v705_v22 = vld [vmem:[#allocation4 + $0x30] sm:$0xff]  ;;  %v708_v23 = vld [vmem:[#allocation4 + $0x48] sm:$0xff]  ;;  %v707_v27 = vld [vmem:[#allocation4 + $0x40] sm:$0xff] }
  0x35   :  { %6106 = vmatpush1.bf16.msra.mxu0 %v7770_v24  ;;  %6122 = vmatpush1.bf16.msra.mxu1 %v7770_v24  ;;  %v709_v29 = vld [vmem:[#allocation4 + $0x50] sm:$0xff] }
  0x36   :  { %6124 = vmatprep.subr.bf16.mxu0 %v7745_v4  ;;  %6140 = vmatprep.subr.bf16.mxu1 %v7745_v4 }
  0x38   :  { %5835 = vmatmul.mubr.msk.f32.vlgmr.msra.gmra.mrb[0].mxu0 %vm92_vm0, %v80_v25  ;;  %5837 = vmatmul.mubr.msk.f32.vlgmr.msra.gmra.mrb[0].mxu1 %vm92_vm0, %v5836_v43  ;;  %v710_v25 = vld [vmem:[#allocation4 + $0x58] sm:$0xff] }
  0x39   :  { %6126 = vmatpush1.bf16.msra.mxu0 %v7747_v8  ;;  %312 = vmatprep.mubr.f32.mxu0 %v7660_v0  ;;  %v7921_v26 = vpack.c.bf16 %v710_v25, %v708_v23 }
  0x3a   :  { %6128 = vmatprep.subr.bf16.mxu0 %v7749_v9  ;;  %6142 = vmatpush1.bf16.msra.mxu1 %v7747_v8 }
  0x3b   :  { %388 = vmatprep.mubr.f32.mxu1 %v7660_v0  ;;  %6144 = vmatprep.subr.bf16.mxu1 %v7749_v9 }
  0x3d   :  { %6130 = vmatpush1.bf16.msra.mxu0 %v7754_v14 }
  0x3e   :  { %6132 = vmatprep.subr.bf16.mxu0 %v7758_v15  ;;  %6146 = vmatpush1.bf16.msra.mxu1 %v7754_v14 }
  0x3f   :  { %6148 = vmatprep.subr.bf16.mxu1 %v7758_v15 }
  0x41   :  { %6134 = vmatpush1.bf16.msra.mxu0 %v7762_v20 }
  0x42   :  { %6136 = vmatprep.subr.bf16.mxu0 %v7766_v21  ;;  %6150 = vmatpush1.bf16.msra.mxu1 %v7762_v20 }
  0x43   :  { %6152 = vmatprep.subr.bf16.mxu1 %v7766_v21 }
  0x45   :  { %6138 = vmatpush1.bf16.msra.mxu0 %v7770_v24 }
  0x46   :  { %6156 = vmatprep.subr.bf16.mxu0 %v7745_v4  ;;  %6154 = vmatpush1.bf16.msra.mxu1 %v7770_v24 }
  0x47   :  { %6172 = vmatprep.subr.bf16.mxu1 %v7745_v4 }
  0x48   :  { %5839 = vmatmul.mubr.msk.f32.vlgmr.msra.gmra.mrb[2].mxu0 %vm92_vm0, %v5838_v44 }
  0x49   :  { %6158 = vmatpush1.bf16.msra.mxu0 %v7747_v8  ;;  %464 = vmatprep.mubr.f32.mxu0 %v7660_v0 }
  0x4a   :  { %6160 = vmatprep.subr.bf16.mxu0 %v7749_v9  ;;  %5841 = vmatmul.mubr.msk.f32.vlgmr.msra.gmra.mrb[2].mxu1 %vm92_vm0, %v5840_v46 }
  0x4b   :  { %6174 = vmatpush1.bf16.msra.mxu1 %v7747_v8  ;;  %540 = vmatprep.mubr.f32.mxu1 %v7660_v0 }
  0x4c   :  { %6176 = vmatprep.subr.bf16.mxu1 %v7749_v9 }
  0x4d   :  { %6162 = vmatpush1.bf16.msra.mxu0 %v7754_v14 }
  0x4e   :  { %6164 = vmatprep.subr.bf16.mxu0 %v7758_v15 }
  0x4f   :  { %6178 = vmatpush1.bf16.msra.mxu1 %v7754_v14 }
  0x50   :  { %6180 = vmatprep.subr.bf16.mxu1 %v7758_v15 }
  0x51   :  { %6166 = vmatpush1.bf16.msra.mxu0 %v7762_v20 }
  0x52   :  { %6168 = vmatprep.subr.bf16.mxu0 %v7766_v21 }
  0x53   :  { %6182 = vmatpush1.bf16.msra.mxu1 %v7762_v20 }
  0x54   :  { %6184 = vmatprep.subr.bf16.mxu1 %v7766_v21 }
  0x55   :  { %6170 = vmatpush1.bf16.msra.mxu0 %v7770_v24 }
  0x56   :  { %6188 = vmatprep.subr.bf16.mxu0 %v7745_v4 }
  0x57   :  { %6186 = vmatpush1.bf16.msra.mxu1 %v7770_v24 }
  0x58   :  { %5843 = vmatmul.mubr.msk.f32.vlgmr.msra.gmra.mrb[4].mxu0 %vm92_vm0, %v5842_v47  ;;  %6204 = vmatprep.subr.bf16.mxu1 %v7745_v4  ;;  %v729_v4 = vld [vmem:[#allocation2 + $0xe8] sm:$0xff] }
  0x59   :  { %6190 = vmatpush1.bf16.msra.mxu0 %v7747_v8  ;;  %616 = vmatprep.mubr.f32.mxu0 %v7660_v0 }
  0x5a   :  { %6192 = vmatprep.subr.bf16.mxu0 %v7749_v9  ;;  %5845 = vmatmul.mubr.msk.f32.vlgmr.msra.gmra.mrb[4].mxu1 %vm92_vm0, %v5844_v53 }
  0x5b   :  { %6206 = vmatpush1.bf16.msra.mxu1 %v7747_v8  ;;  %692 = vmatprep.mubr.f32.mxu1 %v7660_v0  ;;  %v7891_v8 = vpack.c.bf16 %v726_v3, %v724_v2 }
  0x5c   :  { %6208 = vmatprep.subr.bf16.mxu1 %v7749_v9  ;;  %v7894_v9 = vpack.c.bf16 %v731_v5, %v729_v4 }
  0x5d   :  { %6194 = vmatpush1.bf16.msra.mxu0 %v7754_v14 }
  0x5e   :  { %6196 = vmatprep.subr.bf16.mxu0 %v7758_v15 }
  0x5f   :  { %6210 = vmatpush1.bf16.msra.mxu1 %v7754_v14  ;;  %v701_v14 = vld [vmem:[#allocation4 + $0x10] sm:$0xff] }
  0x60   :  { %6212 = vmatprep.subr.bf16.mxu1 %v7758_v15  ;;  %v704_v15 = vld [vmem:[#allocation4 + $0x28] sm:$0xff]  ;;  %v7908_v19 = vpack.c.bf16 %v701_v14, %v699_v13 }
  0x61   :  { %6198 = vmatpush1.bf16.msra.mxu0 %v7762_v20 }
  0x62   :  { %6200 = vmatprep.subr.bf16.mxu0 %v7766_v21 }
  0x63   :  { %6214 = vmatpush1.bf16.msra.mxu1 %v7762_v20  ;;  %v7911_v20 = vpack.c.bf16 %v706_v16, %v704_v15 }
  0x64   :  { %6216 = vmatprep.subr.bf16.mxu1 %v7766_v21  ;;  %v703_v21 = vld [vmem:[#allocation4 + $0x20] sm:$0xff] }
  0x65   :  { %6202 = vmatpush1.bf16.msra.mxu0 %v7770_v24 }
  0x66   :  { %6220 = vmatprep.subr.bf16.mxu0 %v7860_v50 }
  0x67   :  { %6218 = vmatpush1.bf16.msra.mxu1 %v7770_v24  ;;  %v7917_v24 = vpack.c.bf16 %v705_v22, %v703_v21 }
  0x68   :  { %5847 = vmatmul.mubr.msk.f32.vlgmr.msra.gmra.mrb[6].mxu0 %vm92_vm0, %v5846_v56  ;;  %6236 = vmatprep.subr.bf16.mxu1 %v7898_v12 }
  0x69   :  { %6222 = vmatpush1.bf16.msra.mxu0 %v7871_v57  ;;  %834 = vmatprep.mubr.f32.mxu0 %v7660_v0 }
  0x6a   :  { %6224 = vmatprep.subr.bf16.mxu0 %v7875_v58  ;;  %5849 = vmatmul.mubr.msk.f32.vlgmr.msra.gmra.mrb[6].mxu1 %vm92_vm0, %v5848_v18 }
  0x6b   :  { %6238 = vmatpush1.bf16.msra.mxu1 %v7908_v19  ;;  %905 = vmatprep.mubr.f32.mxu1 %v7660_v0 }
  0x6c   :  { %6240 = vmatprep.subr.bf16.mxu1 %v7911_v20 }
  0x6d   :  { %6226 = vmatpush1.bf16.msra.mxu0 %v7882_v63 }
  0x6e   :  { %6228 = vmatprep.subr.bf16.mxu0 %v7886_v1 }
  0x6f   :  { %6242 = vmatpush1.bf16.msra.mxu1 %v7917_v24 }
  0x70   :  { %6244 = vmatprep.subr.bf16.mxu1 %v7921_v26 }
  0x71   :  { %6230 = vmatpush1.bf16.msra.mxu0 %v7891_v8 }
  0x72   :  { %6232 = vmatprep.subr.bf16.mxu0 %v7894_v9 }
  0x75   :  { %6234 = vmatpush1.bf16.msra.mxu0 %v7901_v17 }
  0x76   :  { %6252 = vmatprep.subr.bf16.mxu0 %v7860_v50 }
 0x10b   :  { %v162_v31 = vpop.f32.mrb[0].mxu0 }
 0x10c   :  { %v163_v32 = vadd.f32 %v162_v31, %v7798_v30  ;;  %v164_v33 = vpop.f32.mrb[1].mxu0  ;;  %v712_v31 = vld [vmem:[#allocation4 + $0x68] sm:$0xff] }
 0x10d   :  { %v7807_v37 = vadd.f32 %v164_v33, %v7804_v36  ;;  %v7924_v33 = vpack.c.bf16 %v709_v29, %v707_v27 }
 0x10e   :  { %v5851_v34 = vmul.f32 -1.442695, %v163_v32  ;;  %v714_v32 = vld [vmem:[#allocation4 + $0x78] sm:$0xff] }
 0x10f   :  { %6246 = vmatpush1.bf16.msra.mxu1 %v7924_v33 }
 0x110   :  { %7224 = vpow2.f32 %v5851_v34  ;;  %v7927_v34 = vpack.c.bf16 %v714_v32, %v712_v31 }
 0x111   :  { %7226 = vtanh.f32 %v7807_v37 }
 0x112   :  { %6248 = vmatprep.subr.bf16.mxu1 %v7927_v34 }
 0x11a   :  { %v7225_v38 = vpop.eup %7224 }
 0x11b   :  { %v740_v39 = vadd.f32 1.0, %v7225_v38  ;;  %v7227_v40 = vpop.eup %7226  ;;  %v711_v38 = vld [vmem:[#allocation4 + $0x60] sm:$0xff] }
 0x11d   :  { %7228 = vrcp.f32 %v740_v39  ;;  %v713_v39 = vld [vmem:[#allocation4 + $0x70] sm:$0xff] }
 0x127   :  { %v7229_v41 = vpop.eup %7228 }
 0x128   :  { %v747_v42 = vmul.f32 %v7229_v41, %v7227_v40  ;;  %v7930_v40 = vpack.c.bf16 %v713_v39, %v711_v38  ;;  %v5852_v41 = vmul.f32 -1.442695, %v7807_v37  ;;  %v5850_v37 = vld [vmem:[%s8864_s4 + $0x2] sm:$0x3] }
 0x129   :  { %v7961_v48 = vrot.slane %v5850_v37, %v7792_v28  ;;  %v7966_v60 = vrot.slane %v5850_v37, %v7801_v35 }
 0x12a   :  { %928 = vrot.lane.b32.xlu1 %v747_v42, %s7661_s21  ;;  %7230 = vtanh.f32 %v747_v42  ;;  %6250 = vmatpush1.bf16.msra.mxu1 %v7930_v40 }
 0x12b   :  { %6284 = vmatprep.subr.bf16.mxu1 %v7860_v50  ;;  %7232 = vpow2.f32 %v5852_v41 }
 0x134   :  { %v7231_v45 = vpop.eup %7230 }
 0x135   :  { %750 = vrot.lane.b32.xlu0 %v7231_v45, %s7661_s21  ;;  %v7233_v42 = vpop.eup %7232 }
 0x136   :  { %v741_v43 = vadd.f32 1.0, %v7233_v42 }
 0x138   :  { %7234 = vrcp.f32 %v741_v43 }
 0x142   :  { %v7235_v44 = vpop.eup %7234 }
 0x19c   :  { %v929_v18 = vpop.permute.xlu1 %928 }
 0x1a7   :  { %v751_v45 = vpop.permute.xlu0 %750 }
 0x1a8   :  { %v753_v46 = vmul.f32 %v7235_v44, %v751_v45 }
 0x1aa   :  { %766 = vrot.lane.b32.xlu0 %v753_v46, %s7661_s21 }
 0x21c   :  { %v767_v47 = vpop.permute.xlu0 %766 }
 0x21d   :  { %5853 = vmatmul.mubr.msk.f32.vlgmr.msra.gmra.mrb[8].mxu0 %vm92_vm0, %v767_v47  ;;  %5854 = vmatmul.mubr.msk.f32.vlgmr.msra.gmra.mrb[0].mxu1 %vm92_vm0, %v767_v47 }
 0x21e   :  { %6254 = vmatpush1.bf16.msra.mxu0 %v7871_v57  ;;  %1009 = vmatprep.mubr.f32.mxu0 %v7660_v0 }
 0x21f   :  { %6256 = vmatprep.subr.bf16.mxu0 %v7875_v58  ;;  %6286 = vmatpush1.bf16.msra.mxu1 %v7871_v57 }
 0x220   :  { %6288 = vmatprep.subr.bf16.mxu1 %v7875_v58  ;;  %1180 = vmatprep.mubr.f32.mxu1 %v7660_v0 }
 0x222   :  { %6258 = vmatpush1.bf16.msra.mxu0 %v7882_v63 }
 0x223   :  { %6260 = vmatprep.subr.bf16.mxu0 %v7886_v1  ;;  %6290 = vmatpush1.bf16.msra.mxu1 %v7882_v63 }
 0x224   :  { %6292 = vmatprep.subr.bf16.mxu1 %v7886_v1 }
 0x226   :  { %6262 = vmatpush1.bf16.msra.mxu0 %v7891_v8 }
 0x227   :  { %6264 = vmatprep.subr.bf16.mxu0 %v7894_v9  ;;  %6294 = vmatpush1.bf16.msra.mxu1 %v7891_v8 }
 0x228   :  { %6296 = vmatprep.subr.bf16.mxu1 %v7894_v9 }
 0x22a   :  { %6266 = vmatpush1.bf16.msra.mxu0 %v7901_v17 }
 0x22b   :  { %6268 = vmatprep.subr.bf16.mxu0 %v7898_v12  ;;  %6298 = vmatpush1.bf16.msra.mxu1 %v7901_v17 }
 0x22c   :  { %6300 = vmatprep.subr.bf16.mxu1 %v7898_v12 }
 0x2f0   :  { %v836_v49 = vpop.f32.mrb[8].mxu0  ;;  %v907_v51 = vpop.f32.mrb[0].mxu1 }
 0x2f1   :  { %v837_v52 = vadd.f32 %v836_v49, %v7961_v48  ;;  %v7099_v53 = vadd.f32 %v907_v51, %v7798_v30  ;;  %v838_v54 = vpop.f32.mrb[9].mxu0  ;;  %v909_v55 = vpop.f32.mrb[1].mxu1 }
 0x2f2   :  { %v7969_v61 = vadd.f32 %v838_v54, %v7966_v60  ;;  %v7100_v62 = vadd.f32 %v909_v55, %v7804_v36 }
 0x2f3   :  { %v5883_v56 = vmul.f32 -1.442695, %v837_v52  ;;  %v5855_v59 = vmul.f32 -1.442695, %v7099_v53 }
 0x2f4   :  { %v5856_v15 = vmul.f32 -1.442695, %v7100_v62 }
 0x2f5   :  { %7236 = vpow2.f32 %v5883_v56 }
 0x2f6   :  { %7238 = vpow2.f32 %v5855_v59 }
 0x2f7   :  { %7240 = vtanh.f32 %v7969_v61 }
 0x2f8   :  { %7242 = vtanh.f32 %v7100_v62 }
 0x2ff   :  { %v7237_v2 = vpop.eup %7236 }
 0x300   :  { %v7239_v3 = vpop.eup %7238  ;;  %v2084_v4 = vadd.f32 1.0, %v7237_v2 }
 0x301   :  { %v920_v5 = vadd.f32 1.0, %v7239_v3  ;;  %v7241_v6 = vpop.eup %7240 }
 0x302   :  { %7244 = vrcp.f32 %v2084_v4  ;;  %v7243_v7 = vpop.eup %7242 }
 0x303   :  { %7246 = vrcp.f32 %v920_v5 }
 0x304   :  { %7248 = vpow2.f32 %v5856_v15 }
 0x30c   :  { %v7245_v10 = vpop.eup %7244 }
 0x30d   :  { %v7247_v11 = vpop.eup %7246  ;;  %v7973_v13 = vmul.f32 %v7245_v10, %v7241_v6 }
 0x30e   :  { %v932_v14 = vmul.f32 %v7247_v11, %v7243_v7  ;;  %v7249_v16 = vpop.eup %7248  ;;  %v931_v22 = vmul.f32 %v7247_v11, %v929_v18 }
 0x30f   :  { %v921_v21 = vadd.f32 1.0, %v7249_v16 }
 0x310   :  { %934 = vrot.lane.b32.xlu1 %v932_v14, %s7661_s21 }
 0x311   :  { %7250 = vrcp.f32 %v921_v21 }
 0x31b   :  { %v7251_v27 = vpop.eup %7250 }
 0x382   :  { %v935_v23 = vpop.permute.xlu1 %934 }
 0x383   :  { %v937_v25 = vadd.f32 %v935_v23, %v931_v22 }
 0x385   :  { %7252 = vtanh.f32 %v937_v25 }
 0x38f   :  { %v7253_v29 = vpop.eup %7252 }
 0x390   :  { %v939_v31 = vmul.f32 %v7253_v29, %v7251_v27 }
 0x392   :  { %941 = vrot.lane.b32.xlu0 %v939_v31, %s7661_s21 }
 0x404   :  { %v942_v32 = vpop.permute.xlu0 %941 }
 0x405   :  { %5857 = vmatmul.mubr.msk.f32.vlgmr.msra.gmra.mrb[10].mxu0 %vm92_vm0, %v942_v32 }
 0x406   :  { %6270 = vmatpush1.bf16.msra.mxu0 %v7908_v19  ;;  %1080 = vmatprep.mubr.f32.mxu0 %v7660_v0 }
 0x407   :  { %6272 = vmatprep.subr.bf16.mxu0 %v7911_v20 }
 0x40a   :  { %6274 = vmatpush1.bf16.msra.mxu0 %v7917_v24 }
 0x40b   :  { %6276 = vmatprep.subr.bf16.mxu0 %v7921_v26 }
 0x40e   :  { %6278 = vmatpush1.bf16.msra.mxu0 %v7924_v33 }
 0x40f   :  { %6280 = vmatprep.subr.bf16.mxu0 %v7927_v34 }
 0x412   :  { %6282 = vmatpush1.bf16.msra.mxu0 %v7930_v40 }
 0x413   :  { %6316 = vmatprep.subr.bf16.mxu0 %v7860_v50 }
 0x415   :  { %5858 = vmatmul.mubr.msk.f32.vlgmr.msra.gmra.mrb[2].mxu0 %vm92_vm0, %v942_v32 }
 0x416   :  { %6318 = vmatpush1.bf16.msra.mxu0 %v7871_v57  ;;  %1351 = vmatprep.mubr.f32.mxu0 %v7660_v0 }
 0x417   :  { %6320 = vmatprep.subr.bf16.mxu0 %v7875_v58 }
 0x41a   :  { %6322 = vmatpush1.bf16.msra.mxu0 %v7882_v63 }
 0x41b   :  { %6324 = vmatprep.subr.bf16.mxu0 %v7886_v1 }
 0x41e   :  { %6326 = vmatpush1.bf16.msra.mxu0 %v7891_v8 }
 0x41f   :  { %6328 = vmatprep.subr.bf16.mxu0 %v7894_v9 }
 0x422   :  { %6330 = vmatpush1.bf16.msra.mxu0 %v7901_v17 }
 0x423   :  { %6332 = vmatprep.subr.bf16.mxu0 %v7898_v12 }
 0x4e8   :  { %v1082_v38 = vpop.f32.mrb[2].mxu0 }
 0x4e9   :  { %v7101_v39 = vadd.f32 %v1082_v38, %v7798_v30  ;;  %v1084_v41 = vpop.f32.mrb[3].mxu0 }
 0x4ea   :  { %v7102_v43 = vadd.f32 %v1084_v41, %v7804_v36 }
 0x4eb   :  { %v5859_v42 = vmul.f32 -1.442695, %v7101_v39 }
 0x4ec   :  { %v5860_v49 = vmul.f32 -1.442695, %v7102_v43 }
 0x4ed   :  { %7254 = vpow2.f32 %v5859_v42 }
 0x4ee   :  { %7256 = vtanh.f32 %v7102_v43 }
 0x4f7   :  { %v7255_v44 = vpop.eup %7254 }
 0x4f8   :  { %v1095_v45 = vadd.f32 1.0, %v7255_v44  ;;  %v7257_v46 = vpop.eup %7256 }
 0x4fa   :  { %7258 = vrcp.f32 %v1095_v45 }
 0x4fb   :  { %7260 = vpow2.f32 %v5860_v49 }
 0x504   :  { %v7259_v47 = vpop.eup %7258 }
 0x505   :  { %v1103_v37 = vmul.f32 %v7259_v47, %v7257_v46  ;;  %v7261_v51 = vpop.eup %7260  ;;  %v1102_v53 = vmul.f32 %v7259_v47, %v937_v25 }
 0x506   :  { %v1096_v52 = vadd.f32 1.0, %v7261_v51 }
 0x507   :  { %1105 = vrot.lane.b32.xlu1 %v1103_v37, %s7661_s21 }
 0x508   :  { %7262 = vrcp.f32 %v1096_v52 }
 0x512   :  { %v7263_v56 = vpop.eup %7262 }
 0x579   :  { %v1106_v54 = vpop.permute.xlu1 %1105 }
 0x57a   :  { %v1108_v55 = vadd.f32 %v1106_v54, %v1102_v53 }
 0x57c   :  { %7264 = vtanh.f32 %v1108_v55 }
 0x586   :  { %v7265_v59 = vpop.eup %7264 }
 0x587   :  { %v1110_v62 = vmul.f32 %v7265_v59, %v7263_v56 }
 0x589   :  { %1112 = vrot.lane.b32.xlu0 %v1110_v62, %s7661_s21 }
 0x5fb   :  { %v1113_v2 = vpop.permute.xlu0 %1112 }
 0x5fc   :  { %5861 = vmatmul.mubr.msk.f32.vlgmr.msra.gmra.mrb[8].mxu1 %vm92_vm0, %v1113_v2 }
 0x5fd   :  { %6302 = vmatpush1.bf16.msra.mxu1 %v7908_v19  ;;  %1251 = vmatprep.mubr.f32.mxu1 %v7660_v0 }
 0x5fe   :  { %6304 = vmatprep.subr.bf16.mxu1 %v7911_v20 }
 0x601   :  { %6306 = vmatpush1.bf16.msra.mxu1 %v7917_v24 }
 0x602   :  { %6308 = vmatprep.subr.bf16.mxu1 %v7921_v26 }
 0x605   :  { %6310 = vmatpush1.bf16.msra.mxu1 %v7924_v33 }
 0x606   :  { %6312 = vmatprep.subr.bf16.mxu1 %v7927_v34 }
 0x609   :  { %6314 = vmatpush1.bf16.msra.mxu1 %v7930_v40 }
 0x60a   :  { %6348 = vmatprep.subr.bf16.mxu1 %v7860_v50 }
 0x60c   :  { %5862 = vmatmul.mubr.msk.f32.vlgmr.msra.gmra.mrb[2].mxu1 %vm92_vm0, %v1113_v2 }
 0x60d   :  { %6350 = vmatpush1.bf16.msra.mxu1 %v7871_v57  ;;  %1522 = vmatprep.mubr.f32.mxu1 %v7660_v0 }
 0x60e   :  { %6352 = vmatprep.subr.bf16.mxu1 %v7875_v58 }
 0x611   :  { %6354 = vmatpush1.bf16.msra.mxu1 %v7882_v63 }
 0x612   :  { %6356 = vmatprep.subr.bf16.mxu1 %v7886_v1 }
 0x615   :  { %6358 = vmatpush1.bf16.msra.mxu1 %v7891_v8 }
 0x616   :  { %6360 = vmatprep.subr.bf16.mxu1 %v7894_v9 }
 0x619   :  { %6362 = vmatpush1.bf16.msra.mxu1 %v7901_v17 }
 0x61a   :  { %6364 = vmatprep.subr.bf16.mxu1 %v7898_v12 }
 0x6df   :  { %v1253_v3 = vpop.f32.mrb[2].mxu1 }
 0x6e0   :  { %v7103_v4 = vadd.f32 %v1253_v3, %v7798_v30  ;;  %v1255_v5 = vpop.f32.mrb[3].mxu1 }
 0x6e1   :  { %v7104_v7 = vadd.f32 %v1255_v5, %v7804_v36 }
 0x6e2   :  { %v5863_v6 = vmul.f32 -1.442695, %v7103_v4 }
 0x6e3   :  { %v5864_v18 = vmul.f32 -1.442695, %v7104_v7 }
 0x6e4   :  { %7266 = vpow2.f32 %v5863_v6 }
 0x6e5   :  { %7268 = vtanh.f32 %v7104_v7 }
 0x6ee   :  { %v7267_v10 = vpop.eup %7266 }
 0x6ef   :  { %v1266_v11 = vadd.f32 1.0, %v7267_v10  ;;  %v7269_v14 = vpop.eup %7268 }
 0x6f1   :  { %7270 = vrcp.f32 %v1266_v11 }
 0x6f2   :  { %7272 = vpow2.f32 %v5864_v18 }
 0x6fb   :  { %v7271_v15 = vpop.eup %7270 }
 0x6fc   :  { %v1274_v16 = vmul.f32 %v7271_v15, %v7269_v14  ;;  %v7273_v21 = vpop.eup %7272  ;;  %v1273_v23 = vmul.f32 %v7271_v15, %v1108_v55 }
 0x6fd   :  { %v1267_v22 = vadd.f32 1.0, %v7273_v21 }
 0x6fe   :  { %1276 = vrot.lane.b32.xlu1 %v1274_v16, %s7661_s21 }
 0x6ff   :  { %7274 = vrcp.f32 %v1267_v22 }
 0x709   :  { %v7275_v29 = vpop.eup %7274 }
 0x770   :  { %v1277_v25 = vpop.permute.xlu1 %1276 }
 0x771   :  { %v1279_v27 = vadd.f32 %v1277_v25, %v1273_v23 }
 0x773   :  { %7276 = vtanh.f32 %v1279_v27 }
 0x77d   :  { %v7277_v31 = vpop.eup %7276 }
 0x77e   :  { %v1281_v32 = vmul.f32 %v7277_v31, %v7275_v29 }
 0x780   :  { %1283 = vrot.lane.b32.xlu0 %v1281_v32, %s7661_s21 }
 0x7f2   :  { %v1284_v38 = vpop.permute.xlu0 %1283 }
 0x7f3   :  { %5865 = vmatmul.mubr.msk.f32.vlgmr.msra.gmra.mrb[12].mxu0 %vm92_vm0, %v1284_v38 }
 0x7f4   :  { %6334 = vmatpush1.bf16.msra.mxu0 %v7908_v19  ;;  %1422 = vmatprep.mubr.f32.mxu0 %v7660_v0 }
 0x7f5   :  { %6336 = vmatprep.subr.bf16.mxu0 %v7911_v20 }
 0x7f8   :  { %6338 = vmatpush1.bf16.msra.mxu0 %v7917_v24 }
 0x7f9   :  { %6340 = vmatprep.subr.bf16.mxu0 %v7921_v26 }
 0x7fc   :  { %6342 = vmatpush1.bf16.msra.mxu0 %v7924_v33 }
 0x7fd   :  { %6344 = vmatprep.subr.bf16.mxu0 %v7927_v34 }
 0x800   :  { %6346 = vmatpush1.bf16.msra.mxu0 %v7930_v40 }
 0x801   :  { %6380 = vmatprep.subr.bf16.mxu0 %v7860_v50 }
 0x803   :  { %5866 = vmatmul.mubr.msk.f32.vlgmr.msra.gmra.mrb[4].mxu0 %vm92_vm0, %v1284_v38 }
 0x804   :  { %6382 = vmatpush1.bf16.msra.mxu0 %v7871_v57  ;;  %1693 = vmatprep.mubr.f32.mxu0 %v7660_v0 }
 0x805   :  { %6384 = vmatprep.subr.bf16.mxu0 %v7875_v58 }
 0x808   :  { %6386 = vmatpush1.bf16.msra.mxu0 %v7882_v63 }
 0x809   :  { %6388 = vmatprep.subr.bf16.mxu0 %v7886_v1 }
 0x80c   :  { %6390 = vmatpush1.bf16.msra.mxu0 %v7891_v8 }
 0x80d   :  { %6392 = vmatprep.subr.bf16.mxu0 %v7894_v9 }
 0x810   :  { %6394 = vmatpush1.bf16.msra.mxu0 %v7901_v17 }
 0x811   :  { %6396 = vmatprep.subr.bf16.mxu0 %v7898_v12 }
 0x8d6   :  { %v1424_v39 = vpop.f32.mrb[4].mxu0 }
 0x8d7   :  { %v7105_v41 = vadd.f32 %v1424_v39, %v7798_v30  ;;  %v1426_v42 = vpop.f32.mrb[5].mxu0 }
 0x8d8   :  { %v7106_v44 = vadd.f32 %v1426_v42, %v7804_v36 }
 0x8d9   :  { %v5867_v43 = vmul.f32 -1.442695, %v7105_v41 }
 0x8da   :  { %v5868_v51 = vmul.f32 -1.442695, %v7106_v44 }
 0x8db   :  { %7278 = vpow2.f32 %v5867_v43 }
 0x8dc   :  { %7280 = vtanh.f32 %v7106_v44 }
 0x8e5   :  { %v7279_v45 = vpop.eup %7278 }
 0x8e6   :  { %v1437_v46 = vadd.f32 1.0, %v7279_v45  ;;  %v7281_v47 = vpop.eup %7280 }
 0x8e8   :  { %7282 = vrcp.f32 %v1437_v46 }
 0x8e9   :  { %7284 = vpow2.f32 %v5868_v51 }
 0x8f2   :  { %v7283_v37 = vpop.eup %7282 }
 0x8f3   :  { %v1445_v49 = vmul.f32 %v7283_v37, %v7281_v47  ;;  %v7285_v52 = vpop.eup %7284  ;;  %v1444_v54 = vmul.f32 %v7283_v37, %v1279_v27 }
 0x8f4   :  { %v1438_v53 = vadd.f32 1.0, %v7285_v52 }
 0x8f5   :  { %1447 = vrot.lane.b32.xlu1 %v1445_v49, %s7661_s21 }
 0x8f6   :  { %7286 = vrcp.f32 %v1438_v53  ;;  %v5884_v53 = vmul.f32 -1.442695, %v7969_v61  ;;  %v2061_v61 = vld [vmem:[#allocation2 + $0x108] sm:$0xff] }
 0x900   :  { %v7287_v59 = vpop.eup %7286 }
 0x967   :  { %v1448_v55 = vpop.permute.xlu1 %1447 }
 0x968   :  { %v1450_v56 = vadd.f32 %v1448_v55, %v1444_v54 }
 0x96a   :  { %7288 = vtanh.f32 %v1450_v56 }
 0x974   :  { %v7289_v62 = vpop.eup %7288 }
 0x975   :  { %v1452_v2 = vmul.f32 %v7289_v62, %v7287_v59 }
 0x977   :  { %1454 = vrot.lane.b32.xlu0 %v1452_v2, %s7661_s21 }
 0x9e9   :  { %v1455_v3 = vpop.permute.xlu0 %1454 }
 0x9ea   :  { %5869 = vmatmul.mubr.msk.f32.vlgmr.msra.gmra.mrb[10].mxu1 %vm92_vm0, %v1455_v3 }
 0x9eb   :  { %6366 = vmatpush1.bf16.msra.mxu1 %v7908_v19  ;;  %1593 = vmatprep.mubr.f32.mxu1 %v7660_v0 }
 0x9ec   :  { %6368 = vmatprep.subr.bf16.mxu1 %v7911_v20 }
 0x9ef   :  { %6370 = vmatpush1.bf16.msra.mxu1 %v7917_v24 }
 0x9f0   :  { %6372 = vmatprep.subr.bf16.mxu1 %v7921_v26 }
 0x9f3   :  { %6374 = vmatpush1.bf16.msra.mxu1 %v7924_v33 }
 0x9f4   :  { %6376 = vmatprep.subr.bf16.mxu1 %v7927_v34 }
 0x9f7   :  { %6378 = vmatpush1.bf16.msra.mxu1 %v7930_v40 }
 0x9f8   :  { %6412 = vmatprep.subr.bf16.mxu1 %v7860_v50 }
 0x9fa   :  { %5870 = vmatmul.mubr.msk.f32.vlgmr.msra.gmra.mrb[4].mxu1 %vm92_vm0, %v1455_v3  ;;  %v2063_v3 = vld [vmem:[#allocation2 + $0x118] sm:$0xff] }
 0x9fb   :  { %6414 = vmatpush1.bf16.msra.mxu1 %v7871_v57  ;;  %1864 = vmatprep.mubr.f32.mxu1 %v7660_v0 }
 0x9fc   :  { %6416 = vmatprep.subr.bf16.mxu1 %v7875_v58 }
 0x9ff   :  { %6418 = vmatpush1.bf16.msra.mxu1 %v7882_v63 }
 0xa00   :  { %6420 = vmatprep.subr.bf16.mxu1 %v7886_v1 }
 0xa03   :  { %6422 = vmatpush1.bf16.msra.mxu1 %v7891_v8 }
 0xa04   :  { %6424 = vmatprep.subr.bf16.mxu1 %v7894_v9 }
 0xa07   :  { %6426 = vmatpush1.bf16.msra.mxu1 %v7901_v17 }
 0xa08   :  { %6428 = vmatprep.subr.bf16.mxu1 %v7898_v12 }
 0xacd   :  { %v1595_v4 = vpop.f32.mrb[4].mxu1 }
 0xace   :  { %v7107_v5 = vadd.f32 %v1595_v4, %v7798_v30  ;;  %v1597_v6 = vpop.f32.mrb[5].mxu1  ;;  %v2060_v4 = vld [vmem:[#allocation2 + $0x100] sm:$0xff] }
 0xacf   :  { %v7108_v10 = vadd.f32 %v1597_v6, %v7804_v36  ;;  %v2067_v6 = vld [vmem:[#allocation2 + $0x138] sm:$0xff] }
 0xad0   :  { %v5871_v7 = vmul.f32 -1.442695, %v7107_v5  ;;  %v2062_v5 = vld [vmem:[#allocation2 + $0x110] sm:$0xff] }
 0xad1   :  { %v5872_v21 = vmul.f32 -1.442695, %v7108_v10 }
 0xad2   :  { %7290 = vpow2.f32 %v5871_v7  ;;  %v8114_v7 = vpack.c.bf16 %v2062_v5, %v2060_v4  ;;  %v2043_v5 = vld [vmem:[#allocation4 + $0x80] sm:$0xff] }
 0xad3   :  { %7292 = vtanh.f32 %v7108_v10  ;;  %v2066_v10 = vld [vmem:[#allocation2 + $0x130] sm:$0xff] }
 0xadc   :  { %v7291_v11 = vpop.eup %7290 }
 0xadd   :  { %v1608_v14 = vadd.f32 1.0, %v7291_v11  ;;  %v7293_v15 = vpop.eup %7292  ;;  %v2069_v11 = vld [vmem:[#allocation2 + $0x148] sm:$0xff] }
 0xadf   :  { %7294 = vrcp.f32 %v1608_v14  ;;  %v2068_v14 = vld [vmem:[#allocation2 + $0x140] sm:$0xff] }
 0xae0   :  { %7296 = vpow2.f32 %v5872_v21 }
 0xae9   :  { %v7295_v16 = vpop.eup %7294 }
 0xaea   :  { %v1616_v18 = vmul.f32 %v7295_v16, %v7293_v15  ;;  %v7297_v12 = vpop.eup %7296  ;;  %v1615_v23 = vmul.f32 %v7295_v16, %v1450_v56  ;;  %v2070_v15 = vld [vmem:[#allocation2 + $0x150] sm:$0xff]  ;;  %v2073_v16 = vld [vmem:[#allocation2 + $0x168] sm:$0xff] }
 0xaeb   :  { %v1609_v22 = vadd.f32 1.0, %v7297_v12  ;;  %v8128_v21 = vpack.c.bf16 %v2070_v15, %v2068_v14  ;;  %v2052_v15 = vld [vmem:[#allocation4 + $0xc8] sm:$0xff] }
 0xaec   :  { %1618 = vrot.lane.b32.xlu1 %v1616_v18, %s7661_s21  ;;  %v2075_v18 = vld [vmem:[#allocation2 + $0x178] sm:$0xff] }
 0xaed   :  { %7298 = vrcp.f32 %v1609_v22  ;;  %v8131_v12 = vpack.c.bf16 %v2075_v18, %v2073_v16  ;;  %v2072_v22 = vld [vmem:[#allocation2 + $0x160] sm:$0xff]  ;;  %v2054_v16 = vld [vmem:[#allocation4 + $0xd8] sm:$0xff] }
 0xaf7   :  { %v7299_v29 = vpop.eup %7298 }
 0xb5e   :  { %v1619_v25 = vpop.permute.xlu1 %1618 }
 0xb5f   :  { %v1621_v27 = vadd.f32 %v1619_v25, %v1615_v23  ;;  %v2074_v23 = vld [vmem:[#allocation2 + $0x170] sm:$0xff] }
 0xb60   :  { %v8134_v25 = vpack.c.bf16 %v2074_v23, %v2072_v22  ;;  %v2051_v22 = vld [vmem:[#allocation4 + $0xc0] sm:$0xff]  ;;  %v2053_v23 = vld [vmem:[#allocation4 + $0xd0] sm:$0xff] }
 0xb61   :  { %7300 = vtanh.f32 %v1621_v27 }
 0xb6b   :  { %v7301_v31 = vpop.eup %7300 }
 0xb6c   :  { %v1623_v32 = vmul.f32 %v7301_v31, %v7299_v29 }
 0xb6e   :  { %1625 = vrot.lane.b32.xlu0 %v1623_v32, %s7661_s21 }
 0xbe0   :  { %v1626_v38 = vpop.permute.xlu0 %1625 }
 0xbe1   :  { %5873 = vmatmul.mubr.msk.f32.vlgmr.msra.gmra.mrb[14].mxu0 %vm92_vm0, %v1626_v38 }
 0xbe2   :  { %6398 = vmatpush1.bf16.msra.mxu0 %v7908_v19  ;;  %1764 = vmatprep.mubr.f32.mxu0 %v7660_v0 }
 0xbe3   :  { %6400 = vmatprep.subr.bf16.mxu0 %v7911_v20 }
 0xbe6   :  { %6402 = vmatpush1.bf16.msra.mxu0 %v7917_v24 }
 0xbe7   :  { %6404 = vmatprep.subr.bf16.mxu0 %v7921_v26 }
 0xbea   :  { %6406 = vmatpush1.bf16.msra.mxu0 %v7924_v33 }
 0xbeb   :  { %6408 = vmatprep.subr.bf16.mxu0 %v7927_v34 }
 0xbee   :  { %6410 = vmatpush1.bf16.msra.mxu0 %v7930_v40 }
 0xbef   :  { %6444 = vmatprep.subr.bf16.mxu0 %v7860_v50 }
 0xbf1   :  { %5874 = vmatmul.mubr.msk.f32.vlgmr.msra.gmra.mrb[6].mxu0 %vm92_vm0, %v1626_v38 }
 0xbf2   :  { %6446 = vmatpush1.bf16.msra.mxu0 %v7871_v57  ;;  %2035 = vmatprep.mubr.f32.mxu0 %v7660_v0 }
 0xbf3   :  { %6448 = vmatprep.subr.bf16.mxu0 %v7875_v58 }
 0xbf6   :  { %6450 = vmatpush1.bf16.msra.mxu0 %v7882_v63 }
 0xbf7   :  { %6452 = vmatprep.subr.bf16.mxu0 %v7886_v1 }
 0xbfa   :  { %6454 = vmatpush1.bf16.msra.mxu0 %v7891_v8 }
 0xbfb   :  { %6456 = vmatprep.subr.bf16.mxu0 %v7894_v9 }
 0xbfe   :  { %6458 = vmatpush1.bf16.msra.mxu0 %v7901_v17 }
 0xcc4   :  { %v1766_v39 = vpop.f32.mrb[6].mxu0 }
 0xcc5   :  { %v7109_v50 = vadd.f32 %v1766_v39, %v7798_v30  ;;  %v1768_v41 = vpop.f32.mrb[7].mxu0 }
 0xcc6   :  { %v7110_v57 = vadd.f32 %v1768_v41, %v7804_v36 }
 0xcc7   :  { %v5875_v42 = vmul.f32 -1.442695, %v7109_v50 }
 0xcc8   :  { %v5876_v8 = vmul.f32 -1.442695, %v7110_v57 }
 0xcc9   :  { %7302 = vpow2.f32 %v5875_v42 }
 0xcca   :  { %7304 = vtanh.f32 %v7110_v57 }
 0xcd3   :  { %v7303_v43 = vpop.eup %7302 }
 0xcd4   :  { %v1779_v58 = vadd.f32 1.0, %v7303_v43  ;;  %v7305_v63 = vpop.eup %7304 }
 0xcd6   :  { %7306 = vrcp.f32 %v1779_v58  ;;  %v2044_v58 = vld [vmem:[#allocation4 + $0x88] sm:$0xff] }
 0xcd7   :  { %7308 = vpow2.f32 %v5876_v8 }
 0xce0   :  { %v7307_v1 = vpop.eup %7306 }
 0xce1   :  { %v1787_v44 = vmul.f32 %v7307_v1, %v7305_v63  ;;  %v7309_v9 = vpop.eup %7308  ;;  %v1786_v45 = vmul.f32 %v7307_v1, %v1621_v27  ;;  %v2046_v63 = vld [vmem:[#allocation4 + $0x98] sm:$0xff] }
 0xce2   :  { %v1780_v17 = vadd.f32 1.0, %v7309_v9  ;;  %v8154_v1 = vpack.c.bf16 %v2046_v63, %v2044_v58 }
 0xce3   :  { %1789 = vrot.lane.b32.xlu1 %v1787_v44, %s7661_s21 }
 0xce4   :  { %7310 = vrcp.f32 %v1780_v17  ;;  %6476 = vmatprep.subr.bf16.mxu0 %v8154_v1 }
 0xcee   :  { %v7311_v37 = vpop.eup %7310 }
 0xd55   :  { %v1790_v46 = vpop.permute.xlu1 %1789 }
 0xd56   :  { %v8095_v47 = vadd.f32 %v1790_v46, %v1786_v45 }
 0xd58   :  { %7312 = vtanh.f32 %v8095_v47 }
 0xd59   :  { %7314 = vtanh.f32 %v7973_v13 }
 0xd5a   :  { %7316 = vpow2.f32 %v5884_v53 }
 0xd62   :  { %v7313_v49 = vpop.eup %7312 }
 0xd63   :  { %v1794_v51 = vmul.f32 %v7313_v49, %v7311_v37  ;;  %v7315_v52 = vpop.eup %7314 }
 0xd64   :  { %v7317_v54 = vpop.eup %7316 }
 0xd65   :  { %1796 = vrot.lane.b32.xlu0 %v1794_v51, %s7661_s21  ;;  %v2085_v55 = vadd.f32 1.0, %v7317_v54 }
 0xd67   :  { %7318 = vrcp.f32 %v2085_v55 }
 0xd69   :  { %2094 = vrot.lane.b32.xlu0 %v7315_v52, %s7661_s21 }
 0xd71   :  { %v7319_v59 = vpop.eup %7318 }
 0xdd7   :  { %v1797_v56 = vpop.permute.xlu0 %1796 }
 0xdd8   :  { %5877 = vmatmul.mubr.msk.f32.vlgmr.msra.gmra.mrb[12].mxu1 %vm92_vm0, %v1797_v56 }
 0xdd9   :  { %6430 = vmatpush1.bf16.msra.mxu1 %v7908_v19  ;;  %1935 = vmatprep.mubr.f32.mxu1 %v7660_v0  ;;  %v8111_v19 = vpack.c.bf16 %v2063_v3, %v2061_v61 }
 0xdda   :  { %6432 = vmatprep.subr.bf16.mxu1 %v7911_v20  ;;  %v2065_v20 = vld [vmem:[#allocation2 + $0x128] sm:$0xff] }
 0xddb   :  { %v2095_v62 = vpop.permute.xlu0 %2094 }
 0xddc   :  { %v2097_v2 = vmul.f32 %v7319_v59, %v2095_v62 }
 0xddd   :  { %6434 = vmatpush1.bf16.msra.mxu1 %v7917_v24  ;;  %v8117_v24 = vpack.c.bf16 %v2067_v6, %v2065_v20  ;;  %v2045_v20 = vld [vmem:[#allocation4 + $0x90] sm:$0xff]  ;;  %v2048_v6 = vld [vmem:[#allocation4 + $0xa8] sm:$0xff] }
 0xdde   :  { %2110 = vrot.lane.b32.xlu0 %v2097_v2, %s7661_s21  ;;  %6436 = vmatprep.subr.bf16.mxu1 %v7921_v26  ;;  %v2064_v26 = vld [vmem:[#allocation2 + $0x120] sm:$0xff] }
 0xde1   :  { %6438 = vmatpush1.bf16.msra.mxu1 %v7924_v33  ;;  %v2071_v33 = vld [vmem:[#allocation2 + $0x158] sm:$0xff] }
 0xde2   :  { %6440 = vmatprep.subr.bf16.mxu1 %v7927_v34  ;;  %v8121_v34 = vpack.c.bf16 %v2066_v10, %v2064_v26  ;;  %v2050_v26 = vld [vmem:[#allocation4 + $0xb8] sm:$0xff]  ;;  %v8178_v10 = vpack.c.bf16 %v2045_v20, %v2043_v5 }
 0xde5   :  { %6442 = vmatpush1.bf16.msra.mxu1 %v7930_v40  ;;  %v8125_v40 = vpack.c.bf16 %v2071_v33, %v2069_v11  ;;  %v8180_v11 = vpack.c.bf16 %v2050_v26, %v2048_v6  ;;  %v2049_v33 = vld [vmem:[#allocation4 + $0xb0] sm:$0xff] }
 0xde6   :  { %6460 = vmatprep.subr.bf16.mxu1 %v8111_v19 }
 0xde8   :  { %5878 = vmatmul.mubr.msk.f32.vlgmr.msra.gmra.mrb[6].mxu1 %vm92_vm0, %v1797_v56 }
 0xde9   :  { %6462 = vmatpush1.bf16.msra.mxu1 %v8114_v7  ;;  %2178 = vmatprep.mubr.f32.mxu1 %v7660_v0 }
 0xdea   :  { %6464 = vmatprep.subr.bf16.mxu1 %v8117_v24 }
 0xded   :  { %6466 = vmatpush1.bf16.msra.mxu1 %v8121_v34 }
 0xdee   :  { %6468 = vmatprep.subr.bf16.mxu1 %v8125_v40 }
 0xdf1   :  { %6470 = vmatpush1.bf16.msra.mxu1 %v8128_v21 }
 0xdf2   :  { %6472 = vmatprep.subr.bf16.mxu1 %v8131_v12 }
 0xdf5   :  { %6474 = vmatpush1.bf16.msra.mxu1 %v8134_v25 }
 0xdf6   :  { %6492 = vmatprep.subr.bf16.mxu1 %v8111_v19 }
 0xe50   :  { %v8139_v27 = vpop.permute.xlu0 %2110 }
 0xe51   :  { %5885 = vmatmul.mubr.msk.f32.vlgmr.msra.gmra.mrb[14].mxu1 %vm92_vm0, %v8139_v27 }
 0xe52   :  { %6494 = vmatpush1.bf16.msra.mxu1 %v8114_v7  ;;  %2353 = vmatprep.mubr.f32.mxu1 %v7660_v0 }
 0xe53   :  { %6496 = vmatprep.subr.bf16.mxu1 %v8117_v24 }
 0xe56   :  { %6498 = vmatpush1.bf16.msra.mxu1 %v8121_v34 }
 0xe57   :  { %6500 = vmatprep.subr.bf16.mxu1 %v8125_v40 }
 0xe5a   :  { %6502 = vmatpush1.bf16.msra.mxu1 %v8128_v21 }
 0xe5b   :  { %6504 = vmatprep.subr.bf16.mxu1 %v8131_v12 }
 0xe5e   :  { %6506 = vmatpush1.bf16.msra.mxu1 %v8134_v25 }
 0xe5f   :  { %6508 = vmatprep.subr.bf16.mxu1 %v8154_v1 }
 0xebb   :  { %v1937_v29 = vpop.f32.mrb[6].mxu1 }
 0xebc   :  { %v7111_v31 = vadd.f32 %v1937_v29, %v7798_v30  ;;  %v1939_v32 = vpop.f32.mrb[7].mxu1  ;;  %v5882_v30 = vld [vmem:[%s8864_s4 + $0x4] sm:$0x3]  ;;  %v2056_v29 = vld [vmem:[#allocation4 + $0xe8] sm:$0xff] }
 0xebd   :  { %v7112_v39 = vadd.f32 %v1939_v32, %v7804_v36  ;;  %v8162_v36 = vrot.slane %v5882_v30, %v7792_v28  ;;  %v8166_v45 = vrot.slane %v5882_v30, %v7801_v35  ;;  %v8191_v32 = vpack.c.bf16 %v2053_v23, %v2051_v22 }
 0xebe   :  { %v5879_v38 = vmul.f32 -1.442695, %v7111_v31  ;;  %v2058_v31 = vld [vmem:[#allocation4 + $0xf8] sm:$0xff] }
 0xebf   :  { %v5880_v51 = vmul.f32 -1.442695, %v7112_v39 }
 0xec0   :  { %7320 = vpow2.f32 %v5879_v38  ;;  %v8194_v38 = vpack.c.bf16 %v2058_v31, %v2056_v29 }
 0xec1   :  { %7322 = vtanh.f32 %v7112_v39  ;;  %v2055_v39 = vld [vmem:[#allocation4 + $0xe0] sm:$0xff] }
 0xeca   :  { %v7321_v50 = vpop.eup %7320 }
 0xecb   :  { %v1950_v41 = vadd.f32 1.0, %v7321_v50  ;;  %v7323_v42 = vpop.eup %7322  ;;  %v2057_v50 = vld [vmem:[#allocation4 + $0xf0] sm:$0xff] }
 0xecd   :  { %7324 = vrcp.f32 %v1950_v41  ;;  %v8197_v41 = vpack.c.bf16 %v2057_v50, %v2055_v39 }
 0xed7   :  { %v7325_v57 = vpop.eup %7324 }
 0xed8   :  { %v1958_v43 = vmul.f32 %v7325_v57, %v7323_v42  ;;  %v1957_v59 = vmul.f32 %v7325_v57, %v8095_v47  ;;  %v2047_v47 = vld [vmem:[#allocation4 + $0xa0] sm:$0xff] }
 0xed9   :  { %v8184_v18 = vpack.c.bf16 %v2049_v33, %v2047_v47 }
 0xeda   :  { %1960 = vrot.lane.b32.xlu1 %v1958_v43, %s7661_s21 }
 0xf24   :  { %v2180_v44 = vpop.f32.mrb[14].mxu1 }
 0xf25   :  { %v2181_v8 = vadd.f32 %v2180_v44, %v8162_v36  ;;  %v2182_v9 = vpop.f32.mrb[15].mxu1 }
 0xf26   :  { %v8169_v46 = vadd.f32 %v2182_v9, %v8166_v45 }
 0xf27   :  { %v5915_v17 = vmul.f32 -1.442695, %v2181_v8 }
 0xf29   :  { %7326 = vpow2.f32 %v5915_v17 }
 0xf2a   :  { %7328 = vtanh.f32 %v8169_v46 }
 0xf33   :  { %v7327_v37 = vpop.eup %7326 }
 0xf34   :  { %v3428_v49 = vadd.f32 1.0, %v7327_v37  ;;  %v7329_v52 = vpop.eup %7328 }
 0xf36   :  { %7330 = vrcp.f32 %v3428_v49 }
 0xf37   :  { %7332 = vpow2.f32 %v5880_v51 }
 0xf40   :  { %v7331_v53 = vpop.eup %7330 }
 0xf41   :  { %v8172_v54 = vmul.f32 %v7331_v53, %v7329_v52  ;;  %v7333_v55 = vpop.eup %7332 }
 0xf42   :  { %v1951_v56 = vadd.f32 1.0, %v7333_v55 }
 0xf44   :  { %7334 = vrcp.f32 %v1951_v56 }
 0xf4c   :  { %v1961_v62 = vpop.permute.xlu1 %1960 }
 0xf4d   :  { %v1963_v2 = vadd.f32 %v1961_v62, %v1957_v59 }
 0xf4e   :  { %v7335_v61 = vpop.eup %7334 }
 0xf4f   :  { %7336 = vtanh.f32 %v1963_v2 }
 0xf59   :  { %v7337_v3 = vpop.eup %7336 }
 0xf5a   :  { %v1965_v4 = vmul.f32 %v7337_v3, %v7335_v61 }
 0xf5c   :  { %1967 = vrot.lane.b32.xlu1 %v1965_v4, %s7661_s21 }
 0xf60   :  { %2272 = vrot.lane.b32.xlu1 %v7973_v13, %s7661_s21  ;;  %v8188_v13 = vpack.c.bf16 %v2054_v16, %v2052_v15 }
 0xfce   :  { %v1968_v14 = vpop.permute.xlu1 %1967 }
 0xfcf   :  { %5881 = vmatmul.mubr.msk.f32.vlgmr.msra.gmra.mrb[16].mxu0 %vm92_vm0, %v1968_v14 }
 0xfd0   :  { %6478 = vmatpush1.bf16.msra.mxu0 %v8178_v10  ;;  %2249 = vmatprep.mubr.f32.mxu0 %v7660_v0 }
 0xfd1   :  { %6480 = vmatprep.subr.bf16.mxu0 %v8180_v11 }
 0xfd2   :  { %v2273_v49 = vpop.permute.xlu1 %2272 }
 0xfd4   :  { %6482 = vmatpush1.bf16.msra.mxu0 %v8184_v18 }
 0xfd5   :  { %6484 = vmatprep.subr.bf16.mxu0 %v8188_v13 }
 0xfd8   :  { %6486 = vmatpush1.bf16.msra.mxu0 %v8191_v32 }
 0xfd9   :  { %6488 = vmatprep.subr.bf16.mxu0 %v8194_v38 }
 0xfdc   :  { %6490 = vmatpush1.bf16.msra.mxu0 %v8197_v41 }
 0xfdd   :  { %6524 = vmatprep.subr.bf16.mxu0 %v8111_v19 }
 0xfdf   :  { %5886 = vmatmul.mubr.msk.f32.vlgmr.msra.gmra.mrb[10].mxu0 %vm92_vm0, %v8139_v27 }
 0xfe0   :  { %6526 = vmatpush1.bf16.msra.mxu0 %v8114_v7  ;;  %2524 = vmatprep.mubr.f32.mxu0 %v7660_v0 }
 0xfe1   :  { %6528 = vmatprep.subr.bf16.mxu0 %v8117_v24 }
 0xfe4   :  { %6530 = vmatpush1.bf16.msra.mxu0 %v8121_v34 }
 0xfe5   :  { %6532 = vmatprep.subr.bf16.mxu0 %v8125_v40 }
 0xfe8   :  { %6534 = vmatpush1.bf16.msra.mxu0 %v8128_v21 }
 0xfe9   :  { %6536 = vmatprep.subr.bf16.mxu0 %v8131_v12 }
 0xfec   :  { %6538 = vmatpush1.bf16.msra.mxu0 %v8134_v25 }
 0xfed   :  { %6540 = vmatprep.subr.bf16.mxu0 %v8154_v1 }
0x10b2   :  { %v2251_v42 = vpop.f32.mrb[10].mxu0 }
0x10b3   :  { %v7113_v27 = vadd.f32 %v2251_v42, %v7961_v48  ;;  %v2253_v57 = vpop.f32.mrb[11].mxu0 }
0x10b4   :  { %v7114_v58 = vadd.f32 %v2253_v57, %v7966_v60 }
0x10b5   :  { %v5887_v43 = vmul.f32 -1.442695, %v7113_v27 }
0x10b6   :  { %v5888_v17 = vmul.f32 -1.442695, %v7114_v58 }
0x10b7   :  { %7338 = vpow2.f32 %v5887_v43 }
0x10b8   :  { %7340 = vtanh.f32 %v7114_v58 }
0x10c1   :  { %v7339_v63 = vpop.eup %7338 }
0x10c2   :  { %v2264_v30 = vadd.f32 1.0, %v7339_v63  ;;  %v7341_v44 = vpop.eup %7340 }
0x10c4   :  { %7342 = vrcp.f32 %v2264_v30 }
0x10c5   :  { %7344 = vpow2.f32 %v5888_v17 }
0x10ce   :  { %v7343_v8 = vpop.eup %7342 }
0x10cf   :  { %v2276_v9 = vmul.f32 %v7343_v8, %v7341_v44  ;;  %v7345_v37 = vpop.eup %7344  ;;  %v2275_v52 = vmul.f32 %v7343_v8, %v2273_v49 }
0x10d0   :  { %v2265_v51 = vadd.f32 1.0, %v7345_v37 }
0x10d1   :  { %2278 = vrot.lane.b32.xlu0 %v2276_v9, %s7661_s21 }
0x10d2   :  { %7346 = vrcp.f32 %v2265_v51 }
0x10dc   :  { %v7347_v56 = vpop.eup %7346 }
0x1143   :  { %v2279_v53 = vpop.permute.xlu0 %2278 }
0x1144   :  { %v2281_v55 = vadd.f32 %v2279_v53, %v2275_v52 }
0x1146   :  { %7348 = vtanh.f32 %v2281_v55 }
0x1150   :  { %v7349_v59 = vpop.eup %7348 }
0x1151   :  { %v2283_v62 = vmul.f32 %v7349_v59, %v7347_v56 }
0x1153   :  { %2285 = vrot.lane.b32.xlu1 %v2283_v62, %s7661_s21 }
0x11c5   :  { %v2286_v2 = vpop.permute.xlu1 %2285 }
0x11c6   :  { %5889 = vmatmul.mubr.msk.f32.vlgmr.msra.gmra.mrb[16].mxu1 %vm92_vm0, %v2286_v2 }
0x11c7   :  { %6510 = vmatpush1.bf16.msra.mxu1 %v8178_v10  ;;  %2424 = vmatprep.mubr.f32.mxu1 %v7660_v0 }
0x11c8   :  { %6512 = vmatprep.subr.bf16.mxu1 %v8180_v11 }
0x11cb   :  { %6514 = vmatpush1.bf16.msra.mxu1 %v8184_v18 }
0x11cc   :  { %6516 = vmatprep.subr.bf16.mxu1 %v8188_v13 }
0x11cf   :  { %6518 = vmatpush1.bf16.msra.mxu1 %v8191_v32 }
0x11d0   :  { %6520 = vmatprep.subr.bf16.mxu1 %v8194_v38 }
0x11d3   :  { %6522 = vmatpush1.bf16.msra.mxu1 %v8197_v41 }
0x11d4   :  { %6556 = vmatprep.subr.bf16.mxu1 %v8111_v19 }
0x11d6   :  { %5890 = vmatmul.mubr.msk.f32.vlgmr.msra.gmra.mrb[8].mxu1 %vm92_vm0, %v2286_v2 }
0x11d7   :  { %6558 = vmatpush1.bf16.msra.mxu1 %v8114_v7  ;;  %2695 = vmatprep.mubr.f32.mxu1 %v7660_v0 }
0x11d8   :  { %6560 = vmatprep.subr.bf16.mxu1 %v8117_v24 }
0x11db   :  { %6562 = vmatpush1.bf16.msra.mxu1 %v8121_v34 }
0x11dc   :  { %6564 = vmatprep.subr.bf16.mxu1 %v8125_v40 }
0x11df   :  { %6566 = vmatpush1.bf16.msra.mxu1 %v8128_v21 }
0x11e0   :  { %6568 = vmatprep.subr.bf16.mxu1 %v8131_v12 }
0x11e3   :  { %6570 = vmatpush1.bf16.msra.mxu1 %v8134_v25 }
0x11e4   :  { %6572 = vmatprep.subr.bf16.mxu1 %v8154_v1 }
0x12a9   :  { %v2426_v61 = vpop.f32.mrb[8].mxu1 }
0x12aa   :  { %v7115_v3 = vadd.f32 %v2426_v61, %v7961_v48  ;;  %v2428_v4 = vpop.f32.mrb[9].mxu1 }
0x12ab   :  { %v7116_v20 = vadd.f32 %v2428_v4, %v7966_v60 }
0x12ac   :  { %v5891_v5 = vmul.f32 -1.442695, %v7115_v3 }
0x12ad   :  { %v5892_v15 = vmul.f32 -1.442695, %v7116_v20 }
0x12ae   :  { %7350 = vpow2.f32 %v5891_v5 }
0x12af   :  { %7352 = vtanh.f32 %v7116_v20 }
0x12b8   :  { %v7351_v6 = vpop.eup %7350 }
0x12b9   :  { %v2439_v26 = vadd.f32 1.0, %v7351_v6  ;;  %v7353_v47 = vpop.eup %7352 }
0x12bb   :  { %7354 = vrcp.f32 %v2439_v26 }
0x12bc   :  { %7356 = vpow2.f32 %v5892_v15 }
0x12c5   :  { %v7355_v33 = vpop.eup %7354 }
0x12c6   :  { %v2447_v14 = vmul.f32 %v7355_v33, %v7353_v47  ;;  %v7357_v16 = vpop.eup %7356  ;;  %v2446_v23 = vmul.f32 %v7355_v33, %v2281_v55 }
0x12c7   :  { %v2440_v22 = vadd.f32 1.0, %v7357_v16 }
0x12c8   :  { %2449 = vrot.lane.b32.xlu0 %v2447_v14, %s7661_s21 }
0x12c9   :  { %7358 = vrcp.f32 %v2440_v22 }
0x12d3   :  { %v7359_v39 = vpop.eup %7358 }
0x133a   :  { %v2450_v29 = vpop.permute.xlu0 %2449 }
0x133b   :  { %v2452_v31 = vadd.f32 %v2450_v29, %v2446_v23 }
0x133d   :  { %7360 = vtanh.f32 %v2452_v31 }
0x1347   :  { %v7361_v50 = vpop.eup %7360 }
0x1348   :  { %v2454_v42 = vmul.f32 %v7361_v50, %v7359_v39 }
0x134a   :  { %2456 = vrot.lane.b32.xlu1 %v2454_v42, %s7661_s21 }
0x13bc   :  { %v2457_v27 = vpop.permute.xlu1 %2456 }
0x13bd   :  { %5893 = vmatmul.mubr.msk.f32.vlgmr.msra.gmra.mrb[18].mxu0 %vm92_vm0, %v2457_v27 }
0x13be   :  { %6542 = vmatpush1.bf16.msra.mxu0 %v8178_v10  ;;  %2595 = vmatprep.mubr.f32.mxu0 %v7660_v0 }
0x13bf   :  { %6544 = vmatprep.subr.bf16.mxu0 %v8180_v11 }
0x13c2   :  { %6546 = vmatpush1.bf16.msra.mxu0 %v8184_v18 }
0x13c3   :  { %6548 = vmatprep.subr.bf16.mxu0 %v8188_v13 }
0x13c6   :  { %6550 = vmatpush1.bf16.msra.mxu0 %v8191_v32 }
0x13c7   :  { %6552 = vmatprep.subr.bf16.mxu0 %v8194_v38 }
0x13ca   :  { %6554 = vmatpush1.bf16.msra.mxu0 %v8197_v41 }
0x13cb   :  { %6588 = vmatprep.subr.bf16.mxu0 %v8111_v19 }
0x13cd   :  { %5894 = vmatmul.mubr.msk.f32.vlgmr.msra.gmra.mrb[12].mxu0 %vm92_vm0, %v2457_v27 }
0x13ce   :  { %6590 = vmatpush1.bf16.msra.mxu0 %v8114_v7  ;;  %2866 = vmatprep.mubr.f32.mxu0 %v7660_v0 }
0x13cf   :  { %6592 = vmatprep.subr.bf16.mxu0 %v8117_v24 }
0x13d2   :  { %6594 = vmatpush1.bf16.msra.mxu0 %v8121_v34 }
0x13d3   :  { %6596 = vmatprep.subr.bf16.mxu0 %v8125_v40 }
0x13d6   :  { %6598 = vmatpush1.bf16.msra.mxu0 %v8128_v21 }
0x13d7   :  { %6600 = vmatprep.subr.bf16.mxu0 %v8131_v12 }
0x13da   :  { %6602 = vmatpush1.bf16.msra.mxu0 %v8134_v25 }
0x13db   :  { %6604 = vmatprep.subr.bf16.mxu0 %v8154_v1 }
0x14a0   :  { %v2597_v57 = vpop.f32.mrb[12].mxu0 }
0x14a1   :  { %v7117_v43 = vadd.f32 %v2597_v57, %v7961_v48  ;;  %v2599_v58 = vpop.f32.mrb[13].mxu0 }
0x14a2   :  { %v7118_v30 = vadd.f32 %v2599_v58, %v7966_v60 }
0x14a3   :  { %v5895_v63 = vmul.f32 -1.442695, %v7117_v43 }
0x14a4   :  { %v5896_v49 = vmul.f32 -1.442695, %v7118_v30 }
0x14a5   :  { %7362 = vpow2.f32 %v5895_v63 }
0x14a6   :  { %7364 = vtanh.f32 %v7118_v30 }
0x14af   :  { %v7363_v44 = vpop.eup %7362 }
0x14b0   :  { %v2610_v8 = vadd.f32 1.0, %v7363_v44  ;;  %v7365_v9 = vpop.eup %7364 }
0x14b2   :  { %7366 = vrcp.f32 %v2610_v8 }
0x14b3   :  { %7368 = vpow2.f32 %v5896_v49 }
0x14bc   :  { %v7367_v17 = vpop.eup %7366 }
0x14bd   :  { %v2618_v37 = vmul.f32 %v7367_v17, %v7365_v9  ;;  %v7369_v51 = vpop.eup %7368  ;;  %v2617_v53 = vmul.f32 %v7367_v17, %v2452_v31 }
0x14be   :  { %v2611_v52 = vadd.f32 1.0, %v7369_v51 }
0x14bf   :  { %2620 = vrot.lane.b32.xlu0 %v2618_v37, %s7661_s21 }
0x14c0   :  { %7370 = vrcp.f32 %v2611_v52 }
0x14ca   :  { %v7371_v59 = vpop.eup %7370 }
0x1531   :  { %v2621_v55 = vpop.permute.xlu0 %2620 }
0x1532   :  { %v2623_v56 = vadd.f32 %v2621_v55, %v2617_v53 }
0x1534   :  { %7372 = vtanh.f32 %v2623_v56 }
0x153e   :  { %v7373_v62 = vpop.eup %7372 }
0x153f   :  { %v2625_v2 = vmul.f32 %v7373_v62, %v7371_v59 }
0x1541   :  { %2627 = vrot.lane.b32.xlu1 %v2625_v2, %s7661_s21 }
0x15b3   :  { %v2628_v61 = vpop.permute.xlu1 %2627 }
0x15b4   :  { %5897 = vmatmul.mubr.msk.f32.vlgmr.msra.gmra.mrb[18].mxu1 %vm92_vm0, %v2628_v61 }
0x15b5   :  { %6574 = vmatpush1.bf16.msra.mxu1 %v8178_v10  ;;  %2766 = vmatprep.mubr.f32.mxu1 %v7660_v0 }
0x15b6   :  { %6576 = vmatprep.subr.bf16.mxu1 %v8180_v11 }
0x15b9   :  { %6578 = vmatpush1.bf16.msra.mxu1 %v8184_v18 }
0x15ba   :  { %6580 = vmatprep.subr.bf16.mxu1 %v8188_v13 }
0x15bd   :  { %6582 = vmatpush1.bf16.msra.mxu1 %v8191_v32 }
0x15be   :  { %6584 = vmatprep.subr.bf16.mxu1 %v8194_v38 }
0x15c1   :  { %6586 = vmatpush1.bf16.msra.mxu1 %v8197_v41 }
0x15c2   :  { %6620 = vmatprep.subr.bf16.mxu1 %v8111_v19 }
0x15c4   :  { %5898 = vmatmul.mubr.msk.f32.vlgmr.msra.gmra.mrb[10].mxu1 %vm92_vm0, %v2628_v61 }
0x15c5   :  { %6622 = vmatpush1.bf16.msra.mxu1 %v8114_v7  ;;  %3037 = vmatprep.mubr.f32.mxu1 %v7660_v0 }
0x15c6   :  { %6624 = vmatprep.subr.bf16.mxu1 %v8117_v24 }
0x15c9   :  { %6626 = vmatpush1.bf16.msra.mxu1 %v8121_v34 }
0x15ca   :  { %6628 = vmatprep.subr.bf16.mxu1 %v8125_v40 }
0x15cd   :  { %6630 = vmatpush1.bf16.msra.mxu1 %v8128_v21 }
0x15ce   :  { %6632 = vmatprep.subr.bf16.mxu1 %v8131_v12 }
0x15d1   :  { %6634 = vmatpush1.bf16.msra.mxu1 %v8134_v25 }
0x15d2   :  { %6636 = vmatprep.subr.bf16.mxu1 %v8154_v1 }
0x1697   :  { %v2768_v3 = vpop.f32.mrb[10].mxu1 }
0x1698   :  { %v7119_v4 = vadd.f32 %v2768_v3, %v7961_v48  ;;  %v2770_v5 = vpop.f32.mrb[11].mxu1 }
0x1699   :  { %v7120_v6 = vadd.f32 %v2770_v5, %v7966_v60 }
0x169a   :  { %v5899_v20 = vmul.f32 -1.442695, %v7119_v4 }
0x169b   :  { %v5900_v16 = vmul.f32 -1.442695, %v7120_v6 }
0x169c   :  { %7374 = vpow2.f32 %v5899_v20 }
0x169d   :  { %7376 = vtanh.f32 %v7120_v6 }
0x16a6   :  { %v7375_v26 = vpop.eup %7374 }
0x16a7   :  { %v2781_v47 = vadd.f32 1.0, %v7375_v26  ;;  %v7377_v33 = vpop.eup %7376 }
0x16a9   :  { %7378 = vrcp.f32 %v2781_v47 }
0x16aa   :  { %7380 = vpow2.f32 %v5900_v16 }
0x16b3   :  { %v7379_v14 = vpop.eup %7378 }
0x16b4   :  { %v2789_v15 = vmul.f32 %v7379_v14, %v7377_v33  ;;  %v7381_v22 = vpop.eup %7380  ;;  %v2788_v29 = vmul.f32 %v7379_v14, %v2623_v56 }
0x16b5   :  { %v2782_v23 = vadd.f32 1.0, %v7381_v22 }
0x16b6   :  { %2791 = vrot.lane.b32.xlu0 %v2789_v15, %s7661_s21 }
0x16b7   :  { %7382 = vrcp.f32 %v2782_v23  ;;  %v5916_v23 = vmul.f32 -1.442695, %v8169_v46  ;;  %v3405_v46 = vld [vmem:[#allocation2 + $0x188] sm:$0xff] }
0x16c1   :  { %v7383_v50 = vpop.eup %7382 }
0x1728   :  { %v2792_v31 = vpop.permute.xlu0 %2791 }
0x1729   :  { %v2794_v39 = vadd.f32 %v2792_v31, %v2788_v29 }
0x172b   :  { %7384 = vtanh.f32 %v2794_v39 }
0x1735   :  { %v7385_v42 = vpop.eup %7384 }
0x1736   :  { %v2796_v27 = vmul.f32 %v7385_v42, %v7383_v50 }
0x1738   :  { %2798 = vrot.lane.b32.xlu1 %v2796_v27, %s7661_s21 }
0x17aa   :  { %v2799_v57 = vpop.permute.xlu1 %2798 }
0x17ab   :  { %5901 = vmatmul.mubr.msk.f32.vlgmr.msra.gmra.mrb[20].mxu0 %vm92_vm0, %v2799_v57 }
0x17ac   :  { %6606 = vmatpush1.bf16.msra.mxu0 %v8178_v10  ;;  %2937 = vmatprep.mubr.f32.mxu0 %v7660_v0 }
0x17ad   :  { %6608 = vmatprep.subr.bf16.mxu0 %v8180_v11 }
0x17b0   :  { %6610 = vmatpush1.bf16.msra.mxu0 %v8184_v18 }
0x17b1   :  { %6612 = vmatprep.subr.bf16.mxu0 %v8188_v13 }
0x17b4   :  { %6614 = vmatpush1.bf16.msra.mxu0 %v8191_v32 }
0x17b5   :  { %6616 = vmatprep.subr.bf16.mxu0 %v8194_v38 }
0x17b8   :  { %6618 = vmatpush1.bf16.msra.mxu0 %v8197_v41 }
0x17b9   :  { %6652 = vmatprep.subr.bf16.mxu0 %v8111_v19 }
0x17bb   :  { %5902 = vmatmul.mubr.msk.f32.vlgmr.msra.gmra.mrb[14].mxu0 %vm92_vm0, %v2799_v57  ;;  %v3407_v57 = vld [vmem:[#allocation2 + $0x198] sm:$0xff] }
0x17bc   :  { %6654 = vmatpush1.bf16.msra.mxu0 %v8114_v7  ;;  %3208 = vmatprep.mubr.f32.mxu0 %v7660_v0 }
0x17bd   :  { %6656 = vmatprep.subr.bf16.mxu0 %v8117_v24 }
0x17c0   :  { %6658 = vmatpush1.bf16.msra.mxu0 %v8121_v34 }
0x17c1   :  { %6660 = vmatprep.subr.bf16.mxu0 %v8125_v40 }
0x17c4   :  { %6662 = vmatpush1.bf16.msra.mxu0 %v8128_v21 }
0x17c5   :  { %6664 = vmatprep.subr.bf16.mxu0 %v8131_v12 }
0x17c8   :  { %6666 = vmatpush1.bf16.msra.mxu0 %v8134_v25 }
0x17c9   :  { %6668 = vmatprep.subr.bf16.mxu0 %v8154_v1 }
0x188e   :  { %v2939_v43 = vpop.f32.mrb[14].mxu0 }
0x188f   :  { %v7121_v58 = vadd.f32 %v2939_v43, %v7961_v48  ;;  %v2941_v63 = vpop.f32.mrb[15].mxu0  ;;  %v3404_v43 = vld [vmem:[#allocation2 + $0x180] sm:$0xff] }
0x1890   :  { %v7122_v44 = vadd.f32 %v2941_v63, %v7966_v60  ;;  %v3411_v63 = vld [vmem:[#allocation2 + $0x1b8] sm:$0xff] }
0x1891   :  { %v5903_v30 = vmul.f32 -1.442695, %v7121_v58  ;;  %v3406_v58 = vld [vmem:[#allocation2 + $0x190] sm:$0xff] }
0x1892   :  { %v5904_v51 = vmul.f32 -1.442695, %v7122_v44 }
0x1893   :  { %7386 = vpow2.f32 %v5903_v30  ;;  %v8354_v30 = vpack.c.bf16 %v3406_v58, %v3404_v43  ;;  %v3389_v43 = vld [vmem:[#allocation4 + $0x110] sm:$0xff]  ;;  %v3392_v58 = vld [vmem:[#allocation4 + $0x128] sm:$0xff] }
0x1894   :  { %7388 = vtanh.f32 %v7122_v44  ;;  %v3410_v44 = vld [vmem:[#allocation2 + $0x1b0] sm:$0xff] }
0x189d   :  { %v7387_v8 = vpop.eup %7386 }
0x189e   :  { %v2952_v9 = vadd.f32 1.0, %v7387_v8  ;;  %v7389_v17 = vpop.eup %7388  ;;  %v3413_v8 = vld [vmem:[#allocation2 + $0x1c8] sm:$0xff] }
0x18a0   :  { %7390 = vrcp.f32 %v2952_v9  ;;  %v3412_v9 = vld [vmem:[#allocation2 + $0x1c0] sm:$0xff] }
0x18a1   :  { %7392 = vpow2.f32 %v5904_v51 }
0x18aa   :  { %v7391_v37 = vpop.eup %7390 }
0x18ab   :  { %v2960_v49 = vmul.f32 %v7391_v37, %v7389_v17  ;;  %v7393_v1 = vpop.eup %7392  ;;  %v2959_v53 = vmul.f32 %v7391_v37, %v2794_v39  ;;  %v3414_v17 = vld [vmem:[#allocation2 + $0x1d0] sm:$0xff]  ;;  %v3417_v37 = vld [vmem:[#allocation2 + $0x1e8] sm:$0xff] }
0x18ac   :  { %v2953_v52 = vadd.f32 1.0, %v7393_v1  ;;  %v8368_v51 = vpack.c.bf16 %v3414_v17, %v3412_v9  ;;  %v3398_v9 = vld [vmem:[#allocation4 + $0x158] sm:$0xff] }
0x18ad   :  { %2962 = vrot.lane.b32.xlu0 %v2960_v49, %s7661_s21  ;;  %v3419_v49 = vld [vmem:[#allocation2 + $0x1f8] sm:$0xff] }
0x18ae   :  { %7394 = vrcp.f32 %v2953_v52  ;;  %v8371_v1 = vpack.c.bf16 %v3419_v49, %v3417_v37  ;;  %v3416_v52 = vld [vmem:[#allocation2 + $0x1e0] sm:$0xff]  ;;  %v3397_v49 = vld [vmem:[#allocation4 + $0x150] sm:$0xff] }
0x18af   :  { %v3395_v37 = vld [vmem:[#allocation4 + $0x140] sm:$0xff] }
0x18b8   :  { %v7395_v59 = vpop.eup %7394 }
0x191f   :  { %v2963_v55 = vpop.permute.xlu0 %2962 }
0x1920   :  { %v2965_v56 = vadd.f32 %v2963_v55, %v2959_v53  ;;  %v3418_v53 = vld [vmem:[#allocation2 + $0x1f0] sm:$0xff] }
0x1921   :  { %v8374_v55 = vpack.c.bf16 %v3418_v53, %v3416_v52  ;;  %v3400_v52 = vld [vmem:[#allocation4 + $0x168] sm:$0xff]  ;;  %v3402_v53 = vld [vmem:[#allocation4 + $0x178] sm:$0xff] }
0x1922   :  { %7396 = vtanh.f32 %v2965_v56 }
0x192c   :  { %v7397_v62 = vpop.eup %7396 }
0x192d   :  { %v2967_v2 = vmul.f32 %v7397_v62, %v7395_v59 }
0x192f   :  { %2969 = vrot.lane.b32.xlu1 %v2967_v2, %s7661_s21 }
0x19a1   :  { %v2970_v61 = vpop.permute.xlu1 %2969 }
0x19a2   :  { %5905 = vmatmul.mubr.msk.f32.vlgmr.msra.gmra.mrb[20].mxu1 %vm92_vm0, %v2970_v61 }
0x19a3   :  { %6638 = vmatpush1.bf16.msra.mxu1 %v8178_v10  ;;  %3108 = vmatprep.mubr.f32.mxu1 %v7660_v0 }
0x19a4   :  { %6640 = vmatprep.subr.bf16.mxu1 %v8180_v11 }
0x19a7   :  { %6642 = vmatpush1.bf16.msra.mxu1 %v8184_v18 }
0x19a8   :  { %6644 = vmatprep.subr.bf16.mxu1 %v8188_v13 }
0x19ab   :  { %6646 = vmatpush1.bf16.msra.mxu1 %v8191_v32 }
0x19ac   :  { %6648 = vmatprep.subr.bf16.mxu1 %v8194_v38 }
0x19af   :  { %6650 = vmatpush1.bf16.msra.mxu1 %v8197_v41 }
0x19b0   :  { %6684 = vmatprep.subr.bf16.mxu1 %v8111_v19 }
0x19b2   :  { %5906 = vmatmul.mubr.msk.f32.vlgmr.msra.gmra.mrb[12].mxu1 %vm92_vm0, %v2970_v61 }
0x19b3   :  { %6686 = vmatpush1.bf16.msra.mxu1 %v8114_v7  ;;  %3379 = vmatprep.mubr.f32.mxu1 %v7660_v0 }
0x19b4   :  { %6688 = vmatprep.subr.bf16.mxu1 %v8117_v24 }
0x19b7   :  { %6690 = vmatpush1.bf16.msra.mxu1 %v8121_v34 }
0x19b8   :  { %6692 = vmatprep.subr.bf16.mxu1 %v8125_v40 }
0x19bb   :  { %6694 = vmatpush1.bf16.msra.mxu1 %v8128_v21 }
0x19bc   :  { %6696 = vmatprep.subr.bf16.mxu1 %v8131_v12 }
0x19bf   :  { %6698 = vmatpush1.bf16.msra.mxu1 %v8134_v25 }
0x1a85   :  { %v3110_v3 = vpop.f32.mrb[12].mxu1 }
0x1a86   :  { %v7123_v19 = vadd.f32 %v3110_v3, %v7961_v48  ;;  %v3112_v4 = vpop.f32.mrb[13].mxu1 }
0x1a87   :  { %v7124_v7 = vadd.f32 %v3112_v4, %v7966_v60 }
0x1a88   :  { %v5907_v5 = vmul.f32 -1.442695, %v7123_v19 }
0x1a89   :  { %v5908_v21 = vmul.f32 -1.442695, %v7124_v7 }
0x1a8a   :  { %7398 = vpow2.f32 %v5907_v5 }
0x1a8b   :  { %7400 = vtanh.f32 %v7124_v7 }
0x1a94   :  { %v7399_v20 = vpop.eup %7398 }
0x1a95   :  { %v3123_v24 = vadd.f32 1.0, %v7399_v20  ;;  %v7401_v34 = vpop.eup %7400 }
0x1a97   :  { %7402 = vrcp.f32 %v3123_v24  ;;  %v3388_v24 = vld [vmem:[#allocation4 + $0x108] sm:$0xff] }
0x1a98   :  { %7404 = vpow2.f32 %v5908_v21 }
0x1aa1   :  { %v7403_v40 = vpop.eup %7402 }
0x1aa2   :  { %v3131_v6 = vmul.f32 %v7403_v40, %v7401_v34  ;;  %v7405_v12 = vpop.eup %7404  ;;  %v3130_v26 = vmul.f32 %v7403_v40, %v2965_v56  ;;  %v3390_v34 = vld [vmem:[#allocation4 + $0x118] sm:$0xff] }
0x1aa3   :  { %v3124_v25 = vadd.f32 1.0, %v7405_v12  ;;  %v8394_v40 = vpack.c.bf16 %v3390_v34, %v3388_v24 }
0x1aa4   :  { %3133 = vrot.lane.b32.xlu0 %v3131_v6, %s7661_s21 }
0x1aa5   :  { %7406 = vrcp.f32 %v3124_v25  ;;  %6716 = vmatprep.subr.bf16.mxu1 %v8394_v40 }
0x1aaf   :  { %v7407_v14 = vpop.eup %7406 }
0x1b16   :  { %v3134_v47 = vpop.permute.xlu0 %3133 }
0x1b17   :  { %v8335_v33 = vadd.f32 %v3134_v47, %v3130_v26 }
0x1b19   :  { %7408 = vtanh.f32 %v8335_v33 }
0x1b1a   :  { %7410 = vtanh.f32 %v8172_v54 }
0x1b1b   :  { %7412 = vpow2.f32 %v5916_v23 }
0x1b23   :  { %v7409_v15 = vpop.eup %7408 }
0x1b24   :  { %v3138_v16 = vmul.f32 %v7409_v15, %v7407_v14  ;;  %v7411_v22 = vpop.eup %7410 }
0x1b25   :  { %v7413_v29 = vpop.eup %7412 }
0x1b26   :  { %3140 = vrot.lane.b32.xlu1 %v3138_v16, %s7661_s21  ;;  %v3429_v31 = vadd.f32 1.0, %v7413_v29 }
0x1b28   :  { %7414 = vrcp.f32 %v3429_v31 }
0x1b2a   :  { %3438 = vrot.lane.b32.xlu1 %v7411_v22, %s7661_s21 }
0x1b32   :  { %v7415_v50 = vpop.eup %7414 }
0x1b98   :  { %v3141_v39 = vpop.permute.xlu1 %3140 }
0x1b99   :  { %5909 = vmatmul.mubr.msk.f32.vlgmr.msra.gmra.mrb[22].mxu0 %vm92_vm0, %v3141_v39 }
0x1b9a   :  { %6670 = vmatpush1.bf16.msra.mxu0 %v8178_v10  ;;  %3279 = vmatprep.mubr.f32.mxu0 %v7660_v0  ;;  %v8351_v10 = vpack.c.bf16 %v3407_v57, %v3405_v46  ;;  %v3387_v57 = vld [vmem:[#allocation4 + $0x100] sm:$0xff] }
0x1b9b   :  { %6672 = vmatprep.subr.bf16.mxu0 %v8180_v11  ;;  %v3409_v11 = vld [vmem:[#allocation2 + $0x1a8] sm:$0xff] }
0x1b9c   :  { %v3439_v42 = vpop.permute.xlu1 %3438 }
0x1b9d   :  { %v3441_v27 = vmul.f32 %v7415_v50, %v3439_v42 }
0x1b9e   :  { %6674 = vmatpush1.bf16.msra.mxu0 %v8184_v18  ;;  %v8357_v18 = vpack.c.bf16 %v3411_v63, %v3409_v11  ;;  %v3394_v11 = vld [vmem:[#allocation4 + $0x138] sm:$0xff]  ;;  %v8418_v63 = vpack.c.bf16 %v3389_v43, %v3387_v57 }
0x1b9f   :  { %3454 = vrot.lane.b32.xlu1 %v3441_v27, %s7661_s21  ;;  %6676 = vmatprep.subr.bf16.mxu0 %v8188_v13  ;;  %v3408_v13 = vld [vmem:[#allocation2 + $0x1a0] sm:$0xff] }
0x1ba2   :  { %6678 = vmatpush1.bf16.msra.mxu0 %v8191_v32  ;;  %v3415_v32 = vld [vmem:[#allocation2 + $0x1d8] sm:$0xff] }
0x1ba3   :  { %6680 = vmatprep.subr.bf16.mxu0 %v8194_v38  ;;  %v8361_v38 = vpack.c.bf16 %v3410_v44, %v3408_v13  ;;  %v8420_v13 = vpack.c.bf16 %v3394_v11, %v3392_v58  ;;  %v3393_v44 = vld [vmem:[#allocation4 + $0x130] sm:$0xff] }
0x1ba6   :  { %6682 = vmatpush1.bf16.msra.mxu0 %v8197_v41  ;;  %v8365_v41 = vpack.c.bf16 %v3415_v32, %v3413_v8  ;;  %v3396_v32 = vld [vmem:[#allocation4 + $0x148] sm:$0xff] }
0x1ba7   :  { %6700 = vmatprep.subr.bf16.mxu0 %v8351_v10 }
0x1ba9   :  { %5910 = vmatmul.mubr.msk.f32.vlgmr.msra.gmra.mrb[16].mxu0 %vm92_vm0, %v3141_v39 }
0x1baa   :  { %6702 = vmatpush1.bf16.msra.mxu0 %v8354_v30  ;;  %3522 = vmatprep.mubr.f32.mxu0 %v7660_v0 }
0x1bab   :  { %6704 = vmatprep.subr.bf16.mxu0 %v8357_v18 }
0x1bae   :  { %6706 = vmatpush1.bf16.msra.mxu0 %v8361_v38 }
0x1baf   :  { %6708 = vmatprep.subr.bf16.mxu0 %v8365_v41 }
0x1bb2   :  { %6710 = vmatpush1.bf16.msra.mxu0 %v8368_v51 }
0x1bb3   :  { %6712 = vmatprep.subr.bf16.mxu0 %v8371_v1 }
0x1bb6   :  { %6714 = vmatpush1.bf16.msra.mxu0 %v8374_v55 }
0x1bb7   :  { %6732 = vmatprep.subr.bf16.mxu0 %v8351_v10 }
0x1c11   :  { %v8379_v56 = vpop.permute.xlu1 %3454 }
0x1c12   :  { %5917 = vmatmul.mubr.msk.f32.vlgmr.msra.gmra.mrb[24].mxu0 %vm92_vm0, %v8379_v56 }
0x1c13   :  { %6734 = vmatpush1.bf16.msra.mxu0 %v8354_v30  ;;  %3697 = vmatprep.mubr.f32.mxu0 %v7660_v0 }
0x1c14   :  { %6736 = vmatprep.subr.bf16.mxu0 %v8357_v18 }
0x1c17   :  { %6738 = vmatpush1.bf16.msra.mxu0 %v8361_v38 }
0x1c18   :  { %6740 = vmatprep.subr.bf16.mxu0 %v8365_v41 }
0x1c1b   :  { %6742 = vmatpush1.bf16.msra.mxu0 %v8368_v51 }
0x1c1c   :  { %6744 = vmatprep.subr.bf16.mxu0 %v8371_v1 }
0x1c1f   :  { %6746 = vmatpush1.bf16.msra.mxu0 %v8374_v55 }
0x1c20   :  { %6748 = vmatprep.subr.bf16.mxu0 %v8394_v40 }
0x1c7c   :  { %v3281_v59 = vpop.f32.mrb[16].mxu0 }
0x1c7d   :  { %v7125_v62 = vadd.f32 %v3281_v59, %v7961_v48  ;;  %v3283_v2 = vpop.f32.mrb[17].mxu0  ;;  %v5914_v48 = vld [vmem:[%s8864_s4 + $0x6] sm:$0x3]  ;;  %v8431_v59 = vpack.c.bf16 %v3397_v49, %v3395_v37 }
0x1c7e   :  { %v7126_v3 = vadd.f32 %v3283_v2, %v7966_v60  ;;  %v8402_v60 = vrot.slane %v5914_v48, %v7792_v28  ;;  %v8406_v26 = vrot.slane %v5914_v48, %v7801_v35  ;;  %v3399_v2 = vld [vmem:[#allocation4 + $0x160] sm:$0xff] }
0x1c7f   :  { %v5911_v61 = vmul.f32 -1.442695, %v7125_v62  ;;  %v8434_v62 = vpack.c.bf16 %v3402_v53, %v3400_v52 }
0x1c80   :  { %v5912_v16 = vmul.f32 -1.442695, %v7126_v3 }
0x1c81   :  { %7416 = vpow2.f32 %v5911_v61  ;;  %v3401_v61 = vld [vmem:[#allocation4 + $0x170] sm:$0xff] }
0x1c82   :  { %7418 = vtanh.f32 %v7126_v3  ;;  %v8437_v3 = vpack.c.bf16 %v3401_v61, %v3399_v2 }
0x1c8b   :  { %v7417_v19 = vpop.eup %7416 }
0x1c8c   :  { %v3294_v4 = vadd.f32 1.0, %v7417_v19  ;;  %v7419_v5 = vpop.eup %7418 }
0x1c8e   :  { %7420 = vrcp.f32 %v3294_v4 }
0x1c98   :  { %v7421_v7 = vpop.eup %7420 }
0x1c99   :  { %v3302_v20 = vmul.f32 %v7421_v7, %v7419_v5  ;;  %v3301_v39 = vmul.f32 %v7421_v7, %v8335_v33  ;;  %v3391_v33 = vld [vmem:[#allocation4 + $0x120] sm:$0xff] }
0x1c9a   :  { %v8424_v17 = vpack.c.bf16 %v3393_v44, %v3391_v33 }
0x1c9b   :  { %3304 = vrot.lane.b32.xlu0 %v3302_v20, %s7661_s21 }
0x1ce5   :  { %v3524_v6 = vpop.f32.mrb[24].mxu0 }
0x1ce6   :  { %v3525_v21 = vadd.f32 %v3524_v6, %v8402_v60  ;;  %v3526_v12 = vpop.f32.mrb[25].mxu0 }
0x1ce7   :  { %v8409_v47 = vadd.f32 %v3526_v12, %v8406_v26 }
0x1ce8   :  { %v5946_v25 = vmul.f32 -1.442695, %v3525_v21 }
0x1cea   :  { %7422 = vpow2.f32 %v5946_v25 }
0x1ceb   :  { %7424 = vtanh.f32 %v8409_v47 }
0x1cf4   :  { %v7423_v14 = vpop.eup %7422 }
0x1cf5   :  { %v4753_v15 = vadd.f32 1.0, %v7423_v14  ;;  %v7425_v28 = vpop.eup %7424 }
0x1cf7   :  { %7426 = vrcp.f32 %v4753_v15 }
0x1cf8   :  { %7428 = vpow2.f32 %v5912_v16 }
0x1d01   :  { %v7427_v22 = vpop.eup %7426 }
0x1d02   :  { %v8412_v23 = vmul.f32 %v7427_v22, %v7425_v28  ;;  %v7429_v29 = vpop.eup %7428 }
0x1d03   :  { %v3295_v31 = vadd.f32 1.0, %v7429_v29 }
0x1d05   :  { %7430 = vrcp.f32 %v3295_v31 }
0x1d0d   :  { %v3305_v35 = vpop.permute.xlu0 %3304 }
0x1d0e   :  { %v3307_v50 = vadd.f32 %v3305_v35, %v3301_v39 }
0x1d0f   :  { %v7431_v42 = vpop.eup %7430 }
0x1d10   :  { %7432 = vtanh.f32 %v3307_v50 }
0x1d1a   :  { %v7433_v27 = vpop.eup %7432 }
0x1d1b   :  { %v3309_v46 = vmul.f32 %v7433_v27, %v7431_v42 }
0x1d1d   :  { %3311 = vrot.lane.b32.xlu0 %v3309_v46, %s7661_s21 }
0x1d21   :  { %3616 = vrot.lane.b32.xlu0 %v8172_v54, %s7661_s21  ;;  %v8428_v54 = vpack.c.bf16 %v3398_v9, %v3396_v32 }
0x1d8f   :  { %v3312_v8 = vpop.permute.xlu0 %3311 }
0x1d90   :  { %5913 = vmatmul.mubr.msk.f32.vlgmr.msra.gmra.mrb[22].mxu1 %vm92_vm0, %v3312_v8 }
0x1d91   :  { %6718 = vmatpush1.bf16.msra.mxu1 %v8418_v63  ;;  %3593 = vmatprep.mubr.f32.mxu1 %v7660_v0 }
0x1d92   :  { %6720 = vmatprep.subr.bf16.mxu1 %v8420_v13 }
0x1d93   :  { %v3617_v25 = vpop.permute.xlu0 %3616 }
0x1d95   :  { %6722 = vmatpush1.bf16.msra.mxu1 %v8424_v17 }
0x1d96   :  { %6724 = vmatprep.subr.bf16.mxu1 %v8428_v54 }
0x1d99   :  { %6726 = vmatpush1.bf16.msra.mxu1 %v8431_v59 }
0x1d9a   :  { %6728 = vmatprep.subr.bf16.mxu1 %v8434_v62 }
0x1d9d   :  { %6730 = vmatpush1.bf16.msra.mxu1 %v8437_v3 }
0x1d9e   :  { %6764 = vmatprep.subr.bf16.mxu1 %v8351_v10 }
0x1da0   :  { %5918 = vmatmul.mubr.msk.f32.vlgmr.msra.gmra.mrb[16].mxu1 %vm92_vm0, %v8379_v56 }
0x1da1   :  { %6766 = vmatpush1.bf16.msra.mxu1 %v8354_v30  ;;  %3868 = vmatprep.mubr.f32.mxu1 %v7660_v0 }
0x1da2   :  { %6768 = vmatprep.subr.bf16.mxu1 %v8357_v18 }
0x1da5   :  { %6770 = vmatpush1.bf16.msra.mxu1 %v8361_v38 }
0x1da6   :  { %6772 = vmatprep.subr.bf16.mxu1 %v8365_v41 }
0x1da9   :  { %6774 = vmatpush1.bf16.msra.mxu1 %v8368_v51 }
0x1daa   :  { %6776 = vmatprep.subr.bf16.mxu1 %v8371_v1 }
0x1dad   :  { %6778 = vmatpush1.bf16.msra.mxu1 %v8374_v55 }
0x1dae   :  { %6780 = vmatprep.subr.bf16.mxu1 %v8394_v40 }
0x1e73   :  { %v3595_v19 = vpop.f32.mrb[16].mxu1 }
0x1e74   :  { %v7127_v56 = vadd.f32 %v3595_v19, %v8162_v36  ;;  %v3597_v4 = vpop.f32.mrb[17].mxu1 }
0x1e75   :  { %v7128_v7 = vadd.f32 %v3597_v4, %v8166_v45 }
0x1e76   :  { %v5919_v5 = vmul.f32 -1.442695, %v7127_v56 }
0x1e77   :  { %v5920_v21 = vmul.f32 -1.442695, %v7128_v7 }
0x1e78   :  { %7434 = vpow2.f32 %v5919_v5 }
0x1e79   :  { %7436 = vtanh.f32 %v7128_v7 }
0x1e82   :  { %v7435_v20 = vpop.eup %7434 }
0x1e83   :  { %v3608_v24 = vadd.f32 1.0, %v7435_v20  ;;  %v7437_v34 = vpop.eup %7436 }
0x1e85   :  { %7438 = vrcp.f32 %v3608_v24 }
0x1e86   :  { %7440 = vpow2.f32 %v5920_v21 }
0x1e8f   :  { %v7439_v48 = vpop.eup %7438 }
0x1e90   :  { %v3620_v6 = vmul.f32 %v7439_v48, %v7437_v34  ;;  %v7441_v12 = vpop.eup %7440  ;;  %v3619_v15 = vmul.f32 %v7439_v48, %v3617_v25 }
0x1e91   :  { %v3609_v14 = vadd.f32 1.0, %v7441_v12 }
0x1e92   :  { %3622 = vrot.lane.b32.xlu1 %v3620_v6, %s7661_s21 }
0x1e93   :  { %7442 = vrcp.f32 %v3609_v14 }
0x1e9d   :  { %v7443_v22 = vpop.eup %7442 }
0x1f04   :  { %v3623_v16 = vpop.permute.xlu1 %3622 }
0x1f05   :  { %v3625_v28 = vadd.f32 %v3623_v16, %v3619_v15 }
0x1f07   :  { %7444 = vtanh.f32 %v3625_v28 }
0x1f11   :  { %v7445_v29 = vpop.eup %7444 }
0x1f12   :  { %v3627_v31 = vmul.f32 %v7445_v29, %v7443_v22 }
0x1f14   :  { %3629 = vrot.lane.b32.xlu0 %v3627_v31, %s7661_s21 }
0x1f86   :  { %v3630_v39 = vpop.permute.xlu0 %3629 }
0x1f87   :  { %5921 = vmatmul.mubr.msk.f32.vlgmr.msra.gmra.mrb[26].mxu0 %vm92_vm0, %v3630_v39 }
0x1f88   :  { %6750 = vmatpush1.bf16.msra.mxu0 %v8418_v63  ;;  %3768 = vmatprep.mubr.f32.mxu0 %v7660_v0 }
0x1f89   :  { %6752 = vmatprep.subr.bf16.mxu0 %v8420_v13 }
0x1f8c   :  { %6754 = vmatpush1.bf16.msra.mxu0 %v8424_v17 }
0x1f8d   :  { %6756 = vmatprep.subr.bf16.mxu0 %v8428_v54 }
0x1f90   :  { %6758 = vmatpush1.bf16.msra.mxu0 %v8431_v59 }
0x1f91   :  { %6760 = vmatprep.subr.bf16.mxu0 %v8434_v62 }
0x1f94   :  { %6762 = vmatpush1.bf16.msra.mxu0 %v8437_v3 }
0x1f95   :  { %6796 = vmatprep.subr.bf16.mxu0 %v8351_v10 }
0x1f97   :  { %5922 = vmatmul.mubr.msk.f32.vlgmr.msra.gmra.mrb[18].mxu0 %vm92_vm0, %v3630_v39 }
0x1f98   :  { %6798 = vmatpush1.bf16.msra.mxu0 %v8354_v30  ;;  %4039 = vmatprep.mubr.f32.mxu0 %v7660_v0 }
0x1f99   :  { %6800 = vmatprep.subr.bf16.mxu0 %v8357_v18 }
0x1f9c   :  { %6802 = vmatpush1.bf16.msra.mxu0 %v8361_v38 }
0x1f9d   :  { %6804 = vmatprep.subr.bf16.mxu0 %v8365_v41 }
0x1fa0   :  { %6806 = vmatpush1.bf16.msra.mxu0 %v8368_v51 }
0x1fa1   :  { %6808 = vmatprep.subr.bf16.mxu0 %v8371_v1 }
0x1fa4   :  { %6810 = vmatpush1.bf16.msra.mxu0 %v8374_v55 }
0x1fa5   :  { %6812 = vmatprep.subr.bf16.mxu0 %v8394_v40 }
0x206a   :  { %v3770_v35 = vpop.f32.mrb[18].mxu0 }
0x206b   :  { %v7129_v50 = vadd.f32 %v3770_v35, %v8162_v36  ;;  %v3772_v42 = vpop.f32.mrb[19].mxu0 }
0x206c   :  { %v7130_v46 = vadd.f32 %v3772_v42, %v8166_v45 }
0x206d   :  { %v5923_v27 = vmul.f32 -1.442695, %v7129_v50 }
0x206e   :  { %v5924_v44 = vmul.f32 -1.442695, %v7130_v46 }
0x206f   :  { %7446 = vpow2.f32 %v5923_v27 }
0x2070   :  { %7448 = vtanh.f32 %v7130_v46 }
0x2079   :  { %v7447_v57 = vpop.eup %7446 }
0x207a   :  { %v3783_v43 = vadd.f32 1.0, %v7447_v57  ;;  %v7449_v58 = vpop.eup %7448 }
0x207c   :  { %7450 = vrcp.f32 %v3783_v43 }
0x207d   :  { %7452 = vpow2.f32 %v5924_v44 }
0x2086   :  { %v7451_v11 = vpop.eup %7450 }
0x2087   :  { %v3791_v33 = vmul.f32 %v7451_v11, %v7449_v58  ;;  %v7453_v8 = vpop.eup %7452  ;;  %v3790_v9 = vmul.f32 %v7451_v11, %v3625_v28 }
0x2088   :  { %v3784_v32 = vadd.f32 1.0, %v7453_v8 }
0x2089   :  { %3793 = vrot.lane.b32.xlu1 %v3791_v33, %s7661_s21 }
0x208a   :  { %7454 = vrcp.f32 %v3784_v32 }
0x2094   :  { %v7455_v52 = vpop.eup %7454 }
0x20fb   :  { %v3794_v37 = vpop.permute.xlu1 %3793 }
0x20fc   :  { %v3796_v49 = vadd.f32 %v3794_v37, %v3790_v9 }
0x20fe   :  { %7456 = vtanh.f32 %v3796_v49 }
0x2108   :  { %v7457_v53 = vpop.eup %7456 }
0x2109   :  { %v3798_v2 = vmul.f32 %v7457_v53, %v7455_v52 }
0x210b   :  { %3800 = vrot.lane.b32.xlu0 %v3798_v2, %s7661_s21 }
0x217d   :  { %v3801_v61 = vpop.permute.xlu0 %3800 }
0x217e   :  { %5925 = vmatmul.mubr.msk.f32.vlgmr.msra.gmra.mrb[24].mxu1 %vm92_vm0, %v3801_v61 }
0x217f   :  { %6782 = vmatpush1.bf16.msra.mxu1 %v8418_v63  ;;  %3939 = vmatprep.mubr.f32.mxu1 %v7660_v0 }
0x2180   :  { %6784 = vmatprep.subr.bf16.mxu1 %v8420_v13 }
0x2183   :  { %6786 = vmatpush1.bf16.msra.mxu1 %v8424_v17 }
0x2184   :  { %6788 = vmatprep.subr.bf16.mxu1 %v8428_v54 }
0x2187   :  { %6790 = vmatpush1.bf16.msra.mxu1 %v8431_v59 }
0x2188   :  { %6792 = vmatprep.subr.bf16.mxu1 %v8434_v62 }
0x218b   :  { %6794 = vmatpush1.bf16.msra.mxu1 %v8437_v3 }
0x218c   :  { %6828 = vmatprep.subr.bf16.mxu1 %v8351_v10 }
0x218e   :  { %5926 = vmatmul.mubr.msk.f32.vlgmr.msra.gmra.mrb[18].mxu1 %vm92_vm0, %v3801_v61 }
0x218f   :  { %6830 = vmatpush1.bf16.msra.mxu1 %v8354_v30  ;;  %4210 = vmatprep.mubr.f32.mxu1 %v7660_v0 }
0x2190   :  { %6832 = vmatprep.subr.bf16.mxu1 %v8357_v18 }
0x2193   :  { %6834 = vmatpush1.bf16.msra.mxu1 %v8361_v38 }
0x2194   :  { %6836 = vmatprep.subr.bf16.mxu1 %v8365_v41 }
0x2197   :  { %6838 = vmatpush1.bf16.msra.mxu1 %v8368_v51 }
0x2198   :  { %6840 = vmatprep.subr.bf16.mxu1 %v8371_v1 }
0x219b   :  { %6842 = vmatpush1.bf16.msra.mxu1 %v8374_v55 }
0x219c   :  { %6844 = vmatprep.subr.bf16.mxu1 %v8394_v40 }
0x2261   :  { %v3941_v19 = vpop.f32.mrb[18].mxu1 }
0x2262   :  { %v7131_v56 = vadd.f32 %v3941_v19, %v8162_v36  ;;  %v3943_v4 = vpop.f32.mrb[19].mxu1 }
0x2263   :  { %v7132_v7 = vadd.f32 %v3943_v4, %v8166_v45 }
0x2264   :  { %v5927_v5 = vmul.f32 -1.442695, %v7131_v56 }
0x2265   :  { %v5928_v21 = vmul.f32 -1.442695, %v7132_v7 }
0x2266   :  { %7458 = vpow2.f32 %v5927_v5 }
0x2267   :  { %7460 = vtanh.f32 %v7132_v7 }
0x2270   :  { %v7459_v20 = vpop.eup %7458 }
0x2271   :  { %v3954_v24 = vadd.f32 1.0, %v7459_v20  ;;  %v7461_v34 = vpop.eup %7460 }
0x2273   :  { %7462 = vrcp.f32 %v3954_v24 }
0x2274   :  { %7464 = vpow2.f32 %v5928_v21 }
0x227d   :  { %v7463_v48 = vpop.eup %7462 }
0x227e   :  { %v3962_v6 = vmul.f32 %v7463_v48, %v7461_v34  ;;  %v7465_v12 = vpop.eup %7464  ;;  %v3961_v14 = vmul.f32 %v7463_v48, %v3796_v49 }
0x227f   :  { %v3955_v25 = vadd.f32 1.0, %v7465_v12 }
0x2280   :  { %3964 = vrot.lane.b32.xlu1 %v3962_v6, %s7661_s21 }
0x2281   :  { %7466 = vrcp.f32 %v3955_v25 }
0x228b   :  { %v7467_v28 = vpop.eup %7466 }
0x22f2   :  { %v3965_v15 = vpop.permute.xlu1 %3964 }
0x22f3   :  { %v3967_v16 = vadd.f32 %v3965_v15, %v3961_v14 }
0x22f5   :  { %7468 = vtanh.f32 %v3967_v16 }
0x22ff   :  { %v7469_v22 = vpop.eup %7468 }
0x2300   :  { %v3969_v29 = vmul.f32 %v7469_v22, %v7467_v28 }
0x2302   :  { %3971 = vrot.lane.b32.xlu0 %v3969_v29, %s7661_s21 }
0x2374   :  { %v3972_v31 = vpop.permute.xlu0 %3971 }
0x2375   :  { %5929 = vmatmul.mubr.msk.f32.vlgmr.msra.gmra.mrb[28].mxu0 %vm92_vm0, %v3972_v31 }
0x2376   :  { %6814 = vmatpush1.bf16.msra.mxu0 %v8418_v63  ;;  %4110 = vmatprep.mubr.f32.mxu0 %v7660_v0 }
0x2377   :  { %6816 = vmatprep.subr.bf16.mxu0 %v8420_v13 }
0x237a   :  { %6818 = vmatpush1.bf16.msra.mxu0 %v8424_v17 }
0x237b   :  { %6820 = vmatprep.subr.bf16.mxu0 %v8428_v54 }
0x237e   :  { %6822 = vmatpush1.bf16.msra.mxu0 %v8431_v59 }
0x237f   :  { %6824 = vmatprep.subr.bf16.mxu0 %v8434_v62 }
0x2382   :  { %6826 = vmatpush1.bf16.msra.mxu0 %v8437_v3 }
0x2383   :  { %6860 = vmatprep.subr.bf16.mxu0 %v8351_v10 }
0x2385   :  { %5930 = vmatmul.mubr.msk.f32.vlgmr.msra.gmra.mrb[20].mxu0 %vm92_vm0, %v3972_v31 }
0x2386   :  { %6862 = vmatpush1.bf16.msra.mxu0 %v8354_v30  ;;  %4381 = vmatprep.mubr.f32.mxu0 %v7660_v0 }
0x2387   :  { %6864 = vmatprep.subr.bf16.mxu0 %v8357_v18 }
0x238a   :  { %6866 = vmatpush1.bf16.msra.mxu0 %v8361_v38 }
0x238b   :  { %6868 = vmatprep.subr.bf16.mxu0 %v8365_v41 }
0x238e   :  { %6870 = vmatpush1.bf16.msra.mxu0 %v8368_v51 }
0x238f   :  { %6872 = vmatprep.subr.bf16.mxu0 %v8371_v1 }
0x2392   :  { %6874 = vmatpush1.bf16.msra.mxu0 %v8374_v55 }
0x2393   :  { %6876 = vmatprep.subr.bf16.mxu0 %v8394_v40 }
0x2458   :  { %v4112_v39 = vpop.f32.mrb[20].mxu0 }
0x2459   :  { %v7133_v35 = vadd.f32 %v4112_v39, %v8162_v36  ;;  %v4114_v50 = vpop.f32.mrb[21].mxu0 }
0x245a   :  { %v7134_v27 = vadd.f32 %v4114_v50, %v8166_v45 }
0x245b   :  { %v5931_v42 = vmul.f32 -1.442695, %v7133_v35 }
0x245c   :  { %v5932_v33 = vmul.f32 -1.442695, %v7134_v27 }
0x245d   :  { %7470 = vpow2.f32 %v5931_v42 }
0x245e   :  { %7472 = vtanh.f32 %v7134_v27 }
0x2467   :  { %v7471_v46 = vpop.eup %7470 }
0x2468   :  { %v4125_v57 = vadd.f32 1.0, %v7471_v46  ;;  %v7473_v43 = vpop.eup %7472 }
0x246a   :  { %7474 = vrcp.f32 %v4125_v57 }
0x246b   :  { %7476 = vpow2.f32 %v5932_v33  ;;  %v5947_v33 = vmul.f32 -1.442695, %v8409_v47 }
0x2474   :  { %v7475_v58 = vpop.eup %7474 }
0x2475   :  { %v4133_v11 = vmul.f32 %v7475_v58, %v7473_v43  ;;  %v7477_v44 = vpop.eup %7476  ;;  %v4132_v32 = vmul.f32 %v7475_v58, %v3967_v16 }
0x2476   :  { %v4126_v8 = vadd.f32 1.0, %v7477_v44 }
0x2477   :  { %4135 = vrot.lane.b32.xlu1 %v4133_v11, %s7661_s21 }
0x2478   :  { %7478 = vrcp.f32 %v4126_v8 }
0x2482   :  { %v7479_v49 = vpop.eup %7478 }
0x24e9   :  { %v4136_v9 = vpop.permute.xlu1 %4135 }
0x24ea   :  { %v4138_v37 = vadd.f32 %v4136_v9, %v4132_v32 }
0x24ec   :  { %7480 = vtanh.f32 %v4138_v37 }
0x24f6   :  { %v7481_v52 = vpop.eup %7480 }
0x24f7   :  { %v4140_v53 = vmul.f32 %v7481_v52, %v7479_v49 }
0x24f9   :  { %4142 = vrot.lane.b32.xlu0 %v4140_v53, %s7661_s21 }
0x256b   :  { %v4143_v2 = vpop.permute.xlu0 %4142 }
0x256c   :  { %5933 = vmatmul.mubr.msk.f32.vlgmr.msra.gmra.mrb[26].mxu1 %vm92_vm0, %v4143_v2 }
0x256d   :  { %6846 = vmatpush1.bf16.msra.mxu1 %v8418_v63  ;;  %4281 = vmatprep.mubr.f32.mxu1 %v7660_v0 }
0x256e   :  { %6848 = vmatprep.subr.bf16.mxu1 %v8420_v13 }
0x2571   :  { %6850 = vmatpush1.bf16.msra.mxu1 %v8424_v17 }
0x2572   :  { %6852 = vmatprep.subr.bf16.mxu1 %v8428_v54 }
0x2575   :  { %6854 = vmatpush1.bf16.msra.mxu1 %v8431_v59 }
0x2576   :  { %6856 = vmatprep.subr.bf16.mxu1 %v8434_v62 }
0x2579   :  { %6858 = vmatpush1.bf16.msra.mxu1 %v8437_v3 }
0x257a   :  { %6892 = vmatprep.subr.bf16.mxu1 %v8351_v10 }
0x257c   :  { %5934 = vmatmul.mubr.msk.f32.vlgmr.msra.gmra.mrb[20].mxu1 %vm92_vm0, %v4143_v2 }
0x257d   :  { %6894 = vmatpush1.bf16.msra.mxu1 %v8354_v30  ;;  %4552 = vmatprep.mubr.f32.mxu1 %v7660_v0 }
0x257e   :  { %6896 = vmatprep.subr.bf16.mxu1 %v8357_v18 }
0x2581   :  { %6898 = vmatpush1.bf16.msra.mxu1 %v8361_v38 }
0x2582   :  { %6900 = vmatprep.subr.bf16.mxu1 %v8365_v41 }
0x2585   :  { %6902 = vmatpush1.bf16.msra.mxu1 %v8368_v51 }
0x2586   :  { %6904 = vmatprep.subr.bf16.mxu1 %v8371_v1 }
0x2589   :  { %6906 = vmatpush1.bf16.msra.mxu1 %v8374_v55 }
0x258a   :  { %6908 = vmatprep.subr.bf16.mxu1 %v8394_v40 }
0x264f   :  { %v4283_v61 = vpop.f32.mrb[20].mxu1 }
0x2650   :  { %v7135_v19 = vadd.f32 %v4283_v61, %v8162_v36  ;;  %v4285_v56 = vpop.f32.mrb[21].mxu1  ;;  %v4734_v61 = vld [vmem:[#allocation4 + $0x198] sm:$0xff] }
0x2651   :  { %v7136_v5 = vadd.f32 %v4285_v56, %v8166_v45 }
0x2652   :  { %v5935_v4 = vmul.f32 -1.442695, %v7135_v19 }
0x2653   :  { %v5936_v6 = vmul.f32 -1.442695, %v7136_v5 }
0x2654   :  { %7482 = vpow2.f32 %v5935_v4 }
0x2655   :  { %7484 = vtanh.f32 %v7136_v5 }
0x265e   :  { %v7483_v7 = vpop.eup %7482 }
0x265f   :  { %v4296_v20 = vadd.f32 1.0, %v7483_v7  ;;  %v7485_v24 = vpop.eup %7484  ;;  %v4731_v7 = vld [vmem:[#allocation4 + $0x180] sm:$0xff] }
0x2661   :  { %7486 = vrcp.f32 %v4296_v20  ;;  %v4733_v20 = vld [vmem:[#allocation4 + $0x190] sm:$0xff] }
0x2662   :  { %7488 = vpow2.f32 %v5936_v6  ;;  %v4738_v6 = vld [vmem:[#allocation4 + $0x1b8] sm:$0xff] }
0x266b   :  { %v7487_v34 = vpop.eup %7486 }
0x266c   :  { %v4304_v48 = vmul.f32 %v7487_v34, %v7485_v24  ;;  %v7489_v40 = vpop.eup %7488  ;;  %v4303_v12 = vmul.f32 %v7487_v34, %v4138_v37  ;;  %v8598_v34 = vpack.c.bf16 %v4733_v20, %v4731_v7 }
0x266d   :  { %v4297_v21 = vadd.f32 1.0, %v7489_v40 }
0x266e   :  { %4306 = vrot.lane.b32.xlu1 %v4304_v48, %s7661_s21  ;;  %v4736_v48 = vld [vmem:[#allocation4 + $0x1a8] sm:$0xff] }
0x266f   :  { %7490 = vrcp.f32 %v4297_v21  ;;  %v8601_v40 = vpack.c.bf16 %v4738_v6, %v4736_v48  ;;  %v4735_v21 = vld [vmem:[#allocation4 + $0x1a0] sm:$0xff] }
0x2679   :  { %v7491_v15 = vpop.eup %7490 }
0x26e0   :  { %v4307_v25 = vpop.permute.xlu1 %4306 }
0x26e1   :  { %v4309_v14 = vadd.f32 %v4307_v25, %v4303_v12  ;;  %v4737_v12 = vld [vmem:[#allocation4 + $0x1b0] sm:$0xff] }
0x26e2   :  { %v8603_v25 = vpack.c.bf16 %v4737_v12, %v4735_v21 }
0x26e3   :  { %7492 = vtanh.f32 %v4309_v14 }
0x26ed   :  { %v7493_v16 = vpop.eup %7492 }
0x26ee   :  { %v4311_v28 = vmul.f32 %v7493_v16, %v7491_v15  ;;  %v4742_v15 = vld [vmem:[#allocation4 + $0x1d8] sm:$0xff] }
0x26f0   :  { %4313 = vrot.lane.b32.xlu0 %v4311_v28, %s7661_s21  ;;  %v4739_v28 = vld [vmem:[#allocation4 + $0x1c0] sm:$0xff] }
0x2762   :  { %v4314_v22 = vpop.permute.xlu0 %4313 }
0x2763   :  { %5937 = vmatmul.mubr.msk.f32.vlgmr.msra.gmra.mrb[30].mxu0 %vm92_vm0, %v4314_v22 }
0x2764   :  { %6878 = vmatpush1.bf16.msra.mxu0 %v8418_v63  ;;  %4452 = vmatprep.mubr.f32.mxu0 %v7660_v0 }
0x2765   :  { %6880 = vmatprep.subr.bf16.mxu0 %v8420_v13 }
0x2768   :  { %6882 = vmatpush1.bf16.msra.mxu0 %v8424_v17 }
0x2769   :  { %6884 = vmatprep.subr.bf16.mxu0 %v8428_v54 }
0x276c   :  { %6886 = vmatpush1.bf16.msra.mxu0 %v8431_v59 }
0x276d   :  { %6888 = vmatprep.subr.bf16.mxu0 %v8434_v62 }
0x2770   :  { %6890 = vmatpush1.bf16.msra.mxu0 %v8437_v3 }
0x2771   :  { %6924 = vmatprep.subr.bf16.mxu0 %v8351_v10 }
0x2773   :  { %5938 = vmatmul.mubr.msk.f32.vlgmr.msra.gmra.mrb[22].mxu0 %vm92_vm0, %v4314_v22  ;;  %v4741_v22 = vld [vmem:[#allocation4 + $0x1d0] sm:$0xff] }
0x2774   :  { %6926 = vmatpush1.bf16.msra.mxu0 %v8354_v30  ;;  %4723 = vmatprep.mubr.f32.mxu0 %v7660_v0 }
0x2775   :  { %6928 = vmatprep.subr.bf16.mxu0 %v8357_v18 }
0x2778   :  { %6930 = vmatpush1.bf16.msra.mxu0 %v8361_v38 }
0x2779   :  { %6932 = vmatprep.subr.bf16.mxu0 %v8365_v41 }
0x277c   :  { %6934 = vmatpush1.bf16.msra.mxu0 %v8368_v51 }
0x277d   :  { %6936 = vmatprep.subr.bf16.mxu0 %v8371_v1 }
0x2780   :  { %6938 = vmatpush1.bf16.msra.mxu0 %v8374_v55 }
0x2846   :  { %v4454_v29 = vpop.f32.mrb[22].mxu0 }
0x2847   :  { %v7137_v10 = vadd.f32 %v4454_v29, %v8162_v36  ;;  %v4456_v31 = vpop.f32.mrb[23].mxu0  ;;  %v8609_v29 = vpack.c.bf16 %v4741_v22, %v4739_v28 }
0x2848   :  { %v7138_v30 = vadd.f32 %v4456_v31, %v8166_v45  ;;  %v4744_v31 = vld [vmem:[#allocation4 + $0x1e8] sm:$0xff] }
0x2849   :  { %v5939_v39 = vmul.f32 -1.442695, %v7137_v10 }
0x284a   :  { %v5940_v51 = vmul.f32 -1.442695, %v7138_v30 }
0x284b   :  { %7494 = vpow2.f32 %v5939_v39  ;;  %v4746_v39 = vld [vmem:[#allocation4 + $0x1f8] sm:$0xff] }
0x284c   :  { %7496 = vtanh.f32 %v7138_v30 }
0x2855   :  { %v7495_v35 = vpop.eup %7494 }
0x2856   :  { %v4467_v18 = vadd.f32 1.0, %v7495_v35  ;;  %v7497_v38 = vpop.eup %7496  ;;  %v8613_v35 = vpack.c.bf16 %v4746_v39, %v4744_v31 }
0x2858   :  { %7498 = vrcp.f32 %v4467_v18  ;;  %v4743_v18 = vld [vmem:[#allocation4 + $0x1e0] sm:$0xff] }
0x2859   :  { %7500 = vpow2.f32 %v5940_v51 }
0x2862   :  { %v7499_v41 = vpop.eup %7498 }
0x2863   :  { %v4475_v50 = vmul.f32 %v7499_v41, %v7497_v38  ;;  %v7501_v1 = vpop.eup %7500  ;;  %v4474_v42 = vmul.f32 %v7499_v41, %v4309_v14  ;;  %v4740_v14 = vld [vmem:[#allocation4 + $0x1c8] sm:$0xff]  ;;  %v4745_v38 = vld [vmem:[#allocation4 + $0x1f0] sm:$0xff] }
0x2864   :  { %v4468_v55 = vadd.f32 1.0, %v7501_v1  ;;  %v8607_v16 = vpack.c.bf16 %v4742_v15, %v4740_v14 }
0x2865   :  { %4477 = vrot.lane.b32.xlu1 %v4475_v50, %s7661_s21  ;;  %v8615_v50 = vpack.c.bf16 %v4745_v38, %v4743_v18 }
0x2866   :  { %7502 = vrcp.f32 %v4468_v55 }
0x2870   :  { %v7503_v57 = vpop.eup %7502 }
0x28d7   :  { %v4478_v27 = vpop.permute.xlu1 %4477 }
0x28d8   :  { %v4480_v46 = vadd.f32 %v4478_v27, %v4474_v42 }
0x28da   :  { %7504 = vtanh.f32 %v4480_v46 }
0x28db   :  { %7506 = vtanh.f32 %v8412_v23 }
0x28dc   :  { %7508 = vpow2.f32 %v5947_v33 }
0x28e4   :  { %v7505_v43 = vpop.eup %7504 }
0x28e5   :  { %v4482_v58 = vmul.f32 %v7505_v43, %v7503_v57  ;;  %v7507_v11 = vpop.eup %7506 }
0x28e6   :  { %v7509_v44 = vpop.eup %7508 }
0x28e7   :  { %4484 = vrot.lane.b32.xlu0 %v4482_v58, %s7661_s21  ;;  %v4754_v8 = vadd.f32 1.0, %v7509_v44 }
0x28e9   :  { %7510 = vrcp.f32 %v4754_v8 }
0x28eb   :  { %4763 = vrot.lane.b32.xlu0 %v7507_v11, %s7661_s21 }
0x28f3   :  { %v7511_v9 = vpop.eup %7510 }
0x2959   :  { %v4485_v32 = vpop.permute.xlu0 %4484 }
0x295a   :  { %5941 = vmatmul.mubr.msk.f32.vlgmr.msra.gmra.mrb[28].mxu1 %vm92_vm0, %v4485_v32 }
0x295b   :  { %6910 = vmatpush1.bf16.msra.mxu1 %v8418_v63  ;;  %4623 = vmatprep.mubr.f32.mxu1 %v7660_v0 }
0x295c   :  { %6912 = vmatprep.subr.bf16.mxu1 %v8420_v13 }
0x295d   :  { %v4764_v37 = vpop.permute.xlu0 %4763 }
0x295e   :  { %v4766_v49 = vmul.f32 %v7511_v9, %v4764_v37 }
0x295f   :  { %6914 = vmatpush1.bf16.msra.mxu1 %v8424_v17 }
0x2960   :  { %4768 = vrot.lane.b32.xlu0 %v4766_v49, %s7661_s21  ;;  %6916 = vmatprep.subr.bf16.mxu1 %v8428_v54 }
0x2963   :  { %6918 = vmatpush1.bf16.msra.mxu1 %v8431_v59 }
0x2964   :  { %6920 = vmatprep.subr.bf16.mxu1 %v8434_v62 }
0x2967   :  { %6922 = vmatpush1.bf16.msra.mxu1 %v8437_v3  ;;  %v4732_v3 = vld [vmem:[#allocation4 + $0x188] sm:$0xff] }
0x2968   :  { %v8594_v19 = vpack.c.bf16 %v4734_v61, %v4732_v3 }
0x296a   :  { %5942 = vmatmul.mubr.msk.f32.vlgmr.msra.gmra.mrb[22].mxu1 %vm92_vm0, %v4485_v32  ;;  %6940 = vmatprep.subr.bf16.mxu0 %v8594_v19 }
0x296b   :  { %4940 = vmatprep.mubr.f32.mxu1 %v7660_v0  ;;  %6956 = vmatprep.subr.bf16.mxu1 %v8594_v19 }
0x296c   :  { %6958 = vmatpush1.bf16.msra.mxu1 %v8598_v34 }
0x296d   :  { %6960 = vmatprep.subr.bf16.mxu1 %v8601_v40 }
0x2970   :  { %6962 = vmatpush1.bf16.msra.mxu1 %v8603_v25 }
0x2971   :  { %6964 = vmatprep.subr.bf16.mxu1 %v8607_v16 }
0x2974   :  { %6966 = vmatpush1.bf16.msra.mxu1 %v8609_v29 }
0x2975   :  { %6968 = vmatprep.subr.bf16.mxu1 %v8613_v35 }
0x2978   :  { %6970 = vmatpush1.bf16.msra.mxu1 %v8615_v50 }
0x2979   :  { %6988 = vmatprep.subr.bf16.mxu1 %v8594_v19 }
0x2a3d   :  { %v4625_v47 = vpop.f32.mrb[22].mxu1 }
0x2a3e   :  { %v7139_v63 = vadd.f32 %v4625_v47, %v8162_v36  ;;  %v4627_v13 = vpop.f32.mrb[23].mxu1 }
0x2a3f   :  { %v7140_v17 = vadd.f32 %v4627_v13, %v8166_v45 }
0x2a40   :  { %v5943_v52 = vmul.f32 -1.442695, %v7139_v63 }
0x2a41   :  { %v5944_v36 = vmul.f32 -1.442695, %v7140_v17 }
0x2a42   :  { %7512 = vpow2.f32 %v5943_v52 }
0x2a43   :  { %7514 = vtanh.f32 %v7140_v17 }
0x2a4c   :  { %v7513_v53 = vpop.eup %7512 }
0x2a4d   :  { %v4638_v54 = vadd.f32 1.0, %v7513_v53  ;;  %v7515_v59 = vpop.eup %7514 }
0x2a4f   :  { %7516 = vrcp.f32 %v4638_v54 }
0x2a50   :  { %7518 = vpow2.f32 %v5944_v36 }
0x2a59   :  { %v7517_v62 = vpop.eup %7516 }
0x2a5a   :  { %v4646_v2 = vmul.f32 %v7517_v62, %v7515_v59  ;;  %v7519_v45 = vpop.eup %7518  ;;  %v4645_v4 = vmul.f32 %v7517_v62, %v4480_v46 }
0x2a5b   :  { %v4639_v56 = vadd.f32 1.0, %v7519_v45 }
0x2a5c   :  { %4648 = vrot.lane.b32.xlu1 %v4646_v2, %s7661_s21 }
0x2a5d   :  { %7520 = vrcp.f32 %v4639_v56 }
0x2a67   :  { %v7521_v10 = vpop.eup %7520 }
0x2ace   :  { %v4649_v5 = vpop.permute.xlu1 %4648 }
0x2acf   :  { %v4651_v24 = vadd.f32 %v4649_v5, %v4645_v4 }
0x2ad1   :  { %7522 = vtanh.f32 %v4651_v24 }
0x2adb   :  { %v7523_v30 = vpop.eup %7522 }
0x2adc   :  { %v4653_v41 = vmul.f32 %v7523_v30, %v7521_v10 }
0x2ade   :  { %4655 = vrot.lane.b32.xlu1 %v4653_v41, %s7661_s21 }
0x2ae2   :  { %4859 = vrot.lane.b32.xlu1 %v8412_v23, %s7661_s21  ;;  %v4769_v23 = vpop.permute.xlu0 %4768 }
0x2b50   :  { %v4656_v51 = vpop.permute.xlu1 %4655 }
0x2b51   :  { %5945 = vmatmul.mubr.msk.f32.vlgmr.msra.gmra.mrb[32].mxu0 %vm92_vm0, %v4656_v51 }
0x2b52   :  { %6942 = vmatpush1.bf16.msra.mxu0 %v8598_v34  ;;  %4836 = vmatprep.mubr.f32.mxu0 %v7660_v0 }
0x2b53   :  { %6944 = vmatprep.subr.bf16.mxu0 %v8601_v40 }
0x2b54   :  { %v4860_v32 = vpop.permute.xlu1 %4859 }
0x2b56   :  { %6946 = vmatpush1.bf16.msra.mxu0 %v8603_v25 }
0x2b57   :  { %6948 = vmatprep.subr.bf16.mxu0 %v8607_v16 }
0x2b5a   :  { %6950 = vmatpush1.bf16.msra.mxu0 %v8609_v29 }
0x2b5b   :  { %6952 = vmatprep.subr.bf16.mxu0 %v8613_v35 }
0x2b5e   :  { %6954 = vmatpush1.bf16.msra.mxu0 %v8615_v50 }
0x2b5f   :  { %6972 = vmatprep.subr.bf16.mxu0 %v8594_v19 }
0x2b61   :  { %5948 = vmatmul.mubr.msk.f32.vlgmr.msra.gmra.mrb[26].mxu0 %vm92_vm0, %v4769_v23 }
0x2b62   :  { %6974 = vmatpush1.bf16.msra.mxu0 %v8598_v34  ;;  %5040 = vmatprep.mubr.f32.mxu0 %v7660_v0 }
0x2b63   :  { %6976 = vmatprep.subr.bf16.mxu0 %v8601_v40 }
0x2b66   :  { %6978 = vmatpush1.bf16.msra.mxu0 %v8603_v25 }
0x2b67   :  { %6980 = vmatprep.subr.bf16.mxu0 %v8607_v16 }
0x2b6a   :  { %6982 = vmatpush1.bf16.msra.mxu0 %v8609_v29 }
0x2b6b   :  { %6984 = vmatprep.subr.bf16.mxu0 %v8613_v35 }
0x2b6e   :  { %6986 = vmatpush1.bf16.msra.mxu0 %v8615_v50 }
0x2b6f   :  { %7004 = vmatprep.subr.bf16.mxu0 %v8594_v19 }
0x2c34   :  { %v4838_v1 = vpop.f32.mrb[26].mxu0 }
0x2c35   :  { %v7141_v55 = vadd.f32 %v4838_v1, %v8402_v60  ;;  %v4840_v42 = vpop.f32.mrb[27].mxu0 }
0x2c36   :  { %v7142_v46 = vadd.f32 %v4840_v42, %v8406_v26 }
0x2c37   :  { %v5949_v27 = vmul.f32 -1.442695, %v7141_v55 }
0x2c38   :  { %v5950_v44 = vmul.f32 -1.442695, %v7142_v46 }
0x2c39   :  { %7524 = vpow2.f32 %v5949_v27 }
0x2c3a   :  { %7526 = vtanh.f32 %v7142_v46 }
0x2c43   :  { %v7525_v57 = vpop.eup %7524 }
0x2c44   :  { %v4851_v43 = vadd.f32 1.0, %v7525_v57  ;;  %v7527_v58 = vpop.eup %7526 }
0x2c46   :  { %7528 = vrcp.f32 %v4851_v43 }
0x2c47   :  { %7530 = vpow2.f32 %v5950_v44 }
0x2c50   :  { %v7529_v11 = vpop.eup %7528 }
0x2c51   :  { %v4863_v33 = vmul.f32 %v7529_v11, %v7527_v58  ;;  %v7531_v8 = vpop.eup %7530  ;;  %v4862_v37 = vmul.f32 %v7529_v11, %v4860_v32 }
0x2c52   :  { %v4852_v9 = vadd.f32 1.0, %v7531_v8 }
0x2c53   :  { %4865 = vrot.lane.b32.xlu0 %v4863_v33, %s7661_s21 }
0x2c54   :  { %7532 = vrcp.f32 %v4852_v9 }
0x2c5e   :  { %v7533_v63 = vpop.eup %7532 }
0x2cc5   :  { %v4866_v49 = vpop.permute.xlu0 %4865 }
0x2cc6   :  { %v4868_v47 = vadd.f32 %v4866_v49, %v4862_v37 }
0x2cc8   :  { %7534 = vtanh.f32 %v4868_v47 }
0x2cd2   :  { %v7535_v13 = vpop.eup %7534 }
0x2cd3   :  { %v4870_v52 = vmul.f32 %v7535_v13, %v7533_v63 }
0x2cd5   :  { %4872 = vrot.lane.b32.xlu1 %v4870_v52, %s7661_s21 }
0x2d47   :  { %v4873_v17 = vpop.permute.xlu1 %4872 }
0x2d48   :  { %5951 = vmatmul.mubr.msk.f32.vlgmr.msra.gmra.mrb[24].mxu1 %vm92_vm0, %v4873_v17 }
0x2d49   :  { %6990 = vmatpush1.bf16.msra.mxu1 %v8598_v34  ;;  %5140 = vmatprep.mubr.f32.mxu1 %v7660_v0 }
0x2d4a   :  { %6992 = vmatprep.subr.bf16.mxu1 %v8601_v40 }
0x2d4d   :  { %6994 = vmatpush1.bf16.msra.mxu1 %v8603_v25 }
0x2d4e   :  { %6996 = vmatprep.subr.bf16.mxu1 %v8607_v16 }
0x2d51   :  { %6998 = vmatpush1.bf16.msra.mxu1 %v8609_v29 }
0x2d52   :  { %7000 = vmatprep.subr.bf16.mxu1 %v8613_v35 }
0x2d55   :  { %7002 = vmatpush1.bf16.msra.mxu1 %v8615_v50 }
0x2d56   :  { %7020 = vmatprep.subr.bf16.mxu1 %v8594_v19 }
0x2e1b   :  { %v4942_v53 = vpop.f32.mrb[24].mxu1 }
0x2e1c   :  { %v7143_v54 = vadd.f32 %v4942_v53, %v8402_v60  ;;  %v4944_v59 = vpop.f32.mrb[25].mxu1 }
0x2e1d   :  { %v7144_v2 = vadd.f32 %v4944_v59, %v8406_v26 }
0x2e1e   :  { %v5952_v62 = vmul.f32 -1.442695, %v7143_v54 }
0x2e1f   :  { %v5953_v4 = vmul.f32 -1.442695, %v7144_v2 }
0x2e20   :  { %7536 = vpow2.f32 %v5952_v62 }
0x2e21   :  { %7538 = vtanh.f32 %v7144_v2 }
0x2e2a   :  { %v7537_v3 = vpop.eup %7536 }
0x2e2b   :  { %v4955_v61 = vadd.f32 1.0, %v7537_v3  ;;  %v7539_v36 = vpop.eup %7538 }
0x2e2d   :  { %7540 = vrcp.f32 %v4955_v61 }
0x2e2e   :  { %7542 = vpow2.f32 %v5953_v4 }
0x2e37   :  { %v7541_v45 = vpop.eup %7540 }
0x2e38   :  { %v4963_v56 = vmul.f32 %v7541_v45, %v7539_v36  ;;  %v7543_v5 = vpop.eup %7542  ;;  %v4962_v20 = vmul.f32 %v7541_v45, %v4868_v47 }
0x2e39   :  { %v4956_v7 = vadd.f32 1.0, %v7543_v5 }
0x2e3a   :  { %4965 = vrot.lane.b32.xlu0 %v4963_v56, %s7661_s21 }
0x2e3b   :  { %7544 = vrcp.f32 %v4956_v7 }
0x2e45   :  { %v7545_v6 = vpop.eup %7544 }
0x2eac   :  { %v4966_v24 = vpop.permute.xlu0 %4965 }
0x2ead   :  { %v4968_v48 = vadd.f32 %v4966_v24, %v4962_v20 }
0x2eaf   :  { %7546 = vtanh.f32 %v4968_v48 }
0x2eb9   :  { %v7547_v21 = vpop.eup %7546 }
0x2eba   :  { %v4970_v12 = vmul.f32 %v7547_v21, %v7545_v6 }
0x2ebc   :  { %4972 = vrot.lane.b32.xlu1 %v4970_v12, %s7661_s21 }
0x2f2e   :  { %v4973_v14 = vpop.permute.xlu1 %4972 }
0x2f2f   :  { %5954 = vmatmul.mubr.msk.f32.vlgmr.msra.gmra.mrb[28].mxu0 %vm92_vm0, %v4973_v14 }
0x2f30   :  { %7006 = vmatpush1.bf16.msra.mxu0 %v8598_v34  ;;  %5240 = vmatprep.mubr.f32.mxu0 %v7660_v0 }
0x2f31   :  { %7008 = vmatprep.subr.bf16.mxu0 %v8601_v40 }
0x2f34   :  { %7010 = vmatpush1.bf16.msra.mxu0 %v8603_v25 }
0x2f35   :  { %7012 = vmatprep.subr.bf16.mxu0 %v8607_v16 }
0x2f38   :  { %7014 = vmatpush1.bf16.msra.mxu0 %v8609_v29 }
0x2f39   :  { %7016 = vmatprep.subr.bf16.mxu0 %v8613_v35 }
0x2f3c   :  { %7018 = vmatpush1.bf16.msra.mxu0 %v8615_v50 }
0x2f3d   :  { %7036 = vmatprep.subr.bf16.mxu0 %v8594_v19 }
0x3002   :  { %v5042_v15 = vpop.f32.mrb[28].mxu0 }
0x3003   :  { %v7145_v28 = vadd.f32 %v5042_v15, %v8402_v60  ;;  %v5044_v22 = vpop.f32.mrb[29].mxu0 }
0x3004   :  { %v7146_v31 = vadd.f32 %v5044_v22, %v8406_v26 }
0x3005   :  { %v5955_v10 = vmul.f32 -1.442695, %v7145_v28 }
0x3006   :  { %v5956_v51 = vmul.f32 -1.442695, %v7146_v31 }
0x3007   :  { %7548 = vpow2.f32 %v5955_v10 }
0x3008   :  { %7550 = vtanh.f32 %v7146_v31 }
0x3011   :  { %v7549_v39 = vpop.eup %7548 }
0x3012   :  { %v5055_v30 = vadd.f32 1.0, %v7549_v39  ;;  %v7551_v18 = vpop.eup %7550 }
0x3014   :  { %7552 = vrcp.f32 %v5055_v30 }
0x3015   :  { %7554 = vpow2.f32 %v5956_v51 }
0x301e   :  { %v7553_v38 = vpop.eup %7552 }
0x301f   :  { %v5063_v41 = vmul.f32 %v7553_v38, %v7551_v18  ;;  %v7555_v19 = vpop.eup %7554  ;;  %v5062_v1 = vmul.f32 %v7553_v38, %v4968_v48 }
0x3020   :  { %v5056_v23 = vadd.f32 1.0, %v7555_v19 }
0x3021   :  { %5065 = vrot.lane.b32.xlu0 %v5063_v41, %s7661_s21 }
0x3022   :  { %7556 = vrcp.f32 %v5056_v23 }
0x302c   :  { %v7557_v27 = vpop.eup %7556 }
0x3093   :  { %v5066_v55 = vpop.permute.xlu0 %5065 }
0x3094   :  { %v5068_v42 = vadd.f32 %v5066_v55, %v5062_v1 }
0x3096   :  { %7558 = vtanh.f32 %v5068_v42 }
0x30a0   :  { %v7559_v46 = vpop.eup %7558 }
0x30a1   :  { %v5070_v57 = vmul.f32 %v7559_v46, %v7557_v27  ;;  %v5475_v27 = vld [vmem:[%s8861_s1] sm:$0x3] }
0x30a3   :  { %5072 = vrot.lane.b32.xlu1 %v5070_v57, %s7661_s21 }
0x3115   :  { %v5073_v43 = vpop.permute.xlu1 %5072 }
0x3116   :  { %5957 = vmatmul.mubr.msk.f32.vlgmr.msra.gmra.mrb[26].mxu1 %vm92_vm0, %v5073_v43 }
0x3117   :  { %7022 = vmatpush1.bf16.msra.mxu1 %v8598_v34  ;;  %5340 = vmatprep.mubr.f32.mxu1 %v7660_v0 }
0x3118   :  { %7024 = vmatprep.subr.bf16.mxu1 %v8601_v40 }
0x311b   :  { %7026 = vmatpush1.bf16.msra.mxu1 %v8603_v25 }
0x311c   :  { %7028 = vmatprep.subr.bf16.mxu1 %v8607_v16 }
0x311f   :  { %7030 = vmatpush1.bf16.msra.mxu1 %v8609_v29 }
0x3120   :  { %7032 = vmatprep.subr.bf16.mxu1 %v8613_v35 }
0x3123   :  { %7034 = vmatpush1.bf16.msra.mxu1 %v8615_v50 }
0x3124   :  { %6013 = vmatprep.subr.mxu1 %v7660_v0 }
0x31e9   :  { %v5142_v58 = vpop.f32.mrb[26].mxu1 }
0x31ea   :  { %v7147_v11 = vadd.f32 %v5142_v58, %v8402_v60  ;;  %v5144_v33 = vpop.f32.mrb[27].mxu1 }
0x31eb   :  { %v7148_v8 = vadd.f32 %v5144_v33, %v8406_v26 }
0x31ec   :  { %v5958_v44 = vmul.f32 -1.442695, %v7147_v11 }
0x31ed   :  { %v5959_v63 = vmul.f32 -1.442695, %v7148_v8 }
0x31ee   :  { %7560 = vpow2.f32 %v5958_v44 }
0x31ef   :  { %7562 = vtanh.f32 %v7148_v8 }
0x31f8   :  { %v7561_v32 = vpop.eup %7560 }
0x31f9   :  { %v5155_v9 = vadd.f32 1.0, %v7561_v32  ;;  %v7563_v37 = vpop.eup %7562 }
0x31fb   :  { %7564 = vrcp.f32 %v5155_v9 }
0x31fc   :  { %7566 = vpow2.f32 %v5959_v63 }
0x3205   :  { %v7565_v49 = vpop.eup %7564 }
0x3206   :  { %v5163_v47 = vmul.f32 %v7565_v49, %v7563_v37  ;;  %v7567_v13 = vpop.eup %7566  ;;  %v5162_v17 = vmul.f32 %v7565_v49, %v5068_v42  ;;  %v5476_v42 = vld [vmem:[%s8865_s5] sm:$0xff] }
0x3207   :  { %v5156_v52 = vadd.f32 1.0, %v7567_v13 }
0x3208   :  { %5165 = vrot.lane.b32.xlu0 %v5163_v47, %s7661_s21 }
0x3209   :  { %7568 = vrcp.f32 %v5156_v52 }
0x3213   :  { %v7569_v59 = vpop.eup %7568 }
0x327a   :  { %v5166_v53 = vpop.permute.xlu0 %5165 }
0x327b   :  { %v5168_v54 = vadd.f32 %v5166_v53, %v5162_v17  ;;  %v5566_v17 = vld [vmem:[%s8866_s6 + $0x8] sm:$0xff]  ;;  %v7663_v53 = vmov 0.0|0.0  }
0x327d   :  { %7570 = vtanh.f32 %v5168_v54 }
0x3287   :  { %v7571_v62 = vpop.eup %7570 }
0x3288   :  { %v5170_v2 = vmul.f32 %v7571_v62, %v7569_v59  ;;  %v5568_v59 = vld [vmem:[%s8866_s6 + $0x18] sm:$0xff] }
0x328a   :  { %5172 = vrot.lane.b32.xlu1 %v5170_v2, %s7661_s21  ;;  %v5569_v2 = vld [vmem:[%s8866_s6 + $0x20] sm:$0xff] }
0x32fc   :  { %v5173_v3 = vpop.permute.xlu1 %5172 }
0x32fd   :  { %5960 = vmatmul.mubr.msk.f32.vlgmr.msra.gmra.mrb[30].mxu0 %vm92_vm0, %v5173_v3  ;;  %v5570_v3 = vld [vmem:[%s8866_s6 + $0x28] sm:$0xff] }
0x32fe   :  { %7038 = vmatpush1.bf16.msra.mxu0 %v8598_v34  ;;  %5440 = vmatprep.mubr.f32.mxu0 %v7660_v0 }
0x32ff   :  { %7040 = vmatprep.subr.bf16.mxu0 %v8601_v40 }
0x3302   :  { %7042 = vmatpush1.bf16.msra.mxu0 %v8603_v25 }
0x3303   :  { %7044 = vmatprep.subr.bf16.mxu0 %v8607_v16 }
0x3306   :  { %7046 = vmatpush1.bf16.msra.mxu0 %v8609_v29 }
0x3307   :  { %7048 = vmatprep.subr.bf16.mxu0 %v8613_v35 }
0x330a   :  { %7050 = vmatpush1.bf16.msra.mxu0 %v8615_v50 }
0x330b   :  { %7075 = vmatprep.subr.bf16.mxu0 %v7663_v53 }
0x33d0   :  { %v5242_v61 = vpop.f32.mrb[30].mxu0 }
0x33d1   :  { %v7149_v36 = vadd.f32 %v5242_v61, %v8402_v60  ;;  %v5244_v45 = vpop.f32.mrb[31].mxu0  ;;  %v7058_v61 = vpack.c.bf16 %v5570_v3, %v5569_v2 }
0x33d2   :  { %v7150_v34 = vadd.f32 %v5244_v45, %v8406_v26  ;;  %v5572_v45 = vld [vmem:[%s8866_s6 + $0x38] sm:$0xff] }
0x33d3   :  { %v5961_v56 = vmul.f32 -1.442695, %v7149_v36  ;;  %v5571_v36 = vld [vmem:[%s8866_s6 + $0x30] sm:$0xff] }
0x33d4   :  { %v5962_v29 = vmul.f32 -1.442695, %v7150_v34 }
0x33d5   :  { %7572 = vpow2.f32 %v5961_v56  ;;  %v7061_v56 = vpack.c.bf16 %v5572_v45, %v5571_v36 }
0x33d6   :  { %7574 = vtanh.f32 %v7150_v34  ;;  %v5573_v34 = vld [vmem:[%s8866_s6 + $0x40] sm:$0xff] }
0x33df   :  { %v7573_v4 = vpop.eup %7572 }
0x33e0   :  { %v5255_v40 = vadd.f32 1.0, %v7573_v4  ;;  %v7575_v25 = vpop.eup %7574  ;;  %v5574_v4 = vld [vmem:[%s8866_s6 + $0x48] sm:$0xff] }
0x33e2   :  { %7576 = vrcp.f32 %v5255_v40  ;;  %v7064_v40 = vpack.c.bf16 %v5574_v4, %v5573_v34 }
0x33e3   :  { %7578 = vpow2.f32 %v5962_v29  ;;  %v5577_v29 = vld [vmem:[%s8866_s6 + $0x60] sm:$0xff] }
0x33ec   :  { %v7577_v16 = vpop.eup %7576 }
0x33ed   :  { %v5263_v5 = vmul.f32 %v7577_v16, %v7575_v25  ;;  %v7579_v35 = vpop.eup %7578  ;;  %v5262_v7 = vmul.f32 %v7577_v16, %v5168_v54  ;;  %v5575_v25 = vld [vmem:[%s8866_s6 + $0x50] sm:$0xff]  ;;  %v5576_v16 = vld [vmem:[%s8866_s6 + $0x58] sm:$0xff] }
0x33ee   :  { %v5256_v50 = vadd.f32 1.0, %v7579_v35  ;;  %v5578_v35 = vld [vmem:[%s8866_s6 + $0x68] sm:$0xff] }
0x33ef   :  { %5265 = vrot.lane.b32.xlu0 %v5263_v5, %s7661_s21  ;;  %v7067_v5 = vpack.c.bf16 %v5576_v16, %v5575_v25 }
0x33f0   :  { %7580 = vrcp.f32 %v5256_v50  ;;  %v7070_v50 = vpack.c.bf16 %v5578_v35, %v5577_v29 }
0x33fa   :  { %v7581_v48 = vpop.eup %7580 }
0x3461   :  { %v5266_v20 = vpop.permute.xlu0 %5265 }
0x3462   :  { %v5268_v24 = vadd.f32 %v5266_v20, %v5262_v7 }
0x3464   :  { %7582 = vtanh.f32 %v5268_v24 }
0x346e   :  { %v7583_v6 = vpop.eup %7582 }
0x346f   :  { %v5270_v21 = vmul.f32 %v7583_v6, %v7581_v48 }
0x3471   :  { %5272 = vrot.lane.b32.xlu1 %v5270_v21, %s7661_s21 }
0x34e3   :  { %v5273_v12 = vpop.permute.xlu1 %5272 }
0x34e4   :  { %5963 = vmatmul.mubr.msk.f32.vlgmr.msra.gmra.mrb[28].mxu1 %vm92_vm0, %v5273_v12  ;;  %v5579_v12 = vld [vmem:[%s8866_s6 + $0x70] sm:$0xff] }
0x34e5   :  { %6014 = vmatpush3.msra.mxu1 %v5476_v42  ;;  %6015 = vmatprep.mubr.msk.f32.mxu1 %vm7662_vm2, %v7660_v0 }
0x34e6   :  { %7051 = vmatprep.subr.bf16.mxu1 %v7663_v53 }
0x34e8   :  { %6016 = vmatmul.mubr.msk.f32.vlgmr.msra.gmra.mrb[30].mxu1 %vm5481_vm1, %v5475_v27 }
0x34e9   :  { %6050 = vmatprep.mubr.msk.f32.mxu1 %vm7662_vm2, %v7660_v0 }
0x35b7   :  { %v5342_v14 = vpop.f32.mrb[28].mxu1 }
0x35b8   :  { %v7151_v15 = vadd.f32 %v5342_v14, %v8402_v60  ;;  %v5344_v28 = vpop.f32.mrb[29].mxu1  ;;  %v5580_v14 = vld [vmem:[%s8866_s6 + $0x78] sm:$0xff] }
0x35b9   :  { %v7152_v10 = vadd.f32 %v5344_v28, %v8406_v26  ;;  %v5969_v28 = vld [vmem:[%s8869_s9] ss:$0 sm:$0xff] }
0x35ba   :  { %v5964_v22 = vmul.f32 -1.442695, %v7151_v15  ;;  %v7073_v15 = vpack.c.bf16 %v5580_v14, %v5579_v12 }
0x35bb   :  { %v5965_v41 = vmul.f32 -1.442695, %v7152_v10  ;;  %v5551_v47 = vpop.f32.mrb[30].mxu1 }
0x35bc   :  { %7584 = vpow2.f32 %v5964_v22  ;;  %v6017_v13 = vpop.f32.mrb[31].mxu1  ;;  %v5552_v22 = vadd.f32 %v5969_v28, %v5551_v47  ;;  %v5746_v47 = vld [vmem:[%s8868_s8 + $0x20] sm:$0xff] }
0x35bd   :  { %7586 = vtanh.f32 %v7152_v10  ;;  %v5656_v10 = vld [vmem:[%s8867_s7] sm:$0xff] }
0x35c6   :  { %v7585_v31 = vpop.eup %7584 }
0x35c7   :  { %v5355_v39 = vadd.f32 1.0, %v7585_v31  ;;  %v7587_v30 = vpop.eup %7586  ;;  %v5657_v31 = vld [vmem:[%s8867_s7 + $0x8] sm:$0xff] }
0x35c9   :  { %7588 = vrcp.f32 %v5355_v39  ;;  %v5658_v39 = vld [vmem:[%s8867_s7 + $0x10] sm:$0xff] }
0x35ca   :  { %7590 = vpow2.f32 %v5965_v41 }
0x35d3   :  { %v7589_v18 = vpop.eup %7588 }
0x35d4   :  { %v5363_v38 = vmul.f32 %v7589_v18, %v7587_v30  ;;  %v7591_v51 = vpop.eup %7590  ;;  %v5362_v23 = vmul.f32 %v7589_v18, %v5268_v24  ;;  %v7076_v30 = vpack.c.bf16 %v5657_v31, %v5656_v10  ;;  %v5659_v18 = vld [vmem:[%s8867_s7 + $0x18] sm:$0xff] }
0x35d5   :  { %v5356_v19 = vadd.f32 1.0, %v7591_v51  ;;  %v5555_v51 = vmax.f32 %v5552_v22, 0.0 }
0x35d6   :  { %5365 = vrot.lane.b32.xlu0 %v5363_v38, %s7661_s21  ;;  %v7079_v38 = vpack.c.bf16 %v5659_v18, %v5658_v39 }
0x35d7   :  { %7592 = vrcp.f32 %v5356_v19  ;;  %v5660_v19 = vld [vmem:[%s8867_s7 + $0x20] sm:$0xff] }
0x35e1   :  { %v7593_v46 = vpop.eup %7592 }
0x3648   :  { %v5366_v1 = vpop.permute.xlu0 %5365 }
0x3649   :  { %v8706_v55 = vadd.f32 %v5366_v1, %v5362_v23  ;;  %v5661_v23 = vld [vmem:[%s8867_s7 + $0x28] sm:$0xff] }
0x364a   :  { %v7082_v42 = vpack.c.bf16 %v5661_v23, %v5660_v19 }
0x364b   :  { %7594 = vtanh.f32 %v8706_v55 }
0x3655   :  { %v7595_v57 = vpop.eup %7594 }
0x3656   :  { %v5370_v43 = vmul.f32 %v7595_v57, %v7593_v46 }
0x3658   :  { %5372 = vrot.lane.b32.xlu1 %v5370_v43, %s7661_s21 }
0x36ca   :  { %v5373_v58 = vpop.permute.xlu1 %5372 }
0x36cb   :  { %5966 = vmatmul.mubr.msk.f32.vlgmr.msra.gmra.mrb[32].mxu0 %vm92_vm0, %v5373_v58 }
0x36cc   :  { %6069 = vmatprep.mubr.msk.f32.mxu0 %vm7662_vm2, %v7660_v0  ;;  %7077 = vmatpush3.bf16.msra.mxu0 %v7076_v30 }
0x36cd   :  { %7078 = vmatprep.subr.bf16.mxu0 %v7663_v53 }
0x36d0   :  { %7080 = vmatpush3.bf16.msra.mxu0 %v7079_v38 }
0x36d1   :  { %7081 = vmatprep.subr.bf16.mxu0 %v7663_v53 }
0x36d4   :  { %7083 = vmatpush3.bf16.msra.mxu0 %v7082_v42 }
0x36d5   :  { %7084 = vmatprep.subr.bf16.mxu0 %v7663_v53 }
0x379e   :  { %v5442_v11 = vpop.f32.mrb[32].mxu0 }
0x379f   :  { %v7153_v33 = vadd.f32 %v5442_v11, %v8402_v60  ;;  %v5444_v44 = vpop.f32.mrb[33].mxu0  ;;  %v5565_v60 = vld [vmem:[%s8866_s6] sm:$0xff]  ;;  %v5662_v11 = vld [vmem:[%s8867_s7 + $0x30] sm:$0xff] }
0x37a0   :  { %v7154_v32 = vadd.f32 %v5444_v44, %v8406_v26  ;;  %v5567_v26 = vld [vmem:[%s8866_s6 + $0x10] sm:$0xff]  ;;  %v7052_v54 = vpack.c.bf16 %v5566_v17, %v5565_v60 }
0x37a1   :  { %v5967_v8 = vmul.f32 -1.442695, %v7153_v33  ;;  %v7055_v62 = vpack.c.bf16 %v5568_v59, %v5567_v26  ;;  %v5663_v33 = vld [vmem:[%s8867_s7 + $0x38] sm:$0xff]  ;;  %v5748_v59 = vld [vmem:[%s8868_s8 + $0x30] sm:$0xff] }
0x37a2   :  { %7053 = vmatpush3.bf16.msra.mxu1 %v7052_v54  ;;  %v5968_v7 = vmul.f32 -1.442695, %v7154_v32  ;;  %v7085_v44 = vpack.c.bf16 %v5663_v33, %v5662_v11 }
0x37a3   :  { %7596 = vpow2.f32 %v5967_v8  ;;  %7054 = vmatprep.subr.bf16.mxu1 %v7663_v53  ;;  %v5742_v8 = vld [vmem:[%s8868_s8] sm:$0xff] }
0x37a4   :  { %7598 = vtanh.f32 %v7154_v32  ;;  %7086 = vmatpush3.bf16.msra.mxu0 %v7085_v44  ;;  %v5743_v32 = vld [vmem:[%s8868_s8 + $0x8] sm:$0xff] }
0x37a6   :  { %7056 = vmatpush3.bf16.msra.mxu1 %v7055_v62  ;;  %v5749_v62 = vld [vmem:[%s8868_s8 + $0x38] sm:$0xff] }
0x37a7   :  { %7057 = vmatprep.subr.bf16.mxu1 %v7663_v53  ;;  %v7097_v2 = vpack.c.bf16 %v5749_v62, %v5748_v59 }
0x37aa   :  { %7059 = vmatpush3.bf16.msra.mxu1 %v7058_v61 }
0x37ab   :  { %7060 = vmatprep.subr.bf16.mxu1 %v7663_v53 }
0x37ad   :  { %v7597_v9 = vpop.eup %7596 }
0x37ae   :  { %v5455_v37 = vadd.f32 1.0, %v7597_v9  ;;  %v7599_v49 = vpop.eup %7598  ;;  %7062 = vmatpush3.bf16.msra.mxu1 %v7061_v56  ;;  %v7088_v9 = vpack.c.bf16 %v5743_v32, %v5742_v8  ;;  %v5974_v56 = vld [vmem:[%s8869_s9 + $0x3] ss:$0 sm:$0xff] }
0x37af   :  { %7063 = vmatprep.subr.bf16.mxu1 %v7663_v53 }
0x37b0   :  { %7600 = vrcp.f32 %v5455_v37  ;;  %v5745_v37 = vld [vmem:[%s8868_s8 + $0x18] sm:$0xff] }
0x37b1   :  { %7602 = vpow2.f32 %v5968_v7 }
0x37b2   :  { %7065 = vmatpush3.bf16.msra.mxu1 %v7064_v40 }
0x37b3   :  { %7066 = vmatprep.subr.bf16.mxu1 %v7663_v53 }
0x37b6   :  { %7068 = vmatpush3.bf16.msra.mxu1 %v7067_v5 }
0x37b7   :  { %7069 = vmatprep.subr.bf16.mxu1 %v7663_v53 }
0x37ba   :  { %v7601_v63 = vpop.eup %7600  ;;  %7071 = vmatpush3.bf16.msra.mxu1 %v7070_v50 }
0x37bb   :  { %v5463_v52 = vmul.f32 %v7601_v63, %v7599_v49  ;;  %7072 = vmatprep.subr.bf16.mxu1 %v7663_v53  ;;  %v7603_v20 = vpop.eup %7602  ;;  %v5462_v48 = vmul.f32 %v7601_v63, %v8706_v55  ;;  %v5747_v63 = vld [vmem:[%s8868_s8 + $0x28] sm:$0xff] }
0x37bc   :  { %v5456_v24 = vadd.f32 1.0, %v7603_v20  ;;  %v7094_v13 = vpack.c.bf16 %v5747_v63, %v5746_v47 }
0x37bd   :  { %5465 = vrot.lane.b32.xlu0 %v5463_v52, %s7661_s21  ;;  %v5971_v52 = vld [vmem:[%s8869_s9 + $0x1] ss:$0 sm:$0xff] }
0x37be   :  { %7604 = vrcp.f32 %v5456_v24  ;;  %7074 = vmatpush3.bf16.msra.mxu1 %v7073_v15 }
0x37bf   :  { %7087 = vmatprep.subr.bf16.mxu1 %v7663_v53 }
0x37c8   :  { %v7605_v41 = vpop.eup %7604 }
0x382f   :  { %v5466_v6 = vpop.permute.xlu0 %5465 }
0x3830   :  { %v5468_v21 = vadd.f32 %v5466_v6, %v5462_v48 }
0x3832   :  { %7606 = vtanh.f32 %v5468_v21 }
0x383c   :  { %v7607_v1 = vpop.eup %7606 }
0x383d   :  { %v5470_v55 = vmul.f32 %v7607_v1, %v7605_v41 }
0x383f   :  { %v7219_v27 = vpack.i.bf16 %v5555_v51, %v5470_v55 }
0x3841   :  { %7220 = vrot.lane.b32.xlu1 %v7219_v27, %s7661_s21 }
0x38b3   :  { %v7221_v46 = vpop.permute.xlu1 %7220 }
0x38b4   :  { %v7223_v57 = vunpack.i.h.bf16 %v7221_v46  ;;  %v7222_v43 = vunpack.i.l.bf16 %v7221_v46 }
0x38b6   :  { %v5564_v58 = vsel %vm92_vm0, %v7222_v43, %v7223_v57 }
0x38b7   :  { %6051 = vmatmul.mubr.f32.vlgmr.msra.gmra.mrb[32].mxu1 %v5564_v58 }
0x38b8   :  { %6088 = vmatprep.mubr.msk.f32.mxu1 %vm7662_vm2, %v7660_v0  ;;  %v5744_v0 = vld [vmem:[%s8868_s8 + $0x10] sm:$0xff]  ;;  %7089 = vmatpush3.bf16.msra.mxu1 %v7088_v9 }
0x38b9   :  { %v7091_v49 = vpack.c.bf16 %v5745_v37, %v5744_v0  ;;  %7090 = vmatprep.subr.bf16.mxu1 %v7663_v53 }
0x38bc   :  { %7092 = vmatpush3.bf16.msra.mxu1 %v7091_v49 }
0x38bd   :  { %7093 = vmatprep.subr.bf16.mxu1 %v7663_v53 }
0x38c0   :  { %7095 = vmatpush3.bf16.msra.mxu1 %v7094_v13 }
0x38c1   :  { %7096 = vmatprep.subr.bf16.mxu1 %v7663_v53  ;;  %v5972_v53 = vld [vmem:[%s8869_s9 + $0x2] ss:$0 sm:$0xff] }
0x38c4   :  { %7098 = vmatpush3.bf16.msra.mxu1 %v7097_v2 }
0x398a   :  { %v5651_v60 = vpop.f32.mrb[32].mxu1 }
0x398b   :  { %v5652_v17 = vadd.f32 %v5971_v52, %v5651_v60  ;;  %v6052_v26 = vpop.f32.mrb[33].mxu1 }
0x398d   :  { %v5655_v54 = vmax.f32 %v5652_v17, 0.0 }
0x398f   :  { %6070 = vmatmul.mubr.msk.f32.vlgmr.msra.gmra.mrb[34].mxu0 %vm92_vm0, %v5655_v54 }
0x3a62   :  { %v5737_v3 = vpop.f32.mrb[34].mxu0 }
0x3a63   :  { %v5738_v61 = vadd.f32 %v5972_v53, %v5737_v3  ;;  %v6071_v36 = vpop.f32.mrb[35].mxu0 }
0x3a65   :  { %v5741_v45 = vmax.f32 %v5738_v61, 0.0 }
0x3a67   :  { %6089 = vmatmul.mubr.msk.f32.vlgmr.msra.gmra.mrb[34].mxu1 %vm92_vm0, %v5741_v45 }
0x3b3a   :  { %v5823_v34 = vpop.f32.mrb[34].mxu1 }
0x3b3b   :  { %v5824_v4 = vadd.f32 %v5974_v56, %v5823_v34  ;;  %v6090_v40 = vpop.f32.mrb[35].mxu1 }
0x3b3d   :  { %5828 = vst.msk [vmem:[%s8870_s10] sm:$0x3] %vm5827_vm3, %v5824_v4 }
0x3b3e   :  { %5833 = vsyncpa [#allocation3], 1 }
0x3b3f   :  { %5834 = vsyncpa [#allocation5], 1 }

</bundles_post_ra>
